<compile_context>
chip_gen: v7x
topology: tpu7x:2x2x1
jax: 0.10.0
libtpu: 0.0.40
codegen_flags: <defaults>
</compile_context>

<pallas_src>
import jax
import jax.numpy as jnp
from jax.experimental import pallas as pl
from jax.experimental.pallas import tpu as pltpu

# ---------------- model hyper-parameters (small synthetic ViT) --------------
IMG_SIZE = 16
PATCH_SIZE = 4
IN_CHANS = 3
EMBED_DIM = 32
DEPTH = 2
NUM_HEADS = 4
MLP_RATIO = 4.0
NUM_CLASSES = 10
HEAD_DIM = EMBED_DIM // NUM_HEADS
NUM_PATCHES = (IMG_SIZE // PATCH_SIZE) ** 2
SEQ_LEN = NUM_PATCHES + 1
HIDDEN = int(EMBED_DIM * MLP_RATIO)
PATCH_DIM = IN_CHANS * PATCH_SIZE * PATCH_SIZE
LN_EPS = 1e-5                      # PyTorch nn.LayerNorm default
ATTN_SCALE = HEAD_DIM ** (-0.5)    # qk_scale=None -> head_dim ** -0.5

_KPARAM_ORDER = (
    "patch_w_t", "add_const",
    "ln1_g", "ln1_b", "qkv_w", "proj_w", "proj_b",
    "ln2_g", "ln2_b", "fc1_w", "fc1_b", "fc2_w", "fc2_b",
    "lnf_g", "lnf_b", "head_w_t", "head_b",
)


# ----------------------------- in-kernel helpers -----------------------------
def _layer_norm(x, g, b):
    mu = jnp.mean(x, axis=-1, keepdims=True)
    var = jnp.mean(jnp.square(x - mu), axis=-1, keepdims=True)
    return (x - mu) * jax.lax.rsqrt(var + LN_EPS) * g + b


def _gelu_tanh(x):
    # TODO(synk): reference nn.GELU() is exact-erf; tanh approximation (runs on
    # the EUP, keeps the MLP fused in-kernel) deviates from it by ~1e-3 at most.
    c = 0.7978845608028654  # sqrt(2/pi)
    return 0.5 * x * (1.0 + jnp.tanh(c * (x + 0.044715 * x * x * x)))


# ----------------------------- fused ViT kernel ------------------------------
def _vit_fused_kernel(patches_ref, patch_w_ref, add_const_ref,
                      ln1_g_ref, ln1_b_ref, qkv_w_ref, proj_w_ref, proj_b_ref,
                      ln2_g_ref, ln2_b_ref, fc1_w_ref, fc1_b_ref,
                      fc2_w_ref, fc2_b_ref, lnf_g_ref, lnf_b_ref,
                      head_w_ref, head_b_ref, out_ref):
    """One grid step == one image. Everything stays in VMEM / vregs."""
    # Patch embedding. Row 0 of the patch slab is an all-zero dummy row whose
    # embedding is replaced with cls_token + pos_embed[0] through add_const;
    # rows 1.. receive pos_embed + conv-bias the same way (no in-kernel concat).
    xs = jnp.dot(patches_ref[...], patch_w_ref[...],
                 preferred_element_type=jnp.float32) + add_const_ref[...]   # (N, E)

    for d in range(DEPTH):                       # static unroll over blocks
        # ---------------- attention branch ----------------
        xn = _layer_norm(xs, ln1_g_ref[d], ln1_b_ref[d])                    # (N, E)
        attn_acc = jnp.zeros((SEQ_LEN, EMBED_DIM), jnp.float32)
        for h in range(NUM_HEADS):               # static unroll over heads
            # Per-head weight banks (attn gate already folded in at pack time).
            q_h = jnp.dot(xn, qkv_w_ref[(d * 3 + 0) * NUM_HEADS + h],
                          preferred_element_type=jnp.float32)               # (N, Dh)
            k_h = jnp.dot(xn, qkv_w_ref[(d * 3 + 1) * NUM_HEADS + h],
                          preferred_element_type=jnp.float32)
            v_h = jnp.dot(xn, qkv_w_ref[(d * 3 + 2) * NUM_HEADS + h],
                          preferred_element_type=jnp.float32)
            # q @ k^T via dot_general (contract on the head dim, no transpose op).
            s = jax.lax.dot_general(q_h, k_h, (((1,), (1,)), ((), ())),
                                    preferred_element_type=jnp.float32) * ATTN_SCALE
            s = s - jnp.max(s, axis=-1, keepdims=True)     # same softmax result
            p = jnp.exp(s)
            p = p * pl.reciprocal(jnp.sum(p, axis=-1, keepdims=True), approx=True)
            o_h = jnp.dot(p, v_h, preferred_element_type=jnp.float32)       # (N, Dh)
            # Per-head slice of proj weight: sum_h o_h @ W_proj[h] == concat @ W_proj.
            attn_acc = attn_acc + jnp.dot(o_h, proj_w_ref[d * NUM_HEADS + h],
                                          preferred_element_type=jnp.float32)
        xs = xs + attn_acc + proj_b_ref[d]       # residual (dropout/drop_path are 0)

        # ---------------- MLP branch ----------------
        xn2 = _layer_norm(xs, ln2_g_ref[d], ln2_b_ref[d])
        h1 = jnp.dot(xn2, fc1_w_ref[d], preferred_element_type=jnp.float32) + fc1_b_ref[d]
        h1 = _gelu_tanh(h1)                       # mlp gate folded into fc2 rows
        xs = xs + jnp.dot(h1, fc2_w_ref[d],
                          preferred_element_type=jnp.float32) + fc2_b_ref[d]

    # -------- final LN + classifier head, CLS row only (row-wise ops) --------
    cls_row = xs[0:1, :]                                                    # (1, E)
    cls_n = _layer_norm(cls_row, lnf_g_ref[...], lnf_b_ref[...])
    logits = jnp.dot(cls_n, head_w_ref[...],
                     preferred_element_type=jnp.float32) + head_b_ref[...]  # (1, C)
    out_ref[...] = logits.astype(out_ref.dtype)


# ----------------------------- parameter init --------------------------------
def init_params(key):
    """PyTorch-layout parameters (nn.Linear weights are (out, in))."""
    def nrm(k, shape):
        # trunc_normal_(std=0.02) ~ normal * 0.02 for this synthetic model.
        return 0.02 * jax.random.normal(k, shape, jnp.float32)

    keys = iter(jax.random.split(key, 8 + 6 * DEPTH))
    p = {
        "patch_w": nrm(next(keys), (EMBED_DIM, IN_CHANS, PATCH_SIZE, PATCH_SIZE)),
        "patch_b": jnp.zeros((EMBED_DIM,), jnp.float32),
        "cls_token": nrm(next(keys), (1, 1, EMBED_DIM)),
        "pos_embed": nrm(next(keys), (1, SEQ_LEN, EMBED_DIM)),
    }
    blocks = []
    for _ in range(DEPTH):
        blocks.append({
            "ln1_g": jnp.ones((EMBED_DIM,), jnp.float32),
            "ln1_b": jnp.zeros((EMBED_DIM,), jnp.float32),
            "qkv_w": nrm(next(keys), (3 * EMBED_DIM, EMBED_DIM)),   # qkv_bias=False
            "proj_w": nrm(next(keys), (EMBED_DIM, EMBED_DIM)),
            "proj_b": jnp.zeros((EMBED_DIM,), jnp.float32),
            "ln2_g": jnp.ones((EMBED_DIM,), jnp.float32),
            "ln2_b": jnp.zeros((EMBED_DIM,), jnp.float32),
            "fc1_w": nrm(next(keys), (HIDDEN, EMBED_DIM)),
            "fc1_b": jnp.zeros((HIDDEN,), jnp.float32),
            "fc2_w": nrm(next(keys), (EMBED_DIM, HIDDEN)),
            "fc2_b": jnp.zeros((EMBED_DIM,), jnp.float32),
            # Gates are all-ones in the reference module (kept for fidelity).
            "attn_gate": jnp.ones((EMBED_DIM,), jnp.float32),
            "mlp_gate": jnp.ones((HIDDEN,), jnp.float32),
        })
    p["blocks"] = blocks
    p["ln_g"] = jnp.ones((EMBED_DIM,), jnp.float32)
    p["ln_b"] = jnp.zeros((EMBED_DIM,), jnp.float32)
    p["head_w"] = nrm(next(keys), (NUM_CLASSES, EMBED_DIM))
    p["head_b"] = jnp.zeros((NUM_CLASSES,), jnp.float32)
    return p


def pack_params(p):
    """One-time (outside jit) repack into the fused-kernel layout:
    transpose linears to (in, out), split per-head weight banks, fold the
    (all-ones) gates and the cls/pos/conv-bias adds into weights/constants.
    NOTE: attn_gate is applied to q, k AND v exactly as the reference does."""
    kp = {}
    kp["patch_w_t"] = p["patch_w"].reshape(EMBED_DIM, PATCH_DIM).T          # (PATCH_DIM, E)
    kp["add_const"] = jnp.concatenate(
        [p["cls_token"][0] + p["pos_embed"][0, :1],                         # row 0
         p["pos_embed"][0, 1:] + p["patch_b"][None, :]], axis=0)            # rows 1..

    def stack(fn):
        return jnp.stack([fn(b) for b in p["blocks"]], axis=0)

    kp["ln1_g"] = stack(lambda b: b["ln1_g"][None, :])                      # (D, 1, E)
    kp["ln1_b"] = stack(lambda b: b["ln1_b"][None, :])
    kp["ln2_g"] = stack(lambda b: b["ln2_g"][None, :])
    kp["ln2_b"] = stack(lambda b: b["ln2_b"][None, :])

    def qkv_split(b):
        # (3E, E) -> (E, 3E), fold gate on every output column, -> (3, H, E, Dh).
        w_t = b["qkv_w"].T * jnp.tile(b["attn_gate"], 3)[None, :]
        return w_t.reshape(EMBED_DIM, 3, NUM_HEADS, HEAD_DIM).transpose(1, 2, 0, 3)

    kp["qkv_w"] = stack(qkv_split).reshape(DEPTH * 3 * NUM_HEADS, EMBED_DIM, HEAD_DIM)
    kp["proj_w"] = stack(
        lambda b: b["proj_w"].T.reshape(NUM_HEADS, HEAD_DIM, EMBED_DIM)
    ).reshape(DEPTH * NUM_HEADS, HEAD_DIM, EMBED_DIM)
    kp["proj_b"] = stack(lambda b: b["proj_b"][None, :])
    kp["fc1_w"] = stack(lambda b: b["fc1_w"].T)                             # (D, E, HIDDEN)
    kp["fc1_b"] = stack(lambda b: b["fc1_b"][None, :])
    # mlp gate multiplies the GELU output right before fc2 -> fold into fc2 rows.
    kp["fc2_w"] = stack(lambda b: b["mlp_gate"][:, None] * b["fc2_w"].T)    # (D, HIDDEN, E)
    kp["fc2_b"] = stack(lambda b: b["fc2_b"][None, :])
    kp["lnf_g"] = p["ln_g"][None, :]
    kp["lnf_b"] = p["ln_b"][None, :]
    kp["head_w_t"] = p["head_w"].T                                          # (E, C)
    kp["head_b"] = p["head_b"][None, :]
    return kp


# ------------------------------ forward pass ---------------------------------
def vit_forward(kparams, x):
    """x: (B, C, H, W) float32 NCHW -> logits (B, NUM_CLASSES)."""
    B = x.shape[0]
    hp = wp = IMG_SIZE // PATCH_SIZE

    # Patch extraction = pure layout plumbing (stays in XLA); everything heavier
    # runs inside the single fused Pallas kernel below.
    patches = x.reshape(B, IN_CHANS, hp, PATCH_SIZE, wp, PATCH_SIZE)
    patches = patches.transpose(0, 2, 4, 1, 3, 5).reshape(B, NUM_PATCHES, PATCH_DIM)
    # Prepend an all-zero dummy row per image; the kernel turns it into the
    # cls token via add_const (avoids any in-kernel concatenation).
    patches = jnp.pad(patches, ((0, 0), (1, 0), (0, 0)))        # (B, SEQ_LEN, PATCH_DIM)

    weights = [kparams[name] for name in _KPARAM_ORDER]

    def whole_array_spec(shape):
        # Whole array resident in VMEM, identical block for every grid step
        # (so it is DMA'd once and never re-fetched).
        zeros = (0,) * len(shape)
        return pl.BlockSpec(shape, lambda b: zeros)

    in_specs = [pl.BlockSpec((None, SEQ_LEN, PATCH_DIM), lambda b: (b, 0, 0))]
    in_specs += [whole_array_spec(w.shape) for w in weights]

    out = pl.pallas_call(
        _vit_fused_kernel,
        out_shape=jax.ShapeDtypeStruct((B, 1, NUM_CLASSES), jnp.float32),
        grid=(B,),
        in_specs=in_specs,
        out_specs=pl.BlockSpec((None, 1, NUM_CLASSES), lambda b: (b, 0, 0)),
        compiler_params=pltpu.CompilerParams(
            dimension_semantics=("parallel",)),   # v7x megacore: one image per TC
    )(patches, *weights)
    return out.reshape(B, NUM_CLASSES)


# --------------------------------- main ---------------------------------------
if __name__ == "__main__":
    key = jax.random.PRNGKey(0)
    pkey, xkey = jax.random.split(key)
    params = init_params(pkey)
    kparams = pack_params(params)          # one-time weight repack, outside jit
    x = jax.random.normal(xkey, (2, IN_CHANS, IMG_SIZE, IMG_SIZE), jnp.float32)

    fwd = jax.jit(vit_forward)
    logits = jax.block_until_ready(fwd(kparams, x))
    assert logits.shape == (2, NUM_CLASSES), logits.shape
    assert bool(jnp.all(jnp.isfinite(logits)))
    print("KERNEL_OK")
</pallas_src>

<mosaic_0001>
module attributes {stable_mosaic.version = 11 : i64} {
  func.func @_vit_fused_kernel(%arg0: i32, %arg1: memref<1x17x48xf32, #tpu.memory_space<vmem>>, %arg2: memref<48x32xf32, #tpu.memory_space<vmem>>, %arg3: memref<17x32xf32, #tpu.memory_space<vmem>>, %arg4: memref<2x1x32xf32, #tpu.memory_space<vmem>>, %arg5: memref<2x1x32xf32, #tpu.memory_space<vmem>>, %arg6: memref<24x32x8xf32, #tpu.memory_space<vmem>>, %arg7: memref<8x8x32xf32, #tpu.memory_space<vmem>>, %arg8: memref<2x1x32xf32, #tpu.memory_space<vmem>>, %arg9: memref<2x1x32xf32, #tpu.memory_space<vmem>>, %arg10: memref<2x1x32xf32, #tpu.memory_space<vmem>>, %arg11: memref<2x32x128xf32, #tpu.memory_space<vmem>>, %arg12: memref<2x1x128xf32, #tpu.memory_space<vmem>>, %arg13: memref<2x128x32xf32, #tpu.memory_space<vmem>>, %arg14: memref<2x1x32xf32, #tpu.memory_space<vmem>>, %arg15: memref<1x32xf32, #tpu.memory_space<vmem>>, %arg16: memref<1x32xf32, #tpu.memory_space<vmem>>, %arg17: memref<32x10xf32, #tpu.memory_space<vmem>>, %arg18: memref<1x10xf32, #tpu.memory_space<vmem>>, %arg19: memref<1x1x10xf32, #tpu.memory_space<vmem>>) attributes {dimension_semantics = [#tpu.dimension_semantics<parallel>], iteration_bounds = array<i64: 2>, scalar_prefetch = 0 : i64, scratch_operands = 0 : i64, tpu.core_type = #tpu.core_type<tc>, window_params = [{transform_indices = @transform_0, window_bounds = array<i64: 1, 17, 48>}, {pipeline_mode = #tpu.pipeline_mode<synchronous>, transform_indices = @transform_1, window_bounds = array<i64: 48, 32>}, {pipeline_mode = #tpu.pipeline_mode<synchronous>, transform_indices = @transform_2, window_bounds = array<i64: 17, 32>}, {pipeline_mode = #tpu.pipeline_mode<synchronous>, transform_indices = @transform_3, window_bounds = array<i64: 2, 1, 32>}, {pipeline_mode = #tpu.pipeline_mode<synchronous>, transform_indices = @transform_4, window_bounds = array<i64: 2, 1, 32>}, {pipeline_mode = #tpu.pipeline_mode<synchronous>, transform_indices = @transform_5, window_bounds = array<i64: 24, 32, 8>}, {pipeline_mode = #tpu.pipeline_mode<synchronous>, transform_indices = @transform_6, window_bounds = array<i64: 8, 8, 32>}, {pipeline_mode = #tpu.pipeline_mode<synchronous>, transform_indices = @transform_7, window_bounds = array<i64: 2, 1, 32>}, {pipeline_mode = #tpu.pipeline_mode<synchronous>, transform_indices = @transform_8, window_bounds = array<i64: 2, 1, 32>}, {pipeline_mode = #tpu.pipeline_mode<synchronous>, transform_indices = @transform_9, window_bounds = array<i64: 2, 1, 32>}, {pipeline_mode = #tpu.pipeline_mode<synchronous>, transform_indices = @transform_10, window_bounds = array<i64: 2, 32, 128>}, {pipeline_mode = #tpu.pipeline_mode<synchronous>, transform_indices = @transform_11, window_bounds = array<i64: 2, 1, 128>}, {pipeline_mode = #tpu.pipeline_mode<synchronous>, transform_indices = @transform_12, window_bounds = array<i64: 2, 128, 32>}, {pipeline_mode = #tpu.pipeline_mode<synchronous>, transform_indices = @transform_13, window_bounds = array<i64: 2, 1, 32>}, {pipeline_mode = #tpu.pipeline_mode<synchronous>, transform_indices = @transform_14, window_bounds = array<i64: 1, 32>}, {pipeline_mode = #tpu.pipeline_mode<synchronous>, transform_indices = @transform_15, window_bounds = array<i64: 1, 32>}, {pipeline_mode = #tpu.pipeline_mode<synchronous>, transform_indices = @transform_16, window_bounds = array<i64: 32, 10>}, {pipeline_mode = #tpu.pipeline_mode<synchronous>, transform_indices = @transform_17, window_bounds = array<i64: 1, 10>}, {transform_indices = @transform_18, window_bounds = array<i64: 1, 1, 10>}]} {
    %c0 = arith.constant 0 : index
    %c0_0 = arith.constant 0 : index
    %c0_1 = arith.constant 0 : index
    %0 = vector.load %arg1[%c0, %c0_0, %c0_1] : memref<1x17x48xf32, #tpu.memory_space<vmem>>, vector<1x17x48xf32>
    %1 = vector.shape_cast %0 : vector<1x17x48xf32> to vector<17x48xf32>
    %c0_2 = arith.constant 0 : index
    %c0_3 = arith.constant 0 : index
    %2 = vector.load %arg2[%c0_2, %c0_3] : memref<48x32xf32, #tpu.memory_space<vmem>>, vector<48x32xf32>
    %cst = arith.constant dense<0.000000e+00> : vector<17x32xf32>
    %3 = tpu.matmul %1, %2, %cst {dimension_numbers = #tpu.dot_dimension_numbers<[1], [0], [0], [1], [0, 0, 1, 1], [], []>} : vector<17x48xf32>, vector<48x32xf32>, vector<17x32xf32> -> vector<17x32xf32>
    %c0_4 = arith.constant 0 : index
    %c0_5 = arith.constant 0 : index
    %4 = vector.load %arg3[%c0_4, %c0_5] : memref<17x32xf32, #tpu.memory_space<vmem>>, vector<17x32xf32>
    %5 = arith.addf %3, %4 : vector<17x32xf32>
    %c0_6 = arith.constant 0 : index
    %c0_7 = arith.constant 0 : index
    %c0_8 = arith.constant 0 : index
    %6 = vector.load %arg4[%c0_6, %c0_7, %c0_8] : memref<2x1x32xf32, #tpu.memory_space<vmem>>, vector<1x1x32xf32>
    %7 = vector.shape_cast %6 : vector<1x1x32xf32> to vector<1x32xf32>
    %c0_9 = arith.constant 0 : index
    %c0_10 = arith.constant 0 : index
    %c0_11 = arith.constant 0 : index
    %8 = vector.load %arg5[%c0_9, %c0_10, %c0_11] : memref<2x1x32xf32, #tpu.memory_space<vmem>>, vector<1x1x32xf32>
    %9 = vector.shape_cast %8 : vector<1x1x32xf32> to vector<1x32xf32>
    %cst_12 = arith.constant dense<0.000000e+00> : vector<17xf32>
    %10 = vector.multi_reduction <add>, %5, %cst_12 [1] : vector<17x32xf32> to vector<17xf32>
    %11 = vector.shape_cast %10 : vector<17xf32> to vector<17x1xf32>
    %cst_13 = arith.constant 3.200000e+01 : f32
    %12 = vector.broadcast %cst_13 : f32 to vector<17x1xf32>
    %13 = arith.divf %11, %12 : vector<17x1xf32>
    %14 = vector.broadcast %13 : vector<17x1xf32> to vector<17x32xf32>
    %15 = arith.subf %5, %14 : vector<17x32xf32>
    %16 = arith.mulf %15, %15 : vector<17x32xf32>
    %cst_14 = arith.constant dense<0.000000e+00> : vector<17xf32>
    %17 = vector.multi_reduction <add>, %16, %cst_14 [1] : vector<17x32xf32> to vector<17xf32>
    %18 = vector.shape_cast %17 : vector<17xf32> to vector<17x1xf32>
    %cst_15 = arith.constant 3.200000e+01 : f32
    %19 = vector.broadcast %cst_15 : f32 to vector<17x1xf32>
    %20 = arith.divf %18, %19 : vector<17x1xf32>
    %21 = vector.broadcast %13 : vector<17x1xf32> to vector<17x32xf32>
    %22 = arith.subf %5, %21 : vector<17x32xf32>
    %cst_16 = arith.constant 9.99999974E-6 : f32
    %23 = vector.broadcast %cst_16 : f32 to vector<17x1xf32>
    %24 = arith.addf %20, %23 : vector<17x1xf32>
    %25 = math.rsqrt %24 : vector<17x1xf32>
    %26 = vector.broadcast %25 : vector<17x1xf32> to vector<17x32xf32>
    %27 = arith.mulf %22, %26 : vector<17x32xf32>
    %28 = vector.broadcast %7 : vector<1x32xf32> to vector<17x32xf32>
    %29 = arith.mulf %27, %28 : vector<17x32xf32>
    %30 = vector.broadcast %9 : vector<1x32xf32> to vector<17x32xf32>
    %31 = arith.addf %29, %30 : vector<17x32xf32>
    %cst_17 = arith.constant 0.000000e+00 : f32
    %32 = vector.broadcast %cst_17 : f32 to vector<17x32xf32>
    %c0_18 = arith.constant 0 : index
    %c0_19 = arith.constant 0 : index
    %c0_20 = arith.constant 0 : index
    %33 = vector.load %arg6[%c0_18, %c0_19, %c0_20] : memref<24x32x8xf32, #tpu.memory_space<vmem>>, vector<1x32x8xf32>
    %34 = vector.shape_cast %33 : vector<1x32x8xf32> to vector<32x8xf32>
    %cst_21 = arith.constant dense<0.000000e+00> : vector<17x8xf32>
    %35 = tpu.matmul %31, %34, %cst_21 {dimension_numbers = #tpu.dot_dimension_numbers<[1], [0], [0], [1], [0, 0, 1, 1], [], []>} : vector<17x32xf32>, vector<32x8xf32>, vector<17x8xf32> -> vector<17x8xf32>
    %c4 = arith.constant 4 : index
    %c0_22 = arith.constant 0 : index
    %c0_23 = arith.constant 0 : index
    %36 = vector.load %arg6[%c4, %c0_22, %c0_23] : memref<24x32x8xf32, #tpu.memory_space<vmem>>, vector<1x32x8xf32>
    %37 = vector.shape_cast %36 : vector<1x32x8xf32> to vector<32x8xf32>
    %cst_24 = arith.constant dense<0.000000e+00> : vector<17x8xf32>
    %38 = tpu.matmul %31, %37, %cst_24 {dimension_numbers = #tpu.dot_dimension_numbers<[1], [0], [0], [1], [0, 0, 1, 1], [], []>} : vector<17x32xf32>, vector<32x8xf32>, vector<17x8xf32> -> vector<17x8xf32>
    %c8 = arith.constant 8 : index
    %c0_25 = arith.constant 0 : index
    %c0_26 = arith.constant 0 : index
    %39 = vector.load %arg6[%c8, %c0_25, %c0_26] : memref<24x32x8xf32, #tpu.memory_space<vmem>>, vector<1x32x8xf32>
    %40 = vector.shape_cast %39 : vector<1x32x8xf32> to vector<32x8xf32>
    %cst_27 = arith.constant dense<0.000000e+00> : vector<17x8xf32>
    %41 = tpu.matmul %31, %40, %cst_27 {dimension_numbers = #tpu.dot_dimension_numbers<[1], [0], [0], [1], [0, 0, 1, 1], [], []>} : vector<17x32xf32>, vector<32x8xf32>, vector<17x8xf32> -> vector<17x8xf32>
    %cst_28 = arith.constant dense<0.000000e+00> : vector<17x17xf32>
    %42 = tpu.matmul %35, %38, %cst_28 {dimension_numbers = #tpu.dot_dimension_numbers<[1], [1], [0], [0], [0, 0, 1, 0], [], []>} : vector<17x8xf32>, vector<17x8xf32>, vector<17x17xf32> -> vector<17x17xf32>
    %cst_29 = arith.constant 0.353553385 : f32
    %43 = vector.broadcast %cst_29 : f32 to vector<17x17xf32>
    %44 = arith.mulf %42, %43 : vector<17x17xf32>
    %cst_30 = arith.constant dense<0xFF800000> : vector<17xf32>
    %45 = vector.multi_reduction <maximumf>, %44, %cst_30 [1] : vector<17x17xf32> to vector<17xf32>
    %46 = vector.shape_cast %45 : vector<17xf32> to vector<17x1xf32>
    %47 = vector.broadcast %46 : vector<17x1xf32> to vector<17x17xf32>
    %48 = arith.subf %44, %47 : vector<17x17xf32>
    %49 = math.exp %48 : vector<17x17xf32>
    %cst_31 = arith.constant dense<0.000000e+00> : vector<17xf32>
    %50 = vector.multi_reduction <add>, %49, %cst_31 [1] : vector<17x17xf32> to vector<17xf32>
    %51 = vector.shape_cast %50 : vector<17xf32> to vector<17x1xf32>
    %52 = tpu.reciprocal %51 {approx = true} : vector<17x1xf32> -> vector<17x1xf32>
    %53 = vector.broadcast %52 : vector<17x1xf32> to vector<17x17xf32>
    %54 = arith.mulf %49, %53 : vector<17x17xf32>
    %cst_32 = arith.constant dense<0.000000e+00> : vector<17x8xf32>
    %55 = tpu.matmul %54, %41, %cst_32 {dimension_numbers = #tpu.dot_dimension_numbers<[1], [0], [0], [1], [0, 0, 1, 1], [], []>} : vector<17x17xf32>, vector<17x8xf32>, vector<17x8xf32> -> vector<17x8xf32>
    %c0_33 = arith.constant 0 : index
    %c0_34 = arith.constant 0 : index
    %c0_35 = arith.constant 0 : index
    %56 = vector.load %arg7[%c0_33, %c0_34, %c0_35] : memref<8x8x32xf32, #tpu.memory_space<vmem>>, vector<1x8x32xf32>
    %57 = vector.shape_cast %56 : vector<1x8x32xf32> to vector<8x32xf32>
    %cst_36 = arith.constant dense<0.000000e+00> : vector<17x32xf32>
    %58 = tpu.matmul %55, %57, %cst_36 {dimension_numbers = #tpu.dot_dimension_numbers<[1], [0], [0], [1], [0, 0, 1, 1], [], []>} : vector<17x8xf32>, vector<8x32xf32>, vector<17x32xf32> -> vector<17x32xf32>
    %59 = arith.addf %32, %58 : vector<17x32xf32>
    %c1 = arith.constant 1 : index
    %c0_37 = arith.constant 0 : index
    %c0_38 = arith.constant 0 : index
    %60 = vector.load %arg6[%c1, %c0_37, %c0_38] : memref<24x32x8xf32, #tpu.memory_space<vmem>>, vector<1x32x8xf32>
    %61 = vector.shape_cast %60 : vector<1x32x8xf32> to vector<32x8xf32>
    %cst_39 = arith.constant dense<0.000000e+00> : vector<17x8xf32>
    %62 = tpu.matmul %31, %61, %cst_39 {dimension_numbers = #tpu.dot_dimension_numbers<[1], [0], [0], [1], [0, 0, 1, 1], [], []>} : vector<17x32xf32>, vector<32x8xf32>, vector<17x8xf32> -> vector<17x8xf32>
    %c5 = arith.constant 5 : index
    %c0_40 = arith.constant 0 : index
    %c0_41 = arith.constant 0 : index
    %63 = vector.load %arg6[%c5, %c0_40, %c0_41] : memref<24x32x8xf32, #tpu.memory_space<vmem>>, vector<1x32x8xf32>
    %64 = vector.shape_cast %63 : vector<1x32x8xf32> to vector<32x8xf32>
    %cst_42 = arith.constant dense<0.000000e+00> : vector<17x8xf32>
    %65 = tpu.matmul %31, %64, %cst_42 {dimension_numbers = #tpu.dot_dimension_numbers<[1], [0], [0], [1], [0, 0, 1, 1], [], []>} : vector<17x32xf32>, vector<32x8xf32>, vector<17x8xf32> -> vector<17x8xf32>
    %c9 = arith.constant 9 : index
    %c0_43 = arith.constant 0 : index
    %c0_44 = arith.constant 0 : index
    %66 = vector.load %arg6[%c9, %c0_43, %c0_44] : memref<24x32x8xf32, #tpu.memory_space<vmem>>, vector<1x32x8xf32>
    %67 = vector.shape_cast %66 : vector<1x32x8xf32> to vector<32x8xf32>
    %cst_45 = arith.constant dense<0.000000e+00> : vector<17x8xf32>
    %68 = tpu.matmul %31, %67, %cst_45 {dimension_numbers = #tpu.dot_dimension_numbers<[1], [0], [0], [1], [0, 0, 1, 1], [], []>} : vector<17x32xf32>, vector<32x8xf32>, vector<17x8xf32> -> vector<17x8xf32>
    %cst_46 = arith.constant dense<0.000000e+00> : vector<17x17xf32>
    %69 = tpu.matmul %62, %65, %cst_46 {dimension_numbers = #tpu.dot_dimension_numbers<[1], [1], [0], [0], [0, 0, 1, 0], [], []>} : vector<17x8xf32>, vector<17x8xf32>, vector<17x17xf32> -> vector<17x17xf32>
    %cst_47 = arith.constant 0.353553385 : f32
    %70 = vector.broadcast %cst_47 : f32 to vector<17x17xf32>
    %71 = arith.mulf %69, %70 : vector<17x17xf32>
    %cst_48 = arith.constant dense<0xFF800000> : vector<17xf32>
    %72 = vector.multi_reduction <maximumf>, %71, %cst_48 [1] : vector<17x17xf32> to vector<17xf32>
    %73 = vector.shape_cast %72 : vector<17xf32> to vector<17x1xf32>
    %74 = vector.broadcast %73 : vector<17x1xf32> to vector<17x17xf32>
    %75 = arith.subf %71, %74 : vector<17x17xf32>
    %76 = math.exp %75 : vector<17x17xf32>
    %cst_49 = arith.constant dense<0.000000e+00> : vector<17xf32>
    %77 = vector.multi_reduction <add>, %76, %cst_49 [1] : vector<17x17xf32> to vector<17xf32>
    %78 = vector.shape_cast %77 : vector<17xf32> to vector<17x1xf32>
    %79 = tpu.reciprocal %78 {approx = true} : vector<17x1xf32> -> vector<17x1xf32>
    %80 = vector.broadcast %79 : vector<17x1xf32> to vector<17x17xf32>
    %81 = arith.mulf %76, %80 : vector<17x17xf32>
    %cst_50 = arith.constant dense<0.000000e+00> : vector<17x8xf32>
    %82 = tpu.matmul %81, %68, %cst_50 {dimension_numbers = #tpu.dot_dimension_numbers<[1], [0], [0], [1], [0, 0, 1, 1], [], []>} : vector<17x17xf32>, vector<17x8xf32>, vector<17x8xf32> -> vector<17x8xf32>
    %c1_51 = arith.constant 1 : index
    %c0_52 = arith.constant 0 : index
    %c0_53 = arith.constant 0 : index
    %83 = vector.load %arg7[%c1_51, %c0_52, %c0_53] : memref<8x8x32xf32, #tpu.memory_space<vmem>>, vector<1x8x32xf32>
    %84 = vector.shape_cast %83 : vector<1x8x32xf32> to vector<8x32xf32>
    %cst_54 = arith.constant dense<0.000000e+00> : vector<17x32xf32>
    %85 = tpu.matmul %82, %84, %cst_54 {dimension_numbers = #tpu.dot_dimension_numbers<[1], [0], [0], [1], [0, 0, 1, 1], [], []>} : vector<17x8xf32>, vector<8x32xf32>, vector<17x32xf32> -> vector<17x32xf32>
    %86 = arith.addf %59, %85 : vector<17x32xf32>
    %c2 = arith.constant 2 : index
    %c0_55 = arith.constant 0 : index
    %c0_56 = arith.constant 0 : index
    %87 = vector.load %arg6[%c2, %c0_55, %c0_56] : memref<24x32x8xf32, #tpu.memory_space<vmem>>, vector<1x32x8xf32>
    %88 = vector.shape_cast %87 : vector<1x32x8xf32> to vector<32x8xf32>
    %cst_57 = arith.constant dense<0.000000e+00> : vector<17x8xf32>
    %89 = tpu.matmul %31, %88, %cst_57 {dimension_numbers = #tpu.dot_dimension_numbers<[1], [0], [0], [1], [0, 0, 1, 1], [], []>} : vector<17x32xf32>, vector<32x8xf32>, vector<17x8xf32> -> vector<17x8xf32>
    %c6 = arith.constant 6 : index
    %c0_58 = arith.constant 0 : index
    %c0_59 = arith.constant 0 : index
    %90 = vector.load %arg6[%c6, %c0_58, %c0_59] : memref<24x32x8xf32, #tpu.memory_space<vmem>>, vector<1x32x8xf32>
    %91 = vector.shape_cast %90 : vector<1x32x8xf32> to vector<32x8xf32>
    %cst_60 = arith.constant dense<0.000000e+00> : vector<17x8xf32>
    %92 = tpu.matmul %31, %91, %cst_60 {dimension_numbers = #tpu.dot_dimension_numbers<[1], [0], [0], [1], [0, 0, 1, 1], [], []>} : vector<17x32xf32>, vector<32x8xf32>, vector<17x8xf32> -> vector<17x8xf32>
    %c10 = arith.constant 10 : index
    %c0_61 = arith.constant 0 : index
    %c0_62 = arith.constant 0 : index
    %93 = vector.load %arg6[%c10, %c0_61, %c0_62] : memref<24x32x8xf32, #tpu.memory_space<vmem>>, vector<1x32x8xf32>
    %94 = vector.shape_cast %93 : vector<1x32x8xf32> to vector<32x8xf32>
    %cst_63 = arith.constant dense<0.000000e+00> : vector<17x8xf32>
    %95 = tpu.matmul %31, %94, %cst_63 {dimension_numbers = #tpu.dot_dimension_numbers<[1], [0], [0], [1], [0, 0, 1, 1], [], []>} : vector<17x32xf32>, vector<32x8xf32>, vector<17x8xf32> -> vector<17x8xf32>
    %cst_64 = arith.constant dense<0.000000e+00> : vector<17x17xf32>
    %96 = tpu.matmul %89, %92, %cst_64 {dimension_numbers = #tpu.dot_dimension_numbers<[1], [1], [0], [0], [0, 0, 1, 0], [], []>} : vector<17x8xf32>, vector<17x8xf32>, vector<17x17xf32> -> vector<17x17xf32>
    %cst_65 = arith.constant 0.353553385 : f32
    %97 = vector.broadcast %cst_65 : f32 to vector<17x17xf32>
    %98 = arith.mulf %96, %97 : vector<17x17xf32>
    %cst_66 = arith.constant dense<0xFF800000> : vector<17xf32>
    %99 = vector.multi_reduction <maximumf>, %98, %cst_66 [1] : vector<17x17xf32> to vector<17xf32>
    %100 = vector.shape_cast %99 : vector<17xf32> to vector<17x1xf32>
    %101 = vector.broadcast %100 : vector<17x1xf32> to vector<17x17xf32>
    %102 = arith.subf %98, %101 : vector<17x17xf32>
    %103 = math.exp %102 : vector<17x17xf32>
    %cst_67 = arith.constant dense<0.000000e+00> : vector<17xf32>
    %104 = vector.multi_reduction <add>, %103, %cst_67 [1] : vector<17x17xf32> to vector<17xf32>
    %105 = vector.shape_cast %104 : vector<17xf32> to vector<17x1xf32>
    %106 = tpu.reciprocal %105 {approx = true} : vector<17x1xf32> -> vector<17x1xf32>
    %107 = vector.broadcast %106 : vector<17x1xf32> to vector<17x17xf32>
    %108 = arith.mulf %103, %107 : vector<17x17xf32>
    %cst_68 = arith.constant dense<0.000000e+00> : vector<17x8xf32>
    %109 = tpu.matmul %108, %95, %cst_68 {dimension_numbers = #tpu.dot_dimension_numbers<[1], [0], [0], [1], [0, 0, 1, 1], [], []>} : vector<17x17xf32>, vector<17x8xf32>, vector<17x8xf32> -> vector<17x8xf32>
    %c2_69 = arith.constant 2 : index
    %c0_70 = arith.constant 0 : index
    %c0_71 = arith.constant 0 : index
    %110 = vector.load %arg7[%c2_69, %c0_70, %c0_71] : memref<8x8x32xf32, #tpu.memory_space<vmem>>, vector<1x8x32xf32>
    %111 = vector.shape_cast %110 : vector<1x8x32xf32> to vector<8x32xf32>
    %cst_72 = arith.constant dense<0.000000e+00> : vector<17x32xf32>
    %112 = tpu.matmul %109, %111, %cst_72 {dimension_numbers = #tpu.dot_dimension_numbers<[1], [0], [0], [1], [0, 0, 1, 1], [], []>} : vector<17x8xf32>, vector<8x32xf32>, vector<17x32xf32> -> vector<17x32xf32>
    %113 = arith.addf %86, %112 : vector<17x32xf32>
    %c3 = arith.constant 3 : index
    %c0_73 = arith.constant 0 : index
    %c0_74 = arith.constant 0 : index
    %114 = vector.load %arg6[%c3, %c0_73, %c0_74] : memref<24x32x8xf32, #tpu.memory_space<vmem>>, vector<1x32x8xf32>
    %115 = vector.shape_cast %114 : vector<1x32x8xf32> to vector<32x8xf32>
    %cst_75 = arith.constant dense<0.000000e+00> : vector<17x8xf32>
    %116 = tpu.matmul %31, %115, %cst_75 {dimension_numbers = #tpu.dot_dimension_numbers<[1], [0], [0], [1], [0, 0, 1, 1], [], []>} : vector<17x32xf32>, vector<32x8xf32>, vector<17x8xf32> -> vector<17x8xf32>
    %c7 = arith.constant 7 : index
    %c0_76 = arith.constant 0 : index
    %c0_77 = arith.constant 0 : index
    %117 = vector.load %arg6[%c7, %c0_76, %c0_77] : memref<24x32x8xf32, #tpu.memory_space<vmem>>, vector<1x32x8xf32>
    %118 = vector.shape_cast %117 : vector<1x32x8xf32> to vector<32x8xf32>
    %cst_78 = arith.constant dense<0.000000e+00> : vector<17x8xf32>
    %119 = tpu.matmul %31, %118, %cst_78 {dimension_numbers = #tpu.dot_dimension_numbers<[1], [0], [0], [1], [0, 0, 1, 1], [], []>} : vector<17x32xf32>, vector<32x8xf32>, vector<17x8xf32> -> vector<17x8xf32>
    %c11 = arith.constant 11 : index
    %c0_79 = arith.constant 0 : index
    %c0_80 = arith.constant 0 : index
    %120 = vector.load %arg6[%c11, %c0_79, %c0_80] : memref<24x32x8xf32, #tpu.memory_space<vmem>>, vector<1x32x8xf32>
    %121 = vector.shape_cast %120 : vector<1x32x8xf32> to vector<32x8xf32>
    %cst_81 = arith.constant dense<0.000000e+00> : vector<17x8xf32>
    %122 = tpu.matmul %31, %121, %cst_81 {dimension_numbers = #tpu.dot_dimension_numbers<[1], [0], [0], [1], [0, 0, 1, 1], [], []>} : vector<17x32xf32>, vector<32x8xf32>, vector<17x8xf32> -> vector<17x8xf32>
    %cst_82 = arith.constant dense<0.000000e+00> : vector<17x17xf32>
    %123 = tpu.matmul %116, %119, %cst_82 {dimension_numbers = #tpu.dot_dimension_numbers<[1], [1], [0], [0], [0, 0, 1, 0], [], []>} : vector<17x8xf32>, vector<17x8xf32>, vector<17x17xf32> -> vector<17x17xf32>
    %cst_83 = arith.constant 0.353553385 : f32
    %124 = vector.broadcast %cst_83 : f32 to vector<17x17xf32>
    %125 = arith.mulf %123, %124 : vector<17x17xf32>
    %cst_84 = arith.constant dense<0xFF800000> : vector<17xf32>
    %126 = vector.multi_reduction <maximumf>, %125, %cst_84 [1] : vector<17x17xf32> to vector<17xf32>
    %127 = vector.shape_cast %126 : vector<17xf32> to vector<17x1xf32>
    %128 = vector.broadcast %127 : vector<17x1xf32> to vector<17x17xf32>
    %129 = arith.subf %125, %128 : vector<17x17xf32>
    %130 = math.exp %129 : vector<17x17xf32>
    %cst_85 = arith.constant dense<0.000000e+00> : vector<17xf32>
    %131 = vector.multi_reduction <add>, %130, %cst_85 [1] : vector<17x17xf32> to vector<17xf32>
    %132 = vector.shape_cast %131 : vector<17xf32> to vector<17x1xf32>
    %133 = tpu.reciprocal %132 {approx = true} : vector<17x1xf32> -> vector<17x1xf32>
    %134 = vector.broadcast %133 : vector<17x1xf32> to vector<17x17xf32>
    %135 = arith.mulf %130, %134 : vector<17x17xf32>
    %cst_86 = arith.constant dense<0.000000e+00> : vector<17x8xf32>
    %136 = tpu.matmul %135, %122, %cst_86 {dimension_numbers = #tpu.dot_dimension_numbers<[1], [0], [0], [1], [0, 0, 1, 1], [], []>} : vector<17x17xf32>, vector<17x8xf32>, vector<17x8xf32> -> vector<17x8xf32>
    %c3_87 = arith.constant 3 : index
    %c0_88 = arith.constant 0 : index
    %c0_89 = arith.constant 0 : index
    %137 = vector.load %arg7[%c3_87, %c0_88, %c0_89] : memref<8x8x32xf32, #tpu.memory_space<vmem>>, vector<1x8x32xf32>
    %138 = vector.shape_cast %137 : vector<1x8x32xf32> to vector<8x32xf32>
    %cst_90 = arith.constant dense<0.000000e+00> : vector<17x32xf32>
    %139 = tpu.matmul %136, %138, %cst_90 {dimension_numbers = #tpu.dot_dimension_numbers<[1], [0], [0], [1], [0, 0, 1, 1], [], []>} : vector<17x8xf32>, vector<8x32xf32>, vector<17x32xf32> -> vector<17x32xf32>
    %140 = arith.addf %113, %139 : vector<17x32xf32>
    %141 = arith.addf %5, %140 : vector<17x32xf32>
    %c0_91 = arith.constant 0 : index
    %c0_92 = arith.constant 0 : index
    %c0_93 = arith.constant 0 : index
    %142 = vector.load %arg8[%c0_91, %c0_92, %c0_93] : memref<2x1x32xf32, #tpu.memory_space<vmem>>, vector<1x1x32xf32>
    %143 = vector.shape_cast %142 : vector<1x1x32xf32> to vector<1x32xf32>
    %144 = vector.broadcast %143 : vector<1x32xf32> to vector<17x32xf32>
    %145 = arith.addf %141, %144 : vector<17x32xf32>
    %c0_94 = arith.constant 0 : index
    %c0_95 = arith.constant 0 : index
    %c0_96 = arith.constant 0 : index
    %146 = vector.load %arg9[%c0_94, %c0_95, %c0_96] : memref<2x1x32xf32, #tpu.memory_space<vmem>>, vector<1x1x32xf32>
    %147 = vector.shape_cast %146 : vector<1x1x32xf32> to vector<1x32xf32>
    %c0_97 = arith.constant 0 : index
    %c0_98 = arith.constant 0 : index
    %c0_99 = arith.constant 0 : index
    %148 = vector.load %arg10[%c0_97, %c0_98, %c0_99] : memref<2x1x32xf32, #tpu.memory_space<vmem>>, vector<1x1x32xf32>
    %149 = vector.shape_cast %148 : vector<1x1x32xf32> to vector<1x32xf32>
    %cst_100 = arith.constant dense<0.000000e+00> : vector<17xf32>
    %150 = vector.multi_reduction <add>, %145, %cst_100 [1] : vector<17x32xf32> to vector<17xf32>
    %151 = vector.shape_cast %150 : vector<17xf32> to vector<17x1xf32>
    %cst_101 = arith.constant 3.200000e+01 : f32
    %152 = vector.broadcast %cst_101 : f32 to vector<17x1xf32>
    %153 = arith.divf %151, %152 : vector<17x1xf32>
    %154 = vector.broadcast %153 : vector<17x1xf32> to vector<17x32xf32>
    %155 = arith.subf %145, %154 : vector<17x32xf32>
    %156 = arith.mulf %155, %155 : vector<17x32xf32>
    %cst_102 = arith.constant dense<0.000000e+00> : vector<17xf32>
    %157 = vector.multi_reduction <add>, %156, %cst_102 [1] : vector<17x32xf32> to vector<17xf32>
    %158 = vector.shape_cast %157 : vector<17xf32> to vector<17x1xf32>
    %cst_103 = arith.constant 3.200000e+01 : f32
    %159 = vector.broadcast %cst_103 : f32 to vector<17x1xf32>
    %160 = arith.divf %158, %159 : vector<17x1xf32>
    %161 = vector.broadcast %153 : vector<17x1xf32> to vector<17x32xf32>
    %162 = arith.subf %145, %161 : vector<17x32xf32>
    %cst_104 = arith.constant 9.99999974E-6 : f32
    %163 = vector.broadcast %cst_104 : f32 to vector<17x1xf32>
    %164 = arith.addf %160, %163 : vector<17x1xf32>
    %165 = math.rsqrt %164 : vector<17x1xf32>
    %166 = vector.broadcast %165 : vector<17x1xf32> to vector<17x32xf32>
    %167 = arith.mulf %162, %166 : vector<17x32xf32>
    %168 = vector.broadcast %147 : vector<1x32xf32> to vector<17x32xf32>
    %169 = arith.mulf %167, %168 : vector<17x32xf32>
    %170 = vector.broadcast %149 : vector<1x32xf32> to vector<17x32xf32>
    %171 = arith.addf %169, %170 : vector<17x32xf32>
    %c0_105 = arith.constant 0 : index
    %c0_106 = arith.constant 0 : index
    %c0_107 = arith.constant 0 : index
    %172 = vector.load %arg11[%c0_105, %c0_106, %c0_107] : memref<2x32x128xf32, #tpu.memory_space<vmem>>, vector<1x32x128xf32>
    %173 = vector.shape_cast %172 : vector<1x32x128xf32> to vector<32x128xf32>
    %cst_108 = arith.constant dense<0.000000e+00> : vector<17x128xf32>
    %174 = tpu.matmul %171, %173, %cst_108 {dimension_numbers = #tpu.dot_dimension_numbers<[1], [0], [0], [1], [0, 0, 1, 1], [], []>} : vector<17x32xf32>, vector<32x128xf32>, vector<17x128xf32> -> vector<17x128xf32>
    %c0_109 = arith.constant 0 : index
    %c0_110 = arith.constant 0 : index
    %c0_111 = arith.constant 0 : index
    %175 = vector.load %arg12[%c0_109, %c0_110, %c0_111] : memref<2x1x128xf32, #tpu.memory_space<vmem>>, vector<1x1x128xf32>
    %176 = vector.shape_cast %175 : vector<1x1x128xf32> to vector<1x128xf32>
    %177 = vector.broadcast %176 : vector<1x128xf32> to vector<17x128xf32>
    %178 = arith.addf %174, %177 : vector<17x128xf32>
    %cst_112 = arith.constant 5.000000e-01 : f32
    %179 = vector.broadcast %cst_112 : f32 to vector<17x128xf32>
    %180 = arith.mulf %179, %178 : vector<17x128xf32>
    %cst_113 = arith.constant 4.471500e-02 : f32
    %181 = vector.broadcast %cst_113 : f32 to vector<17x128xf32>
    %182 = arith.mulf %181, %178 : vector<17x128xf32>
    %183 = arith.mulf %182, %178 : vector<17x128xf32>
    %184 = arith.mulf %183, %178 : vector<17x128xf32>
    %185 = arith.addf %178, %184 : vector<17x128xf32>
    %cst_114 = arith.constant 0.797884583 : f32
    %186 = vector.broadcast %cst_114 : f32 to vector<17x128xf32>
    %187 = arith.mulf %186, %185 : vector<17x128xf32>
    %188 = math.tanh %187 : vector<17x128xf32>
    %cst_115 = arith.constant 1.000000e+00 : f32
    %189 = vector.broadcast %cst_115 : f32 to vector<17x128xf32>
    %190 = arith.addf %189, %188 : vector<17x128xf32>
    %191 = arith.mulf %180, %190 : vector<17x128xf32>
    %c0_116 = arith.constant 0 : index
    %c0_117 = arith.constant 0 : index
    %c0_118 = arith.constant 0 : index
    %192 = vector.load %arg13[%c0_116, %c0_117, %c0_118] : memref<2x128x32xf32, #tpu.memory_space<vmem>>, vector<1x128x32xf32>
    %193 = vector.shape_cast %192 : vector<1x128x32xf32> to vector<128x32xf32>
    %cst_119 = arith.constant dense<0.000000e+00> : vector<17x32xf32>
    %194 = tpu.matmul %191, %193, %cst_119 {dimension_numbers = #tpu.dot_dimension_numbers<[1], [0], [0], [1], [0, 0, 1, 1], [], []>} : vector<17x128xf32>, vector<128x32xf32>, vector<17x32xf32> -> vector<17x32xf32>
    %195 = arith.addf %145, %194 : vector<17x32xf32>
    %c0_120 = arith.constant 0 : index
    %c0_121 = arith.constant 0 : index
    %c0_122 = arith.constant 0 : index
    %196 = vector.load %arg14[%c0_120, %c0_121, %c0_122] : memref<2x1x32xf32, #tpu.memory_space<vmem>>, vector<1x1x32xf32>
    %197 = vector.shape_cast %196 : vector<1x1x32xf32> to vector<1x32xf32>
    %198 = vector.broadcast %197 : vector<1x32xf32> to vector<17x32xf32>
    %199 = arith.addf %195, %198 : vector<17x32xf32>
    %c1_123 = arith.constant 1 : index
    %c0_124 = arith.constant 0 : index
    %c0_125 = arith.constant 0 : index
    %200 = vector.load %arg4[%c1_123, %c0_124, %c0_125] : memref<2x1x32xf32, #tpu.memory_space<vmem>>, vector<1x1x32xf32>
    %201 = vector.shape_cast %200 : vector<1x1x32xf32> to vector<1x32xf32>
    %c1_126 = arith.constant 1 : index
    %c0_127 = arith.constant 0 : index
    %c0_128 = arith.constant 0 : index
    %202 = vector.load %arg5[%c1_126, %c0_127, %c0_128] : memref<2x1x32xf32, #tpu.memory_space<vmem>>, vector<1x1x32xf32>
    %203 = vector.shape_cast %202 : vector<1x1x32xf32> to vector<1x32xf32>
    %cst_129 = arith.constant dense<0.000000e+00> : vector<17xf32>
    %204 = vector.multi_reduction <add>, %199, %cst_129 [1] : vector<17x32xf32> to vector<17xf32>
    %205 = vector.shape_cast %204 : vector<17xf32> to vector<17x1xf32>
    %cst_130 = arith.constant 3.200000e+01 : f32
    %206 = vector.broadcast %cst_130 : f32 to vector<17x1xf32>
    %207 = arith.divf %205, %206 : vector<17x1xf32>
    %208 = vector.broadcast %207 : vector<17x1xf32> to vector<17x32xf32>
    %209 = arith.subf %199, %208 : vector<17x32xf32>
    %210 = arith.mulf %209, %209 : vector<17x32xf32>
    %cst_131 = arith.constant dense<0.000000e+00> : vector<17xf32>
    %211 = vector.multi_reduction <add>, %210, %cst_131 [1] : vector<17x32xf32> to vector<17xf32>
    %212 = vector.shape_cast %211 : vector<17xf32> to vector<17x1xf32>
    %cst_132 = arith.constant 3.200000e+01 : f32
    %213 = vector.broadcast %cst_132 : f32 to vector<17x1xf32>
    %214 = arith.divf %212, %213 : vector<17x1xf32>
    %215 = vector.broadcast %207 : vector<17x1xf32> to vector<17x32xf32>
    %216 = arith.subf %199, %215 : vector<17x32xf32>
    %cst_133 = arith.constant 9.99999974E-6 : f32
    %217 = vector.broadcast %cst_133 : f32 to vector<17x1xf32>
    %218 = arith.addf %214, %217 : vector<17x1xf32>
    %219 = math.rsqrt %218 : vector<17x1xf32>
    %220 = vector.broadcast %219 : vector<17x1xf32> to vector<17x32xf32>
    %221 = arith.mulf %216, %220 : vector<17x32xf32>
    %222 = vector.broadcast %201 : vector<1x32xf32> to vector<17x32xf32>
    %223 = arith.mulf %221, %222 : vector<17x32xf32>
    %224 = vector.broadcast %203 : vector<1x32xf32> to vector<17x32xf32>
    %225 = arith.addf %223, %224 : vector<17x32xf32>
    %cst_134 = arith.constant 0.000000e+00 : f32
    %226 = vector.broadcast %cst_134 : f32 to vector<17x32xf32>
    %c12 = arith.constant 12 : index
    %c0_135 = arith.constant 0 : index
    %c0_136 = arith.constant 0 : index
    %227 = vector.load %arg6[%c12, %c0_135, %c0_136] : memref<24x32x8xf32, #tpu.memory_space<vmem>>, vector<1x32x8xf32>
    %228 = vector.shape_cast %227 : vector<1x32x8xf32> to vector<32x8xf32>
    %cst_137 = arith.constant dense<0.000000e+00> : vector<17x8xf32>
    %229 = tpu.matmul %225, %228, %cst_137 {dimension_numbers = #tpu.dot_dimension_numbers<[1], [0], [0], [1], [0, 0, 1, 1], [], []>} : vector<17x32xf32>, vector<32x8xf32>, vector<17x8xf32> -> vector<17x8xf32>
    %c16 = arith.constant 16 : index
    %c0_138 = arith.constant 0 : index
    %c0_139 = arith.constant 0 : index
    %230 = vector.load %arg6[%c16, %c0_138, %c0_139] : memref<24x32x8xf32, #tpu.memory_space<vmem>>, vector<1x32x8xf32>
    %231 = vector.shape_cast %230 : vector<1x32x8xf32> to vector<32x8xf32>
    %cst_140 = arith.constant dense<0.000000e+00> : vector<17x8xf32>
    %232 = tpu.matmul %225, %231, %cst_140 {dimension_numbers = #tpu.dot_dimension_numbers<[1], [0], [0], [1], [0, 0, 1, 1], [], []>} : vector<17x32xf32>, vector<32x8xf32>, vector<17x8xf32> -> vector<17x8xf32>
    %c20 = arith.constant 20 : index
    %c0_141 = arith.constant 0 : index
    %c0_142 = arith.constant 0 : index
    %233 = vector.load %arg6[%c20, %c0_141, %c0_142] : memref<24x32x8xf32, #tpu.memory_space<vmem>>, vector<1x32x8xf32>
    %234 = vector.shape_cast %233 : vector<1x32x8xf32> to vector<32x8xf32>
    %cst_143 = arith.constant dense<0.000000e+00> : vector<17x8xf32>
    %235 = tpu.matmul %225, %234, %cst_143 {dimension_numbers = #tpu.dot_dimension_numbers<[1], [0], [0], [1], [0, 0, 1, 1], [], []>} : vector<17x32xf32>, vector<32x8xf32>, vector<17x8xf32> -> vector<17x8xf32>
    %cst_144 = arith.constant dense<0.000000e+00> : vector<17x17xf32>
    %236 = tpu.matmul %229, %232, %cst_144 {dimension_numbers = #tpu.dot_dimension_numbers<[1], [1], [0], [0], [0, 0, 1, 0], [], []>} : vector<17x8xf32>, vector<17x8xf32>, vector<17x17xf32> -> vector<17x17xf32>
    %cst_145 = arith.constant 0.353553385 : f32
    %237 = vector.broadcast %cst_145 : f32 to vector<17x17xf32>
    %238 = arith.mulf %236, %237 : vector<17x17xf32>
    %cst_146 = arith.constant dense<0xFF800000> : vector<17xf32>
    %239 = vector.multi_reduction <maximumf>, %238, %cst_146 [1] : vector<17x17xf32> to vector<17xf32>
    %240 = vector.shape_cast %239 : vector<17xf32> to vector<17x1xf32>
    %241 = vector.broadcast %240 : vector<17x1xf32> to vector<17x17xf32>
    %242 = arith.subf %238, %241 : vector<17x17xf32>
    %243 = math.exp %242 : vector<17x17xf32>
    %cst_147 = arith.constant dense<0.000000e+00> : vector<17xf32>
    %244 = vector.multi_reduction <add>, %243, %cst_147 [1] : vector<17x17xf32> to vector<17xf32>
    %245 = vector.shape_cast %244 : vector<17xf32> to vector<17x1xf32>
    %246 = tpu.reciprocal %245 {approx = true} : vector<17x1xf32> -> vector<17x1xf32>
    %247 = vector.broadcast %246 : vector<17x1xf32> to vector<17x17xf32>
    %248 = arith.mulf %243, %247 : vector<17x17xf32>
    %cst_148 = arith.constant dense<0.000000e+00> : vector<17x8xf32>
    %249 = tpu.matmul %248, %235, %cst_148 {dimension_numbers = #tpu.dot_dimension_numbers<[1], [0], [0], [1], [0, 0, 1, 1], [], []>} : vector<17x17xf32>, vector<17x8xf32>, vector<17x8xf32> -> vector<17x8xf32>
    %c4_149 = arith.constant 4 : index
    %c0_150 = arith.constant 0 : index
    %c0_151 = arith.constant 0 : index
    %250 = vector.load %arg7[%c4_149, %c0_150, %c0_151] : memref<8x8x32xf32, #tpu.memory_space<vmem>>, vector<1x8x32xf32>
    %251 = vector.shape_cast %250 : vector<1x8x32xf32> to vector<8x32xf32>
    %cst_152 = arith.constant dense<0.000000e+00> : vector<17x32xf32>
    %252 = tpu.matmul %249, %251, %cst_152 {dimension_numbers = #tpu.dot_dimension_numbers<[1], [0], [0], [1], [0, 0, 1, 1], [], []>} : vector<17x8xf32>, vector<8x32xf32>, vector<17x32xf32> -> vector<17x32xf32>
    %253 = arith.addf %226, %252 : vector<17x32xf32>
    %c13 = arith.constant 13 : index
    %c0_153 = arith.constant 0 : index
    %c0_154 = arith.constant 0 : index
    %254 = vector.load %arg6[%c13, %c0_153, %c0_154] : memref<24x32x8xf32, #tpu.memory_space<vmem>>, vector<1x32x8xf32>
    %255 = vector.shape_cast %254 : vector<1x32x8xf32> to vector<32x8xf32>
    %cst_155 = arith.constant dense<0.000000e+00> : vector<17x8xf32>
    %256 = tpu.matmul %225, %255, %cst_155 {dimension_numbers = #tpu.dot_dimension_numbers<[1], [0], [0], [1], [0, 0, 1, 1], [], []>} : vector<17x32xf32>, vector<32x8xf32>, vector<17x8xf32> -> vector<17x8xf32>
    %c17 = arith.constant 17 : index
    %c0_156 = arith.constant 0 : index
    %c0_157 = arith.constant 0 : index
    %257 = vector.load %arg6[%c17, %c0_156, %c0_157] : memref<24x32x8xf32, #tpu.memory_space<vmem>>, vector<1x32x8xf32>
    %258 = vector.shape_cast %257 : vector<1x32x8xf32> to vector<32x8xf32>
    %cst_158 = arith.constant dense<0.000000e+00> : vector<17x8xf32>
    %259 = tpu.matmul %225, %258, %cst_158 {dimension_numbers = #tpu.dot_dimension_numbers<[1], [0], [0], [1], [0, 0, 1, 1], [], []>} : vector<17x32xf32>, vector<32x8xf32>, vector<17x8xf32> -> vector<17x8xf32>
    %c21 = arith.constant 21 : index
    %c0_159 = arith.constant 0 : index
    %c0_160 = arith.constant 0 : index
    %260 = vector.load %arg6[%c21, %c0_159, %c0_160] : memref<24x32x8xf32, #tpu.memory_space<vmem>>, vector<1x32x8xf32>
    %261 = vector.shape_cast %260 : vector<1x32x8xf32> to vector<32x8xf32>
    %cst_161 = arith.constant dense<0.000000e+00> : vector<17x8xf32>
    %262 = tpu.matmul %225, %261, %cst_161 {dimension_numbers = #tpu.dot_dimension_numbers<[1], [0], [0], [1], [0, 0, 1, 1], [], []>} : vector<17x32xf32>, vector<32x8xf32>, vector<17x8xf32> -> vector<17x8xf32>
    %cst_162 = arith.constant dense<0.000000e+00> : vector<17x17xf32>
    %263 = tpu.matmul %256, %259, %cst_162 {dimension_numbers = #tpu.dot_dimension_numbers<[1], [1], [0], [0], [0, 0, 1, 0], [], []>} : vector<17x8xf32>, vector<17x8xf32>, vector<17x17xf32> -> vector<17x17xf32>
    %cst_163 = arith.constant 0.353553385 : f32
    %264 = vector.broadcast %cst_163 : f32 to vector<17x17xf32>
    %265 = arith.mulf %263, %264 : vector<17x17xf32>
    %cst_164 = arith.constant dense<0xFF800000> : vector<17xf32>
    %266 = vector.multi_reduction <maximumf>, %265, %cst_164 [1] : vector<17x17xf32> to vector<17xf32>
    %267 = vector.shape_cast %266 : vector<17xf32> to vector<17x1xf32>
    %268 = vector.broadcast %267 : vector<17x1xf32> to vector<17x17xf32>
    %269 = arith.subf %265, %268 : vector<17x17xf32>
    %270 = math.exp %269 : vector<17x17xf32>
    %cst_165 = arith.constant dense<0.000000e+00> : vector<17xf32>
    %271 = vector.multi_reduction <add>, %270, %cst_165 [1] : vector<17x17xf32> to vector<17xf32>
    %272 = vector.shape_cast %271 : vector<17xf32> to vector<17x1xf32>
    %273 = tpu.reciprocal %272 {approx = true} : vector<17x1xf32> -> vector<17x1xf32>
    %274 = vector.broadcast %273 : vector<17x1xf32> to vector<17x17xf32>
    %275 = arith.mulf %270, %274 : vector<17x17xf32>
    %cst_166 = arith.constant dense<0.000000e+00> : vector<17x8xf32>
    %276 = tpu.matmul %275, %262, %cst_166 {dimension_numbers = #tpu.dot_dimension_numbers<[1], [0], [0], [1], [0, 0, 1, 1], [], []>} : vector<17x17xf32>, vector<17x8xf32>, vector<17x8xf32> -> vector<17x8xf32>
    %c5_167 = arith.constant 5 : index
    %c0_168 = arith.constant 0 : index
    %c0_169 = arith.constant 0 : index
    %277 = vector.load %arg7[%c5_167, %c0_168, %c0_169] : memref<8x8x32xf32, #tpu.memory_space<vmem>>, vector<1x8x32xf32>
    %278 = vector.shape_cast %277 : vector<1x8x32xf32> to vector<8x32xf32>
    %cst_170 = arith.constant dense<0.000000e+00> : vector<17x32xf32>
    %279 = tpu.matmul %276, %278, %cst_170 {dimension_numbers = #tpu.dot_dimension_numbers<[1], [0], [0], [1], [0, 0, 1, 1], [], []>} : vector<17x8xf32>, vector<8x32xf32>, vector<17x32xf32> -> vector<17x32xf32>
    %280 = arith.addf %253, %279 : vector<17x32xf32>
    %c14 = arith.constant 14 : index
    %c0_171 = arith.constant 0 : index
    %c0_172 = arith.constant 0 : index
    %281 = vector.load %arg6[%c14, %c0_171, %c0_172] : memref<24x32x8xf32, #tpu.memory_space<vmem>>, vector<1x32x8xf32>
    %282 = vector.shape_cast %281 : vector<1x32x8xf32> to vector<32x8xf32>
    %cst_173 = arith.constant dense<0.000000e+00> : vector<17x8xf32>
    %283 = tpu.matmul %225, %282, %cst_173 {dimension_numbers = #tpu.dot_dimension_numbers<[1], [0], [0], [1], [0, 0, 1, 1], [], []>} : vector<17x32xf32>, vector<32x8xf32>, vector<17x8xf32> -> vector<17x8xf32>
    %c18 = arith.constant 18 : index
    %c0_174 = arith.constant 0 : index
    %c0_175 = arith.constant 0 : index
    %284 = vector.load %arg6[%c18, %c0_174, %c0_175] : memref<24x32x8xf32, #tpu.memory_space<vmem>>, vector<1x32x8xf32>
    %285 = vector.shape_cast %284 : vector<1x32x8xf32> to vector<32x8xf32>
    %cst_176 = arith.constant dense<0.000000e+00> : vector<17x8xf32>
    %286 = tpu.matmul %225, %285, %cst_176 {dimension_numbers = #tpu.dot_dimension_numbers<[1], [0], [0], [1], [0, 0, 1, 1], [], []>} : vector<17x32xf32>, vector<32x8xf32>, vector<17x8xf32> -> vector<17x8xf32>
    %c22 = arith.constant 22 : index
    %c0_177 = arith.constant 0 : index
    %c0_178 = arith.constant 0 : index
    %287 = vector.load %arg6[%c22, %c0_177, %c0_178] : memref<24x32x8xf32, #tpu.memory_space<vmem>>, vector<1x32x8xf32>
    %288 = vector.shape_cast %287 : vector<1x32x8xf32> to vector<32x8xf32>
    %cst_179 = arith.constant dense<0.000000e+00> : vector<17x8xf32>
    %289 = tpu.matmul %225, %288, %cst_179 {dimension_numbers = #tpu.dot_dimension_numbers<[1], [0], [0], [1], [0, 0, 1, 1], [], []>} : vector<17x32xf32>, vector<32x8xf32>, vector<17x8xf32> -> vector<17x8xf32>
    %cst_180 = arith.constant dense<0.000000e+00> : vector<17x17xf32>
    %290 = tpu.matmul %283, %286, %cst_180 {dimension_numbers = #tpu.dot_dimension_numbers<[1], [1], [0], [0], [0, 0, 1, 0], [], []>} : vector<17x8xf32>, vector<17x8xf32>, vector<17x17xf32> -> vector<17x17xf32>
    %cst_181 = arith.constant 0.353553385 : f32
    %291 = vector.broadcast %cst_181 : f32 to vector<17x17xf32>
    %292 = arith.mulf %290, %291 : vector<17x17xf32>
    %cst_182 = arith.constant dense<0xFF800000> : vector<17xf32>
    %293 = vector.multi_reduction <maximumf>, %292, %cst_182 [1] : vector<17x17xf32> to vector<17xf32>
    %294 = vector.shape_cast %293 : vector<17xf32> to vector<17x1xf32>
    %295 = vector.broadcast %294 : vector<17x1xf32> to vector<17x17xf32>
    %296 = arith.subf %292, %295 : vector<17x17xf32>
    %297 = math.exp %296 : vector<17x17xf32>
    %cst_183 = arith.constant dense<0.000000e+00> : vector<17xf32>
    %298 = vector.multi_reduction <add>, %297, %cst_183 [1] : vector<17x17xf32> to vector<17xf32>
    %299 = vector.shape_cast %298 : vector<17xf32> to vector<17x1xf32>
    %300 = tpu.reciprocal %299 {approx = true} : vector<17x1xf32> -> vector<17x1xf32>
    %301 = vector.broadcast %300 : vector<17x1xf32> to vector<17x17xf32>
    %302 = arith.mulf %297, %301 : vector<17x17xf32>
    %cst_184 = arith.constant dense<0.000000e+00> : vector<17x8xf32>
    %303 = tpu.matmul %302, %289, %cst_184 {dimension_numbers = #tpu.dot_dimension_numbers<[1], [0], [0], [1], [0, 0, 1, 1], [], []>} : vector<17x17xf32>, vector<17x8xf32>, vector<17x8xf32> -> vector<17x8xf32>
    %c6_185 = arith.constant 6 : index
    %c0_186 = arith.constant 0 : index
    %c0_187 = arith.constant 0 : index
    %304 = vector.load %arg7[%c6_185, %c0_186, %c0_187] : memref<8x8x32xf32, #tpu.memory_space<vmem>>, vector<1x8x32xf32>
    %305 = vector.shape_cast %304 : vector<1x8x32xf32> to vector<8x32xf32>
    %cst_188 = arith.constant dense<0.000000e+00> : vector<17x32xf32>
    %306 = tpu.matmul %303, %305, %cst_188 {dimension_numbers = #tpu.dot_dimension_numbers<[1], [0], [0], [1], [0, 0, 1, 1], [], []>} : vector<17x8xf32>, vector<8x32xf32>, vector<17x32xf32> -> vector<17x32xf32>
    %307 = arith.addf %280, %306 : vector<17x32xf32>
    %c15 = arith.constant 15 : index
    %c0_189 = arith.constant 0 : index
    %c0_190 = arith.constant 0 : index
    %308 = vector.load %arg6[%c15, %c0_189, %c0_190] : memref<24x32x8xf32, #tpu.memory_space<vmem>>, vector<1x32x8xf32>
    %309 = vector.shape_cast %308 : vector<1x32x8xf32> to vector<32x8xf32>
    %cst_191 = arith.constant dense<0.000000e+00> : vector<17x8xf32>
    %310 = tpu.matmul %225, %309, %cst_191 {dimension_numbers = #tpu.dot_dimension_numbers<[1], [0], [0], [1], [0, 0, 1, 1], [], []>} : vector<17x32xf32>, vector<32x8xf32>, vector<17x8xf32> -> vector<17x8xf32>
    %c19 = arith.constant 19 : index
    %c0_192 = arith.constant 0 : index
    %c0_193 = arith.constant 0 : index
    %311 = vector.load %arg6[%c19, %c0_192, %c0_193] : memref<24x32x8xf32, #tpu.memory_space<vmem>>, vector<1x32x8xf32>
    %312 = vector.shape_cast %311 : vector<1x32x8xf32> to vector<32x8xf32>
    %cst_194 = arith.constant dense<0.000000e+00> : vector<17x8xf32>
    %313 = tpu.matmul %225, %312, %cst_194 {dimension_numbers = #tpu.dot_dimension_numbers<[1], [0], [0], [1], [0, 0, 1, 1], [], []>} : vector<17x32xf32>, vector<32x8xf32>, vector<17x8xf32> -> vector<17x8xf32>
    %c23 = arith.constant 23 : index
    %c0_195 = arith.constant 0 : index
    %c0_196 = arith.constant 0 : index
    %314 = vector.load %arg6[%c23, %c0_195, %c0_196] : memref<24x32x8xf32, #tpu.memory_space<vmem>>, vector<1x32x8xf32>
    %315 = vector.shape_cast %314 : vector<1x32x8xf32> to vector<32x8xf32>
    %cst_197 = arith.constant dense<0.000000e+00> : vector<17x8xf32>
    %316 = tpu.matmul %225, %315, %cst_197 {dimension_numbers = #tpu.dot_dimension_numbers<[1], [0], [0], [1], [0, 0, 1, 1], [], []>} : vector<17x32xf32>, vector<32x8xf32>, vector<17x8xf32> -> vector<17x8xf32>
    %cst_198 = arith.constant dense<0.000000e+00> : vector<17x17xf32>
    %317 = tpu.matmul %310, %313, %cst_198 {dimension_numbers = #tpu.dot_dimension_numbers<[1], [1], [0], [0], [0, 0, 1, 0], [], []>} : vector<17x8xf32>, vector<17x8xf32>, vector<17x17xf32> -> vector<17x17xf32>
    %cst_199 = arith.constant 0.353553385 : f32
    %318 = vector.broadcast %cst_199 : f32 to vector<17x17xf32>
    %319 = arith.mulf %317, %318 : vector<17x17xf32>
    %cst_200 = arith.constant dense<0xFF800000> : vector<17xf32>
    %320 = vector.multi_reduction <maximumf>, %319, %cst_200 [1] : vector<17x17xf32> to vector<17xf32>
    %321 = vector.shape_cast %320 : vector<17xf32> to vector<17x1xf32>
    %322 = vector.broadcast %321 : vector<17x1xf32> to vector<17x17xf32>
    %323 = arith.subf %319, %322 : vector<17x17xf32>
    %324 = math.exp %323 : vector<17x17xf32>
    %cst_201 = arith.constant dense<0.000000e+00> : vector<17xf32>
    %325 = vector.multi_reduction <add>, %324, %cst_201 [1] : vector<17x17xf32> to vector<17xf32>
    %326 = vector.shape_cast %325 : vector<17xf32> to vector<17x1xf32>
    %327 = tpu.reciprocal %326 {approx = true} : vector<17x1xf32> -> vector<17x1xf32>
    %328 = vector.broadcast %327 : vector<17x1xf32> to vector<17x17xf32>
    %329 = arith.mulf %324, %328 : vector<17x17xf32>
    %cst_202 = arith.constant dense<0.000000e+00> : vector<17x8xf32>
    %330 = tpu.matmul %329, %316, %cst_202 {dimension_numbers = #tpu.dot_dimension_numbers<[1], [0], [0], [1], [0, 0, 1, 1], [], []>} : vector<17x17xf32>, vector<17x8xf32>, vector<17x8xf32> -> vector<17x8xf32>
    %c7_203 = arith.constant 7 : index
    %c0_204 = arith.constant 0 : index
    %c0_205 = arith.constant 0 : index
    %331 = vector.load %arg7[%c7_203, %c0_204, %c0_205] : memref<8x8x32xf32, #tpu.memory_space<vmem>>, vector<1x8x32xf32>
    %332 = vector.shape_cast %331 : vector<1x8x32xf32> to vector<8x32xf32>
    %cst_206 = arith.constant dense<0.000000e+00> : vector<17x32xf32>
    %333 = tpu.matmul %330, %332, %cst_206 {dimension_numbers = #tpu.dot_dimension_numbers<[1], [0], [0], [1], [0, 0, 1, 1], [], []>} : vector<17x8xf32>, vector<8x32xf32>, vector<17x32xf32> -> vector<17x32xf32>
    %334 = arith.addf %307, %333 : vector<17x32xf32>
    %335 = arith.addf %199, %334 : vector<17x32xf32>
    %c1_207 = arith.constant 1 : index
    %c0_208 = arith.constant 0 : index
    %c0_209 = arith.constant 0 : index
    %336 = vector.load %arg8[%c1_207, %c0_208, %c0_209] : memref<2x1x32xf32, #tpu.memory_space<vmem>>, vector<1x1x32xf32>
    %337 = vector.shape_cast %336 : vector<1x1x32xf32> to vector<1x32xf32>
    %338 = vector.broadcast %337 : vector<1x32xf32> to vector<17x32xf32>
    %339 = arith.addf %335, %338 : vector<17x32xf32>
    %c1_210 = arith.constant 1 : index
    %c0_211 = arith.constant 0 : index
    %c0_212 = arith.constant 0 : index
    %340 = vector.load %arg9[%c1_210, %c0_211, %c0_212] : memref<2x1x32xf32, #tpu.memory_space<vmem>>, vector<1x1x32xf32>
    %341 = vector.shape_cast %340 : vector<1x1x32xf32> to vector<1x32xf32>
    %c1_213 = arith.constant 1 : index
    %c0_214 = arith.constant 0 : index
    %c0_215 = arith.constant 0 : index
    %342 = vector.load %arg10[%c1_213, %c0_214, %c0_215] : memref<2x1x32xf32, #tpu.memory_space<vmem>>, vector<1x1x32xf32>
    %343 = vector.shape_cast %342 : vector<1x1x32xf32> to vector<1x32xf32>
    %cst_216 = arith.constant dense<0.000000e+00> : vector<17xf32>
    %344 = vector.multi_reduction <add>, %339, %cst_216 [1] : vector<17x32xf32> to vector<17xf32>
    %345 = vector.shape_cast %344 : vector<17xf32> to vector<17x1xf32>
    %cst_217 = arith.constant 3.200000e+01 : f32
    %346 = vector.broadcast %cst_217 : f32 to vector<17x1xf32>
    %347 = arith.divf %345, %346 : vector<17x1xf32>
    %348 = vector.broadcast %347 : vector<17x1xf32> to vector<17x32xf32>
    %349 = arith.subf %339, %348 : vector<17x32xf32>
    %350 = arith.mulf %349, %349 : vector<17x32xf32>
    %cst_218 = arith.constant dense<0.000000e+00> : vector<17xf32>
    %351 = vector.multi_reduction <add>, %350, %cst_218 [1] : vector<17x32xf32> to vector<17xf32>
    %352 = vector.shape_cast %351 : vector<17xf32> to vector<17x1xf32>
    %cst_219 = arith.constant 3.200000e+01 : f32
    %353 = vector.broadcast %cst_219 : f32 to vector<17x1xf32>
    %354 = arith.divf %352, %353 : vector<17x1xf32>
    %355 = vector.broadcast %347 : vector<17x1xf32> to vector<17x32xf32>
    %356 = arith.subf %339, %355 : vector<17x32xf32>
    %cst_220 = arith.constant 9.99999974E-6 : f32
    %357 = vector.broadcast %cst_220 : f32 to vector<17x1xf32>
    %358 = arith.addf %354, %357 : vector<17x1xf32>
    %359 = math.rsqrt %358 : vector<17x1xf32>
    %360 = vector.broadcast %359 : vector<17x1xf32> to vector<17x32xf32>
    %361 = arith.mulf %356, %360 : vector<17x32xf32>
    %362 = vector.broadcast %341 : vector<1x32xf32> to vector<17x32xf32>
    %363 = arith.mulf %361, %362 : vector<17x32xf32>
    %364 = vector.broadcast %343 : vector<1x32xf32> to vector<17x32xf32>
    %365 = arith.addf %363, %364 : vector<17x32xf32>
    %c1_221 = arith.constant 1 : index
    %c0_222 = arith.constant 0 : index
    %c0_223 = arith.constant 0 : index
    %366 = vector.load %arg11[%c1_221, %c0_222, %c0_223] : memref<2x32x128xf32, #tpu.memory_space<vmem>>, vector<1x32x128xf32>
    %367 = vector.shape_cast %366 : vector<1x32x128xf32> to vector<32x128xf32>
    %cst_224 = arith.constant dense<0.000000e+00> : vector<17x128xf32>
    %368 = tpu.matmul %365, %367, %cst_224 {dimension_numbers = #tpu.dot_dimension_numbers<[1], [0], [0], [1], [0, 0, 1, 1], [], []>} : vector<17x32xf32>, vector<32x128xf32>, vector<17x128xf32> -> vector<17x128xf32>
    %c1_225 = arith.constant 1 : index
    %c0_226 = arith.constant 0 : index
    %c0_227 = arith.constant 0 : index
    %369 = vector.load %arg12[%c1_225, %c0_226, %c0_227] : memref<2x1x128xf32, #tpu.memory_space<vmem>>, vector<1x1x128xf32>
    %370 = vector.shape_cast %369 : vector<1x1x128xf32> to vector<1x128xf32>
    %371 = vector.broadcast %370 : vector<1x128xf32> to vector<17x128xf32>
    %372 = arith.addf %368, %371 : vector<17x128xf32>
    %cst_228 = arith.constant 5.000000e-01 : f32
    %373 = vector.broadcast %cst_228 : f32 to vector<17x128xf32>
    %374 = arith.mulf %373, %372 : vector<17x128xf32>
    %cst_229 = arith.constant 4.471500e-02 : f32
    %375 = vector.broadcast %cst_229 : f32 to vector<17x128xf32>
    %376 = arith.mulf %375, %372 : vector<17x128xf32>
    %377 = arith.mulf %376, %372 : vector<17x128xf32>
    %378 = arith.mulf %377, %372 : vector<17x128xf32>
    %379 = arith.addf %372, %378 : vector<17x128xf32>
    %cst_230 = arith.constant 0.797884583 : f32
    %380 = vector.broadcast %cst_230 : f32 to vector<17x128xf32>
    %381 = arith.mulf %380, %379 : vector<17x128xf32>
    %382 = math.tanh %381 : vector<17x128xf32>
    %cst_231 = arith.constant 1.000000e+00 : f32
    %383 = vector.broadcast %cst_231 : f32 to vector<17x128xf32>
    %384 = arith.addf %383, %382 : vector<17x128xf32>
    %385 = arith.mulf %374, %384 : vector<17x128xf32>
    %c1_232 = arith.constant 1 : index
    %c0_233 = arith.constant 0 : index
    %c0_234 = arith.constant 0 : index
    %386 = vector.load %arg13[%c1_232, %c0_233, %c0_234] : memref<2x128x32xf32, #tpu.memory_space<vmem>>, vector<1x128x32xf32>
    %387 = vector.shape_cast %386 : vector<1x128x32xf32> to vector<128x32xf32>
    %cst_235 = arith.constant dense<0.000000e+00> : vector<17x32xf32>
    %388 = tpu.matmul %385, %387, %cst_235 {dimension_numbers = #tpu.dot_dimension_numbers<[1], [0], [0], [1], [0, 0, 1, 1], [], []>} : vector<17x128xf32>, vector<128x32xf32>, vector<17x32xf32> -> vector<17x32xf32>
    %389 = arith.addf %339, %388 : vector<17x32xf32>
    %c1_236 = arith.constant 1 : index
    %c0_237 = arith.constant 0 : index
    %c0_238 = arith.constant 0 : index
    %390 = vector.load %arg14[%c1_236, %c0_237, %c0_238] : memref<2x1x32xf32, #tpu.memory_space<vmem>>, vector<1x1x32xf32>
    %391 = vector.shape_cast %390 : vector<1x1x32xf32> to vector<1x32xf32>
    %392 = vector.broadcast %391 : vector<1x32xf32> to vector<17x32xf32>
    %393 = arith.addf %389, %392 : vector<17x32xf32>
    %394 = vector.extract_strided_slice %393 {offsets = [0, 0], sizes = [1, 32], strides = [1, 1]} : vector<17x32xf32> to vector<1x32xf32>
    %c0_239 = arith.constant 0 : index
    %c0_240 = arith.constant 0 : index
    %395 = vector.load %arg15[%c0_239, %c0_240] : memref<1x32xf32, #tpu.memory_space<vmem>>, vector<1x32xf32>
    %c0_241 = arith.constant 0 : index
    %c0_242 = arith.constant 0 : index
    %396 = vector.load %arg16[%c0_241, %c0_242] : memref<1x32xf32, #tpu.memory_space<vmem>>, vector<1x32xf32>
    %cst_243 = arith.constant dense<0.000000e+00> : vector<1xf32>
    %397 = vector.multi_reduction <add>, %394, %cst_243 [1] : vector<1x32xf32> to vector<1xf32>
    %398 = vector.shape_cast %397 : vector<1xf32> to vector<1x1xf32>
    %cst_244 = arith.constant 3.200000e+01 : f32
    %399 = vector.broadcast %cst_244 : f32 to vector<1x1xf32>
    %400 = arith.divf %398, %399 : vector<1x1xf32>
    %401 = vector.broadcast %400 : vector<1x1xf32> to vector<1x32xf32>
    %402 = arith.subf %394, %401 : vector<1x32xf32>
    %403 = arith.mulf %402, %402 : vector<1x32xf32>
    %cst_245 = arith.constant dense<0.000000e+00> : vector<1xf32>
    %404 = vector.multi_reduction <add>, %403, %cst_245 [1] : vector<1x32xf32> to vector<1xf32>
    %405 = vector.shape_cast %404 : vector<1xf32> to vector<1x1xf32>
    %cst_246 = arith.constant 3.200000e+01 : f32
    %406 = vector.broadcast %cst_246 : f32 to vector<1x1xf32>
    %407 = arith.divf %405, %406 : vector<1x1xf32>
    %408 = vector.broadcast %400 : vector<1x1xf32> to vector<1x32xf32>
    %409 = arith.subf %394, %408 : vector<1x32xf32>
    %cst_247 = arith.constant 9.99999974E-6 : f32
    %410 = vector.broadcast %cst_247 : f32 to vector<1x1xf32>
    %411 = arith.addf %407, %410 : vector<1x1xf32>
    %412 = math.rsqrt %411 : vector<1x1xf32>
    %413 = vector.broadcast %412 : vector<1x1xf32> to vector<1x32xf32>
    %414 = arith.mulf %409, %413 : vector<1x32xf32>
    %415 = arith.mulf %414, %395 : vector<1x32xf32>
    %416 = arith.addf %415, %396 : vector<1x32xf32>
    %c0_248 = arith.constant 0 : index
    %c0_249 = arith.constant 0 : index
    %417 = vector.load %arg17[%c0_248, %c0_249] : memref<32x10xf32, #tpu.memory_space<vmem>>, vector<32x10xf32>
    %cst_250 = arith.constant dense<0.000000e+00> : vector<1x10xf32>
    %418 = tpu.matmul %416, %417, %cst_250 {dimension_numbers = #tpu.dot_dimension_numbers<[1], [0], [0], [1], [0, 0, 1, 1], [], []>} : vector<1x32xf32>, vector<32x10xf32>, vector<1x10xf32> -> vector<1x10xf32>
    %c0_251 = arith.constant 0 : index
    %c0_252 = arith.constant 0 : index
    %419 = vector.load %arg18[%c0_251, %c0_252] : memref<1x10xf32, #tpu.memory_space<vmem>>, vector<1x10xf32>
    %420 = arith.addf %418, %419 : vector<1x10xf32>
    %c0_253 = arith.constant 0 : index
    %c0_254 = arith.constant 0 : index
    %c0_255 = arith.constant 0 : index
    %421 = vector.load %arg19[%c0_253, %c0_254, %c0_255] : memref<1x1x10xf32, #tpu.memory_space<vmem>>, vector<1x1x10xf32>
    %422 = vector.shape_cast %421 : vector<1x1x10xf32> to vector<1x10xf32>
    %423 = vector.shape_cast %420 : vector<1x10xf32> to vector<1x1x10xf32>
    tpu.vector_store %arg19[%c0_253, %c0_254, %c0_255], %423 {strides = array<i32>} : memref<1x1x10xf32, #tpu.memory_space<vmem>>, vector<1x1x10xf32>,
    return
  }
  func.func @transform_0(%arg0: i32) -> (i32, i32, i32) {
    %c0_i32 = arith.constant 0 : i32
    %c0_i32_0 = arith.constant 0 : i32
    %c0_i32_1 = arith.constant 0 : i32
    return %arg0, %c0_i32, %c0_i32_0 : i32, i32, i32
  }
  func.func @transform_1(%arg0: i32) -> (i32, i32) {
    %c0_i32 = arith.constant 0 : i32
    %c0_i32_0 = arith.constant 0 : i32
    %c0_i32_1 = arith.constant 0 : i32
    return %c0_i32, %c0_i32_0 : i32, i32
  }
  func.func @transform_2(%arg0: i32) -> (i32, i32) {
    %c0_i32 = arith.constant 0 : i32
    %c0_i32_0 = arith.constant 0 : i32
    %c0_i32_1 = arith.constant 0 : i32
    return %c0_i32, %c0_i32_0 : i32, i32
  }
  func.func @transform_3(%arg0: i32) -> (i32, i32, i32) {
    %c0_i32 = arith.constant 0 : i32
    %c0_i32_0 = arith.constant 0 : i32
    %c0_i32_1 = arith.constant 0 : i32
    %c0_i32_2 = arith.constant 0 : i32
    return %c0_i32, %c0_i32_0, %c0_i32_1 : i32, i32, i32
  }
  func.func @transform_4(%arg0: i32) -> (i32, i32, i32) {
    %c0_i32 = arith.constant 0 : i32
    %c0_i32_0 = arith.constant 0 : i32
    %c0_i32_1 = arith.constant 0 : i32
    %c0_i32_2 = arith.constant 0 : i32
    return %c0_i32, %c0_i32_0, %c0_i32_1 : i32, i32, i32
  }
  func.func @transform_5(%arg0: i32) -> (i32, i32, i32) {
    %c0_i32 = arith.constant 0 : i32
    %c0_i32_0 = arith.constant 0 : i32
    %c0_i32_1 = arith.constant 0 : i32
    %c0_i32_2 = arith.constant 0 : i32
    return %c0_i32, %c0_i32_0, %c0_i32_1 : i32, i32, i32
  }
  func.func @transform_6(%arg0: i32) -> (i32, i32, i32) {
    %c0_i32 = arith.constant 0 : i32
    %c0_i32_0 = arith.constant 0 : i32
    %c0_i32_1 = arith.constant 0 : i32
    %c0_i32_2 = arith.constant 0 : i32
    return %c0_i32, %c0_i32_0, %c0_i32_1 : i32, i32, i32
  }
  func.func @transform_7(%arg0: i32) -> (i32, i32, i32) {
    %c0_i32 = arith.constant 0 : i32
    %c0_i32_0 = arith.constant 0 : i32
    %c0_i32_1 = arith.constant 0 : i32
    %c0_i32_2 = arith.constant 0 : i32
    return %c0_i32, %c0_i32_0, %c0_i32_1 : i32, i32, i32
  }
  func.func @transform_8(%arg0: i32) -> (i32, i32, i32) {
    %c0_i32 = arith.constant 0 : i32
    %c0_i32_0 = arith.constant 0 : i32
    %c0_i32_1 = arith.constant 0 : i32
    %c0_i32_2 = arith.constant 0 : i32
    return %c0_i32, %c0_i32_0, %c0_i32_1 : i32, i32, i32
  }
  func.func @transform_9(%arg0: i32) -> (i32, i32, i32) {
    %c0_i32 = arith.constant 0 : i32
    %c0_i32_0 = arith.constant 0 : i32
    %c0_i32_1 = arith.constant 0 : i32
    %c0_i32_2 = arith.constant 0 : i32
    return %c0_i32, %c0_i32_0, %c0_i32_1 : i32, i32, i32
  }
  func.func @transform_10(%arg0: i32) -> (i32, i32, i32) {
    %c0_i32 = arith.constant 0 : i32
    %c0_i32_0 = arith.constant 0 : i32
    %c0_i32_1 = arith.constant 0 : i32
    %c0_i32_2 = arith.constant 0 : i32
    return %c0_i32, %c0_i32_0, %c0_i32_1 : i32, i32, i32
  }
  func.func @transform_11(%arg0: i32) -> (i32, i32, i32) {
    %c0_i32 = arith.constant 0 : i32
    %c0_i32_0 = arith.constant 0 : i32
    %c0_i32_1 = arith.constant 0 : i32
    %c0_i32_2 = arith.constant 0 : i32
    return %c0_i32, %c0_i32_0, %c0_i32_1 : i32, i32, i32
  }
  func.func @transform_12(%arg0: i32) -> (i32, i32, i32) {
    %c0_i32 = arith.constant 0 : i32
    %c0_i32_0 = arith.constant 0 : i32
    %c0_i32_1 = arith.constant 0 : i32
    %c0_i32_2 = arith.constant 0 : i32
    return %c0_i32, %c0_i32_0, %c0_i32_1 : i32, i32, i32
  }
  func.func @transform_13(%arg0: i32) -> (i32, i32, i32) {
    %c0_i32 = arith.constant 0 : i32
    %c0_i32_0 = arith.constant 0 : i32
    %c0_i32_1 = arith.constant 0 : i32
    %c0_i32_2 = arith.constant 0 : i32
    return %c0_i32, %c0_i32_0, %c0_i32_1 : i32, i32, i32
  }
  func.func @transform_14(%arg0: i32) -> (i32, i32) {
    %c0_i32 = arith.constant 0 : i32
    %c0_i32_0 = arith.constant 0 : i32
    %c0_i32_1 = arith.constant 0 : i32
    return %c0_i32, %c0_i32_0 : i32, i32
  }
  func.func @transform_15(%arg0: i32) -> (i32, i32) {
    %c0_i32 = arith.constant 0 : i32
    %c0_i32_0 = arith.constant 0 : i32
    %c0_i32_1 = arith.constant 0 : i32
    return %c0_i32, %c0_i32_0 : i32, i32
  }
  func.func @transform_16(%arg0: i32) -> (i32, i32) {
    %c0_i32 = arith.constant 0 : i32
    %c0_i32_0 = arith.constant 0 : i32
    %c0_i32_1 = arith.constant 0 : i32
    return %c0_i32, %c0_i32_0 : i32, i32
  }
  func.func @transform_17(%arg0: i32) -> (i32, i32) {
    %c0_i32 = arith.constant 0 : i32
    %c0_i32_0 = arith.constant 0 : i32
    %c0_i32_1 = arith.constant 0 : i32
    return %c0_i32, %c0_i32_0 : i32, i32
  }
  func.func @transform_18(%arg0: i32) -> (i32, i32, i32) {
    %c0_i32 = arith.constant 0 : i32
    %c0_i32_0 = arith.constant 0 : i32
    %c0_i32_1 = arith.constant 0 : i32
    return %arg0, %c0_i32, %c0_i32_0 : i32, i32, i32
  }
}

</mosaic_0001>

<bundles_post_ra>
// kernel: vit_forward.1
= control target key start
LH: loop header
LB: loop body
LE: loop exit
PB: predicated region body
PF: predicated region fallthrough
CT: control target
= control target key end

     0   :  { %s9907_s0 = inlined_call_operand.vmem [shape: f32[2,17,48], index: 0, kind: input, shape index: {}]   ;;  %s9908_s1 = inlined_call_operand.vmem [shape: f32[48,32], index: 1, kind: input, shape index: {}]   ;;  %s9909_s2 = inlined_call_operand.vmem [shape: f32[17,32], index: 2, kind: input, shape index: {}]   ;;  %s9910_s3 = inlined_call_operand.vmem [shape: f32[2,1,32], index: 3, kind: input, shape index: {}]   ;;  %s9911_s4 = inlined_call_operand.vmem [shape: f32[2,1,32], index: 4, kind: input, shape index: {}]   ;;  %s9912_s5 = inlined_call_operand.vmem [shape: f32[24,32,8], index: 5, kind: input, shape index: {}]   ;;  %s9913_s6 = inlined_call_operand.vmem [shape: f32[8,8,32], index: 6, kind: input, shape index: {}]   ;;  %s9914_s7 = inlined_call_operand.vmem [shape: f32[2,1,32], index: 7, kind: input, shape index: {}]   ;;  %s9915_s8 = inlined_call_operand.vmem [shape: f32[2,1,32], index: 8, kind: input, shape index: {}]   ;;  %s9916_s9 = inlined_call_operand.vmem [shape: f32[2,1,32], index: 9, kind: input, shape index: {}]   ;;  %s9917_s10 = inlined_call_operand.vmem [shape: f32[2,32,128], index: 10, kind: input, shape index: {}]   ;;  %s9918_s11 = inlined_call_operand.vmem [shape: f32[2,1,128], index: 11, kind: input, shape index: {}]   ;;  %s9919_s12 = inlined_call_operand.vmem [shape: f32[2,128,32], index: 12, kind: input, shape index: {}]   ;;  %s9920_s13 = inlined_call_operand.vmem [shape: f32[2,1,32], index: 13, kind: input, shape index: {}]   ;;  %s9921_s14 = inlined_call_operand.vmem [shape: f32[1,32], index: 14, kind: input, shape index: {}]   ;;  %s9922_s15 = inlined_call_operand.vmem [shape: f32[1,32], index: 15, kind: input, shape index: {}]   ;;  %s9923_s16 = inlined_call_operand.vmem [shape: f32[32,10], index: 16, kind: input, shape index: {}]   ;;  %s9924_s17 = inlined_call_operand.vmem [shape: f32[1,10], index: 17, kind: input, shape index: {}]   ;;  %s9925_s18 = inlined_call_operand.hbm [shape: f32[2,1,10], index: 18, kind: output, shape index: {}]  }
   0x1   :  { %9933 = sst [smem:[#allocation10_spill]] %s9907_s0 }
   0x2   :  { %9934 = sst [smem:[#allocation11_spill]] %s9908_s1 }
   0x3   :  { %9935 = sst [smem:[#allocation12_spill]] %s9909_s2 }
   0x4   :  { %9936 = sst [smem:[#allocation13_spill]] %s9910_s3 }
   0x5   :  { %9937 = sst [smem:[#allocation14_spill]] %s9911_s4 }
   0x6   :  { %23 = vsyncpa [#allocation3], 0 }
   0x7   :  { %25 = vsyncpa [#allocation3 + $0x1], 0  ;;  %s8383_s27 = smov 0   ;;  %s8385_s28 = smov 0  }
   0x8   :  { %s8387_s29 = smov 0   ;;  %s8389_s30 = smov 0  }
   0x9 LB: > { %9938 = sst [smem:[#allocation5_spill]] %s8270_s27  ;;  %s8404_s0 = sadd.s32 4294967295, %s8282_s30   ;;  %s8282_s30 = sphi %s8389_s30, %s9954_s30   ;;  %s8278_s29 = sphi %s8387_s29, %s9956_s29   ;;  %s8274_s28 = sphi %s8385_s28, %s9958_s28   ;;  %s8270_s27 = sphi %s8383_s27, %s9957_s27  }
   0xa   : > { %9939 = sst [smem:[#allocation6_spill]] %s8278_s29  ;;  %s6188_s19 = sadd.s32 4294967294, %s8282_s30  }
   0xb   : > { %s8408_s1 = sadd.s32 1, %s8282_s30   ;;  %s421_s20 = sadd.s32 1, %s8278_s29 }
   0xc   : > { %9940 = sst [smem:[#allocation7_spill]] %s8408_s1  ;;  %s418_s21 = ssub.s32 %s8282_s30, %s8408_s1 }
   0xd   : > { %p431_p0 = scmp.ne.s32.totalorder %s8278_s29, %s8274_s28  ;;  %p419_p1 = scmp.eq.s32.totalorder %s418_s21, 0 }
   0xe   : > { %p432_p2 = scmp.eq.s32.totalorder %s8404_s0, 1  ;;  %p437_p3 = scmp.ne.s32.totalorder %s8274_s28, %s8270_s27 }
   0xf   : > { %p438_p4 = scmp.eq.s32.totalorder %s6188_s19, 1  ;;  %p6191_p7 = scmp.ge.s32.totalorder %s8282_s30, 1 }
  0x10   : > { %s8419_s22 = scalar_select %p419_p1, %s8278_s29, %s421_s20  }
  0x11   : > { %p8421_p5 = por %p432_p2, %p431_p0  ;;  %p8425_p6 = por %p438_p4, %p437_p3 }
  0x12   : > { %9941 = sst [smem:[#allocation8_spill]] %s8419_s22  ;;  %p515_p8 = scmp.lt.s32.totalorder %s8282_s30, 3 }
  0x13   : > { %s9943_s23 = scalar_select %p8425_p6, 1, 0 }
  0x14   : > { %p516_p9 = pnand %p6191_p7, %p515_p8 }
  0x15   : > { %9944 = sst [smem:[#allocation9_spill]] %s9943_s23  ;;  %v8284_v3 = vmov (!%p516_p9), 0.0|0.0   ;;  %vm8285_vm0 = vmmov (!%p516_p9), 0   ;;  %v8286_v6 = vmov (!%p516_p9), 0.0   ;;  %p568_p10 = scmp.lt.s32.totalorder (!%p516_p9), %s8404_s0, 1  ;;  %vm585_vm1 = vcmask (!%p516_p9), 392192  }
  0x16   : > { %519 = sbr.rel (%p516_p9) target bundleno = 10773 (0x2a15), region = 92  ;;  %s9945_s26 = sld [smem:[#allocation11_spill]] (!%p516_p9)  ;;  %7768 = vmatprep.subr.bf16.mxu0 (!%p516_p9), %v8284_v3  ;;  %6896 = vmatprep.mubr.msk.f32.mxu0 (!%p516_p9), %vm8285_vm0, %v8286_v6  ;;  %vm677_vm2 = vcmask (!%p516_p9), 261120   ;;  %vm684_vm3 = vcmask (!%p516_p9), 253952   ;;  %v737_v44 = vld [vmem:[%s9912_s5] sm:$0xff] (!%p516_p9)  ;;  %v738_v45 = vld [vmem:[%s9912_s5 + $0x8] sm:$0xff] (!%p516_p9) }
  0x17   : > { %7783 = vmatprep.subr.bf16.mxu1 (!%p516_p9), %v8284_v3  ;;  %6930 = vmatprep.mubr.msk.f32.mxu1 (!%p516_p9), %vm8285_vm0, %v8286_v6  ;;  %s9946_s23 = sld [smem:[#allocation10_spill]] (!%p516_p9)  ;;  %s9947_s24 = sld [smem:[#allocation12_spill]] (!%p516_p9)  ;;  %v6201_v46 = vld [vmem:[%s9912_s5 + $0x80] sm:$0xff] (!%p516_p9)  ;;  %v7778_v47 = vpack.c.bf16 (!%p516_p9), %v738_v45, %v737_v44  ;;  %v6202_v48 = vld [vmem:[%s9912_s5 + $0x88] sm:$0xff] (!%p516_p9)  ;;  %v739_v50 = vld [vmem:[%s9912_s5 + $0x10] sm:$0xff] (!%p516_p9)  ;;  %vm1000_vm4 = vcmask (!%p516_p9), 64512  }
  0x18   : > { %v7784_v49 = vpack.c.bf16 (!%p516_p9), %v6202_v48, %v6201_v46  ;;  %v740_v51 = vld [vmem:[%s9912_s5 + $0x18] sm:$0xff] (!%p516_p9)  ;;  %v6203_v52 = vld [vmem:[%s9912_s5 + $0x90] sm:$0xff] (!%p516_p9)  ;;  %s9948_s3 = sld [smem:[#allocation13_spill]] (!%p516_p9)  ;;  %s9949_s4 = sld [smem:[#allocation14_spill]] (!%p516_p9)  ;;  %vm8588_vm5 = vmpackc.low (!%p516_p9), %vm1000_vm4, %vm1000_vm4  ;;  %vm1146_vm6 = vcmask (!%p516_p9), 1040384   ;;  %vm1102_vm7 = vcmask (!%p516_p9), 138240  }
  0x19   : > { %v7781_v53 = vpack.c.bf16 (!%p516_p9), %v740_v51, %v739_v50  ;;  %v6204_v54 = vld [vmem:[%s9912_s5 + $0x98] sm:$0xff] (!%p516_p9)  ;;  %v6227_v48 = vld [vmem:[%s9912_s5 + $0x30] sm:$0xff] (!%p516_p9)  ;;  %vm1109_vm8 = vcmask (!%p516_p9), 131072   ;;  %vm6118_vm9 = vcmask (!%p516_p9), 73728  }
  0x1a   : > { %7785 = vmatpush3.bf16.msra.mxu1 (!%p516_p9), %v7784_v49  ;;  %v7787_v55 = vpack.c.bf16 (!%p516_p9), %v6204_v54, %v6203_v52  ;;  %v6228_v49 = vld [vmem:[%s9912_s5 + $0x38] sm:$0xff] (!%p516_p9)  ;;  %v6240_v54 = vld [vmem:[%s9912_s5 + $0x128] sm:$0xff] (!%p516_p9) }
  0x1b   : > { %7786 = vmatprep.subr.bf16.mxu1 (!%p516_p9), %v8284_v3  ;;  %v7806_v51 = vpack.c.bf16 (!%p516_p9), %v6228_v49, %v6227_v48  ;;  %v6233_v48 = vld [vmem:[%s9912_s5 + $0xa8] sm:$0xff] (!%p516_p9) }
  0x1c   : > { %v576_v0 = vld [vmem:[%s9945_s26] sm:$0xff] (!%p516_p9)  ;;  %v577_v1 = vld [vmem:[%s9945_s26 + $0x8] sm:$0xff] (!%p516_p9)  ;;  %v578_v2 = vld [vmem:[%s9945_s26 + $0x10] sm:$0xff] (!%p516_p9) }
  0x1d   : > { %v7769_v4 = vpack.c.bf16 %v577_v1, %v576_v0  ;;  %v579_v5 = vld [vmem:[%s9945_s26 + $0x18] sm:$0xff]  ;;  %s569_s22 = scalar_select %p568_p10, %s8404_s0, 1  ;;  %v580_v8 = vld [vmem:[%s9945_s26 + $0x20] sm:$0xff]  ;;  %v581_v9 = vld [vmem:[%s9945_s26 + $0x28] sm:$0xff] }
  0x1e   : > { %v7772_v7 = vpack.c.bf16 %v579_v5, %v578_v2  ;;  %v7775_v10 = vpack.c.bf16 %v581_v9, %v580_v8  ;;  %v582_v14 = vld [vmem:[%s9947_s24] sm:$0xff]  ;;  %v583_v18 = vld [vmem:[%s9947_s24 + $0x8] sm:$0xff]  ;;  %v584_v23 = vld [vmem:[%s9947_s24 + $0x10] sm:$0x1]  ;;  %7788 = vmatpush3.bf16.msra.mxu1 %v7787_v55 }
  0x1f   : > { %7770 = vmatpush3.bf16.msra.mxu0 %v7769_v4  ;;  %s8043_s19 = smul.u32 24, %s569_s22  ;;  %7795 = vmatprep.subr.bf16.mxu1 %v8284_v3  ;;  %v6196_v2 = vld [vmem:[%s9948_s3] ss:$0 sm:$0xff]  ;;  %v6209_v8 = vld [vmem:[%s9912_s5 + $0x108] sm:$0xff]  ;;  %s566_s22 = sand.u32 1, %s8274_s28  }
  0x20   : > { %7771 = vmatprep.subr.bf16.mxu0 %v8284_v3  ;;  %v6197_v5 = vld [vmem:[%s9949_s4] ss:$0 sm:$0xff]  ;;  %s567_s1 = scalar_lea.vmem [#allocation2], %s566_s22 }
  0x21   : > { %s572_s27 = scalar_lea.vmem %s9946_s23, %s8043_s19  ;;  %s6121_s23 = scalar_lea.sflag [#allocation3], %s566_s22 }
  0x22   : > { %v573_v11 = vld [vmem:[%s572_s27] sm:$0xff]  ;;  %v574_v12 = vld [vmem:[%s572_s27 + $0x8] sm:$0xff]  ;;  %v575_v13 = vld [vmem:[%s572_s27 + $0x10] sm:$0x1]  ;;  %s6519_s27 = sshll.u32 %s8404_s0, 4  ;;  %s8287_s0 = smov [#allocation2]  }
  0x23   : > { %7773 = vmatpush3.bf16.msra.mxu0 %v7772_v7  ;;  %v6208_v7 = vld [vmem:[%s9912_s5 + $0x100] sm:$0xff]  ;;  %s9865_s21 = scalar_lea.hbm %s9925_s18, %s6519_s27  ;;  %s8224_s29 = sshll.u32 %s8287_s0, 4  ;;  %s8225_s29 = int_to_ptr.vmem [resolvable:$false] %s8224_s29 }
  0x24   : > { %7774 = vmatprep.subr.bf16.mxu0 %v8284_v3 }
  0x27   : > { %7776 = vmatpush3.bf16.msra.mxu0 %v7775_v10 }
  0x28   : > { %7777 = vmatprep.subr.bf16.mxu0 %v8284_v3 }
  0x2a   : > { %6897 = vmatmul.mubr.msk.f32.vlgmr.msra.gmra.mrb[0].mxu0 %vm585_vm1, %v573_v11 }
  0x2b   : > { %6899 = vmatprep.mubr.msk.f32.mxu0 %vm8285_vm0, %v8286_v6  ;;  %7779 = vmatpush3.bf16.msra.mxu0 %v7778_v47 }
  0x2c   : > { %7780 = vmatprep.subr.bf16.mxu0 %v8284_v3 }
  0x2e   : > { %6900 = vmatmul.mubr.msk.f32.gmra.mrb[2].mxu0 %vm585_vm1, %v574_v12 }
  0x2f   : > { %6902 = vmatprep.mubr.msk.f32.mxu0 %vm8285_vm0, %v8286_v6  ;;  %7782 = vmatpush3.bf16.msra.mxu0 %v7781_v53  ;;  %v6239_v53 = vld [vmem:[%s9912_s5 + $0x120] sm:$0xff] }
  0x30   : > { %7789 = vmatprep.subr.bf16.mxu0 %v8284_v3  ;;  %v7815_v55 = vpack.c.bf16 %v6240_v54, %v6239_v53  ;;  %v6235_v53 = vld [vmem:[%s9912_s5 + $0xb8] sm:$0xff] }
  0x32   : > { %6903 = vmatmul.mubr.msk.f32.gmra.mrb[4].mxu0 %vm585_vm1, %v575_v13  ;;  %v7790_v13 = vpack.c.bf16 %v6209_v8, %v6208_v7 }
  0x33   : > { %6913 = vmatprep.mubr.msk.f32.mxu0 %vm8285_vm0, %v8286_v6 }
  0xfd   : > { %v661_v15 = vpop.f32.mrb[0].mxu0 }
  0xfe   : > { %v8472_v16 = vadd.f32 %v661_v15, %v582_v14  ;;  %v6898_v17 = vpop.f32.mrb[1].mxu0  ;;  %v6210_v14 = vld [vmem:[%s9912_s5 + $0x110] sm:$0xff]  ;;  %v6211_v15 = vld [vmem:[%s9912_s5 + $0x118] sm:$0xff] }
 0x100   : > { %v678_v19 = vsel %vm677_vm2, %v8472_v16, 0.0 }
 0x101   : > { %679 = vadd.xlane.f32.xlu0 %v678_v19  ;;  %v666_v20 = vpop.f32.mrb[2].mxu0 }
 0x102   : > { %v8479_v21 = vadd.f32 %v666_v20, %v583_v18  ;;  %v6901_v22 = vpop.f32.mrb[3].mxu0 }
 0x103   : > { %v7793_v22 = vpack.c.bf16 %v6211_v15, %v6210_v14 }
 0x104   : > { %v681_v24 = vsel %vm677_vm2, %v8479_v21, 0.0 }
 0x105   : > { %682 = vadd.xlane.f32.xlu0 %v681_v24  ;;  %v671_v25 = vpop.f32.mrb[4].mxu0 }
 0x106   : > { %v8486_v26 = vadd.f32 %v671_v25, %v584_v23  ;;  %v6904_v27 = vpop.f32.mrb[5].mxu0 }
 0x108   : > { %v685_v28 = vsel %vm684_vm3, %v8486_v26, 0.0 }
 0x109   : > { %686 = vadd.xlane.f32.xlu1 %v685_v28 }
 0x18e   : > { %v680_v29 = vpop.xlane.xlu0 %679 }
 0x18f   : > { %v689_v30 = vmul.f32 0.03125, %v680_v29 }
 0x191   : > { %v692_v31 = vsub.f32 %v8472_v16, %v689_v30 }
 0x192   : > { %v683_v32 = vpop.xlane.xlu0 %682 }
 0x193   : > { %v690_v33 = vmul.f32 0.03125, %v683_v32  ;;  %v695_v34 = vmul.f32 %v692_v31, %v692_v31 }
 0x195   : > { %v693_v35 = vsub.f32 %v8479_v21, %v690_v33  ;;  %v698_v36 = vsel %vm677_vm2, %v695_v34, 0.0 }
 0x196   : > { %699 = vadd.xlane.f32.xlu1 %v698_v36  ;;  %v687_v37 = vpop.xlane.xlu1 %686 }
 0x197   : > { %v691_v38 = vmul.f32 0.03125, %v687_v37  ;;  %v696_v39 = vmul.f32 %v693_v35, %v693_v35 }
 0x199   : > { %v694_v40 = vsub.f32 %v8486_v26, %v691_v38  ;;  %v701_v41 = vsel %vm677_vm2, %v696_v39, 0.0 }
 0x19a   : > { %702 = vadd.xlane.f32.xlu0 %v701_v41 }
 0x19b   : > { %v697_v42 = vmul.f32 %v694_v40, %v694_v40 }
 0x19d   : > { %v704_v43 = vsel %vm684_vm3, %v697_v42, 0.0  ;;  %v6225_v42 = vld [vmem:[%s9912_s5 + $0x20] sm:$0xff] }
 0x19e   : > { %705 = vadd.xlane.f32.xlu1 %v704_v43  ;;  %v6226_v43 = vld [vmem:[%s9912_s5 + $0x28] sm:$0xff] }
 0x19f   : > { %v7803_v45 = vpack.c.bf16 %v6226_v43, %v6225_v42 }
 0x223   : > { %v700_v56 = vpop.xlane.xlu1 %699 }
 0x224   : > { %v707_v57 = vmul.f32 0.03125, %v700_v56  ;;  %v6241_v56 = vld [vmem:[%s9912_s5 + $0x130] sm:$0xff] }
 0x226   : > { %v710_v58 = vadd.f32 1e-05, %v707_v57  ;;  %v6242_v57 = vld [vmem:[%s9912_s5 + $0x138] sm:$0xff] }
 0x227   : > { %v703_v59 = vpop.xlane.xlu0 %702 }
 0x228   : > { %8086 = vrsqrt.f32 %v710_v58  ;;  %v708_v60 = vmul.f32 0.03125, %v703_v59  ;;  %v7818_v58 = vpack.c.bf16 %v6242_v57, %v6241_v56 }
 0x22a   : > { %v711_v61 = vadd.f32 1e-05, %v708_v60 }
 0x22b   : > { %v706_v62 = vpop.xlane.xlu1 %705 }
 0x22c   : > { %8088 = vrsqrt.f32 %v711_v61  ;;  %v709_v63 = vmul.f32 0.03125, %v706_v62 }
 0x22e   : > { %v712_v0 = vadd.f32 1e-05, %v709_v63 }
 0x230   : > { %8090 = vrsqrt.f32 %v712_v0 }
 0x232   : > { %v8087_v1 = vpop.eup %8086 }
 0x233   : > { %v716_v4 = vmul.f32 %v8087_v1, %v692_v31 }
 0x235   : > { %v725_v9 = vmul.f32 %v6196_v2, %v716_v4 }
 0x236   : > { %v8089_v10 = vpop.eup %8088 }
 0x237   : > { %v8536_v11 = vadd.f32 %v6197_v5, %v725_v9  ;;  %v717_v12 = vmul.f32 %v8089_v10, %v693_v35 }
 0x239   : > { %v726_v17 = vmul.f32 %v6196_v2, %v717_v12  ;;  %6914 = vmatmul.mubr.msk.f32.vlgmr.msra.gmra.mrb[6].mxu0 %vm677_vm2, %v8536_v11  ;;  %6931 = vmatmul.mubr.msk.f32.vlgmr.msra.gmra.mrb[0].mxu1 %vm677_vm2, %v8536_v11 }
 0x23a   : > { %v8091_v18 = vpop.eup %8090  ;;  %6916 = vmatprep.mubr.msk.f32.mxu0 %vm8285_vm0, %v8286_v6  ;;  %6933 = vmatprep.mubr.msk.f32.mxu1 %vm8285_vm0, %v8286_v6 }
 0x23b   : > { %v8552_v19 = vadd.f32 %v6197_v5, %v726_v17  ;;  %v718_v20 = vmul.f32 %v8091_v18, %v694_v40  ;;  %7791 = vmatpush3.bf16.msra.mxu0 %v7790_v13 }
 0x23c   : > { %7792 = vmatprep.subr.bf16.mxu0 %v8284_v3 }
 0x23d   : > { %v727_v23 = vmul.f32 %v6196_v2, %v718_v20  ;;  %6917 = vmatmul.mubr.msk.f32.gmra.mrb[8].mxu0 %vm677_vm2, %v8552_v19  ;;  %6934 = vmatmul.mubr.msk.f32.gmra.mrb[2].mxu1 %vm677_vm2, %v8552_v19 }
 0x23e   : > { %6919 = vmatprep.mubr.msk.f32.mxu0 %vm8285_vm0, %v8286_v6  ;;  %6936 = vmatprep.mubr.msk.f32.mxu1 %vm8285_vm0, %v8286_v6 }
 0x23f   : > { %v8563_v24 = vadd.f32 %v6197_v5, %v727_v23  ;;  %7794 = vmatpush3.bf16.msra.mxu0 %v7793_v22 }
 0x240   : > { %7799 = vmatprep.subr.bf16.mxu0 %v8284_v3 }
 0x241   : > { %6920 = vmatmul.mubr.msk.f32.gmra.mrb[10].mxu0 %vm677_vm2, %v8563_v24  ;;  %6937 = vmatmul.mubr.msk.f32.gmra.mrb[4].mxu1 %vm677_vm2, %v8563_v24 }
 0x242   : > { %6947 = vmatprep.mubr.msk.f32.mxu0 %vm8285_vm0, %v8286_v6  ;;  %6962 = vmatprep.mubr.msk.f32.mxu1 %vm8285_vm0, %v8286_v6 }
 0x245   : > { %6948 = vmatmul.mubr.msk.f32.vlgmr.msra.gmra.mrb[12].mxu0 %vm677_vm2, %v8536_v11 }
 0x246   : > { %6950 = vmatprep.mubr.msk.f32.mxu0 %vm8285_vm0, %v8286_v6 }
 0x249   : > { %6951 = vmatmul.mubr.msk.f32.gmra.mrb[14].mxu0 %vm677_vm2, %v8552_v19 }
 0x24a   : > { %6953 = vmatprep.mubr.msk.f32.mxu0 %vm8285_vm0, %v8286_v6 }
 0x24d   : > { %6954 = vmatmul.mubr.msk.f32.gmra.mrb[16].mxu0 %vm677_vm2, %v8563_v24 }
 0x24e   : > { %6977 = vmatprep.mubr.msk.f32.mxu0 %vm8285_vm0, %v8286_v6 }
 0x30c   : > { %v816_v25 = vpop.f32.mrb[6].mxu0  ;;  %v901_v27 = vpop.f32.mrb[0].mxu1 }
 0x30d   : > { %v6915_v28 = vpop.f32.mrb[7].mxu0  ;;  %v6932_v29 = vpop.f32.mrb[1].mxu1 }
 0x310   : > { %v821_v30 = vpop.f32.mrb[8].mxu0  ;;  %v906_v31 = vpop.f32.mrb[2].mxu1 }
 0x311   : > { %v7796_v33 = vpack.c.bf16 %v906_v31, %v901_v27  ;;  %v6918_v34 = vpop.f32.mrb[9].mxu0  ;;  %v6935_v35 = vpop.f32.mrb[3].mxu1 }
 0x313   : > { %7798 = vmatpush3.bf16.xpose.msk.msra.mxu1 %vm8588_vm5, %v7796_v33 }
 0x314   : > { %v826_v36 = vpop.f32.mrb[10].mxu0  ;;  %v911_v37 = vpop.f32.mrb[4].mxu1  ;;  %6960 = vmatprep.subr.mxu1 %v8286_v6 }
 0x315   : > { %v6921_v38 = vpop.f32.mrb[11].mxu0  ;;  %v6938_v39 = vpop.f32.mrb[5].mxu1 }
 0x318   : > { %v986_v40 = vpop.f32.mrb[12].mxu0 }
 0x319   : > { %v6949_v41 = vpop.f32.mrb[13].mxu0 }
 0x31b   : > { %6961 = vmatpush3.xpose.msk.msra.mxu1 %vm1000_vm4, %v911_v37 }
 0x31c   : > { %v991_v44 = vpop.f32.mrb[14].mxu0  ;;  %7802 = vmatprep.subr.bf16.mxu1 %v8284_v3 }
 0x31d   : > { %v7800_v46 = vpack.c.bf16 %v991_v44, %v986_v40  ;;  %v6952_v47 = vpop.f32.mrb[15].mxu0 }
 0x31e   : > { %6963 = vmatmul.mubr.msk.f32.vlgmr.msra.gmra.mrb[6].mxu1 %vm1000_vm4, %v816_v25  ;;  %v6232_v47 = vld [vmem:[%s9912_s5 + $0xa0] sm:$0xff] }
 0x31f   : > { %7801 = vmatpush3.bf16.msra.mxu0 %v7800_v46  ;;  %6965 = vmatprep.mubr.msk.f32.mxu1 %vm8285_vm0, %v8286_v6 }
 0x320   : > { %v996_v50 = vpop.f32.mrb[16].mxu0  ;;  %6975 = vmatprep.subr.mxu0 %v8286_v6  ;;  %7804 = vmatpush3.bf16.msra.mxu1 %v7803_v45 }
 0x321   : > { %v6955_v52 = vpop.f32.mrb[17].mxu0  ;;  %7805 = vmatprep.subr.bf16.mxu1 %v8284_v3 }
 0x322   : > { %6966 = vmatmul.mubr.msk.f32.gmra.mrb[8].mxu1 %vm1000_vm4, %v821_v30  ;;  %v6234_v52 = vld [vmem:[%s9912_s5 + $0xb0] sm:$0xff] }
 0x323   : > { %6976 = vmatpush3.msk.msra.mxu0 %vm1146_vm6, %v996_v50  ;;  %6968 = vmatprep.mubr.msk.f32.mxu1 %vm8285_vm0, %v8286_v6  ;;  %v7809_v50 = vpack.c.bf16 %v6233_v48, %v6232_v47 }
 0x324   : > { %7807 = vmatpush3.bf16.msra.mxu1 %v7806_v51  ;;  %7808 = vmatprep.subr.bf16.mxu0 %v8284_v3 }
 0x325   : > { %7814 = vmatprep.subr.bf16.mxu1 %v8284_v3 }
 0x326   : > { %6969 = vmatmul.mubr.msk.f32.gmra.mrb[10].mxu1 %vm1000_vm4, %v826_v36 }
 0x327   : > { %6994 = vmatprep.mubr.msk.f32.mxu1 %vm8285_vm0, %v8286_v6 }
 0x32a   : > { %6995 = vmatmul.mubr.msk.f32.vlgmr.msra.gmra.mrb[12].mxu1 %vm677_vm2, %v8536_v11 }
 0x32b   : > { %6997 = vmatprep.mubr.msk.f32.mxu1 %vm8285_vm0, %v8286_v6  ;;  %7816 = vmatpush3.bf16.msra.mxu1 %v7815_v55  ;;  %v7812_v55 = vpack.c.bf16 %v6235_v53, %v6234_v52 }
 0x32c   : > { %7817 = vmatprep.subr.bf16.mxu1 %v8284_v3 }
 0x32e   : > { %6998 = vmatmul.mubr.msk.f32.gmra.mrb[14].mxu1 %vm677_vm2, %v8552_v19 }
 0x32f   : > { %7000 = vmatprep.mubr.msk.f32.mxu1 %vm8285_vm0, %v8286_v6  ;;  %7819 = vmatpush3.bf16.msra.mxu1 %v7818_v58 }
 0x330   : > { %7824 = vmatprep.subr.bf16.mxu1 %v8284_v3 }
 0x332   : > { %7001 = vmatmul.mubr.msk.f32.gmra.mrb[16].mxu1 %vm677_vm2, %v8563_v24 }
 0x333   : > { %7028 = vmatprep.mubr.msk.f32.mxu1 %vm8285_vm0, %v8286_v6 }
 0x336   : > { %7029 = vmatmul.mubr.msk.f32.vlgmr.msra.gmra.mrb[18].mxu1 %vm677_vm2, %v8536_v11 }
 0x337   : > { %7031 = vmatprep.mubr.msk.f32.mxu1 %vm8285_vm0, %v8286_v6 }
 0x33a   : > { %7032 = vmatmul.mubr.msk.f32.gmra.mrb[20].mxu1 %vm677_vm2, %v8552_v19 }
 0x33b   : > { %7034 = vmatprep.mubr.msk.f32.mxu1 %vm8285_vm0, %v8286_v6 }
 0x33e   : > { %7035 = vmatmul.mubr.msk.f32.gmra.mrb[22].mxu1 %vm677_vm2, %v8563_v24 }
 0x33f   : > { %7058 = vmatprep.mubr.msk.f32.mxu1 %vm8285_vm0, %v8286_v6 }
 0x3f1   : > { %v1085_v59 = vpop.f32.mrb[6].mxu1 }
 0x3f2   : > { %v1099_v60 = vmul.f32 0.35355338, %v1085_v59  ;;  %v6964_v61 = vpop.f32.mrb[7].mxu1 }
 0x3f4   : > { %v1103_v62 = vsel %vm1102_vm7, %v1099_v60, -inf }
 0x3f5   : > { %1104 = vmax.xlane.f32.xlu0 %v1103_v62  ;;  %v1090_v63 = vpop.f32.mrb[8].mxu1 }
 0x3f6   : > { %v1100_v0 = vmul.f32 0.35355338, %v1090_v63  ;;  %v6967_v1 = vpop.f32.mrb[9].mxu1 }
 0x3f8   : > { %v1106_v2 = vsel %vm1102_vm7, %v1100_v0, -inf }
 0x3f9   : > { %1107 = vmax.xlane.f32.xlu1 %v1106_v2  ;;  %v1095_v4 = vpop.f32.mrb[10].mxu1 }
 0x3fa   : > { %v1101_v5 = vmul.f32 0.35355338, %v1095_v4  ;;  %v6970_v7 = vpop.f32.mrb[11].mxu1 }
 0x3fc   : > { %v1110_v8 = vsel %vm1109_vm8, %v1101_v5, -inf }
 0x3fd   : > { %1111 = vmax.xlane.f32.xlu0 %v1110_v8  ;;  %v8664_v9 = vpop.f32.mrb[12].mxu1 }
 0x3fe   : > { %v6996_v10 = vpop.f32.mrb[13].mxu1 }
 0x401   : > { %v8666_v12 = vpop.f32.mrb[14].mxu1 }
 0x402   : > { %v6999_v13 = vpop.f32.mrb[15].mxu1 }
 0x405   : > { %v8668_v14 = vpop.f32.mrb[16].mxu1 }
 0x406   : > { %v7002_v15 = vpop.f32.mrb[17].mxu1 }
 0x409   : > { %v1472_v17 = vpop.f32.mrb[18].mxu1 }
 0x40a   : > { %v7030_v18 = vpop.f32.mrb[19].mxu1 }
 0x40d   : > { %v1477_v20 = vpop.f32.mrb[20].mxu1 }
 0x40e   : > { %v7825_v22 = vpack.c.bf16 %v1477_v20, %v1472_v17  ;;  %v7033_v23 = vpop.f32.mrb[21].mxu1 }
 0x410   : > { %7826 = vmatpush3.bf16.msra.mxu1 %v7825_v22 }
 0x411   : > { %v1482_v25 = vpop.f32.mrb[22].mxu1  ;;  %7056 = vmatprep.subr.mxu1 %v8286_v6 }
 0x412   : > { %v7036_v27 = vpop.f32.mrb[23].mxu1 }
 0x414   : > { %7057 = vmatpush3.msk.msra.mxu1 %vm1146_vm6, %v1482_v25 }
 0x415   : > { %7078 = vmatprep.subr.mxu1 %v8286_v6 }
 0x482   : > { %v1105_v28 = vpop.xlane.xlu0 %1104 }
 0x483   : > { %v1113_v29 = vsub.f32 %v1099_v60, %v1105_v28 }
 0x485   : > { %v1116_v30 = vmul.f32 1.442695, %v1113_v29 }
 0x486   : > { %v1108_v31 = vpop.xlane.xlu1 %1107 }
 0x487   : > { %8092 = vpow2.f32 %v1116_v30  ;;  %v1114_v33 = vsub.f32 %v1100_v0, %v1108_v31 }
 0x489   : > { %v1118_v34 = vmul.f32 1.442695, %v1114_v33 }
 0x48a   : > { %v1112_v35 = vpop.xlane.xlu0 %1111 }
 0x48b   : > { %8094 = vpow2.f32 %v1118_v34  ;;  %v1115_v36 = vsub.f32 %v1101_v5, %v1112_v35 }
 0x48d   : > { %v1120_v37 = vmul.f32 1.442695, %v1115_v36 }
 0x48f   : > { %8096 = vpow2.f32 %v1120_v37 }
 0x491   : > { %v8093_v38 = vpop.eup %8092 }
 0x492   : > { %v1122_v39 = vsel %vm1102_vm7, %v8093_v38, 0.0 }
 0x493   : > { %1123 = vadd.xlane.f32.xlu1 %v1122_v39 }
 0x495   : > { %v8095_v40 = vpop.eup %8094 }
 0x496   : > { %v1125_v41 = vsel %vm1102_vm7, %v8095_v40, 0.0 }
 0x497   : > { %1126 = vadd.xlane.f32.xlu0 %v1125_v41 }
 0x499   : > { %v8097_v42 = vpop.eup %8096 }
 0x49a   : > { %v1128_v43 = vsel %vm1109_vm8, %v8097_v42, 0.0 }
 0x49b   : > { %1129 = vadd.xlane.f32.xlu1 %v1128_v43 }
 0x520   : > { %v1124_v44 = vpop.xlane.xlu1 %1123 }
 0x521   : > { %8098 = vrcp.f32 %v1124_v44  ;;  %v6256_v44 = vld [vmem:[%s9913_s6 + $0x8] sm:$0xff] }
 0x524   : > { %v1127_v45 = vpop.xlane.xlu0 %1126 }
 0x525   : > { %8100 = vrcp.f32 %v1127_v45 }
 0x528   : > { %v1130_v46 = vpop.xlane.xlu1 %1129 }
 0x529   : > { %8102 = vrcp.f32 %v1130_v46 }
 0x52b   : > { %v8099_v49 = vpop.eup %8098 }
 0x52c   : > { %v1134_v51 = vmul.f32 %v8099_v49, %v8093_v38 }
 0x52e   : > { %6978 = vmatmul.mubr.msk.f32.vlgmr.msra.gmra.mrb[18].mxu0 %vm1102_vm7, %v1134_v51 }
 0x52f   : > { %v8101_v54 = vpop.eup %8100  ;;  %6980 = vmatprep.mubr.msk.f32.mxu0 %vm8285_vm0, %v8286_v6  ;;  %7810 = vmatpush3.bf16.msra.mxu0 %v7809_v50  ;;  %v1230_v50 = vld [vmem:[%s9913_s6] sm:$0xff] }
 0x530   : > { %v1135_v56 = vmul.f32 %v8101_v54, %v8095_v40  ;;  %7811 = vmatprep.subr.bf16.mxu0 %v8284_v3 }
 0x532   : > { %6981 = vmatmul.mubr.msk.f32.gmra.mrb[20].mxu0 %vm1102_vm7, %v1135_v56  ;;  %v6271_v56 = vld [vmem:[%s9912_s5 + $0xc8] sm:$0xff] }
 0x533   : > { %v8103_v57 = vpop.eup %8102  ;;  %6983 = vmatprep.mubr.msk.f32.mxu0 %vm8285_vm0, %v8286_v6  ;;  %7813 = vmatpush3.bf16.msra.mxu0 %v7812_v55  ;;  %v6270_v55 = vld [vmem:[%s9912_s5 + $0xc0] sm:$0xff] }
 0x534   : > { %v1136_v58 = vmul.f32 %v8103_v57, %v8097_v42  ;;  %7820 = vmatprep.subr.bf16.mxu0 %v8284_v3  ;;  %v7834_v57 = vpack.c.bf16 %v6271_v56, %v6270_v55 }
 0x536   : > { %6984 = vmatmul.mubr.msk.f32.gmra.mrb[22].mxu0 %vm1102_vm7, %v1136_v58  ;;  %v6272_v58 = vld [vmem:[%s9912_s5 + $0xd0] sm:$0xff] }
 0x537   : > { %7011 = vmatprep.mubr.msk.f32.mxu0 %vm8285_vm0, %v8286_v6 }
 0x53a   : > { %7012 = vmatmul.mubr.msk.f32.vlgmr.msra.gmra.mrb[24].mxu0 %vm677_vm2, %v8536_v11 }
 0x53b   : > { %7014 = vmatprep.mubr.msk.f32.mxu0 %vm8285_vm0, %v8286_v6 }
 0x53e   : > { %7015 = vmatmul.mubr.msk.f32.gmra.mrb[26].mxu0 %vm677_vm2, %v8552_v19 }
 0x53f   : > { %7017 = vmatprep.mubr.msk.f32.mxu0 %vm8285_vm0, %v8286_v6 }
 0x542   : > { %7018 = vmatmul.mubr.msk.f32.gmra.mrb[28].mxu0 %vm677_vm2, %v8563_v24 }
 0x543   : > { %7043 = vmatprep.mubr.msk.f32.mxu0 %vm8285_vm0, %v8286_v6 }
 0x601   : > { %v8711_v59 = vpop.f32.mrb[18].mxu0 }
 0x602   : > { %v6979_v60 = vpop.f32.mrb[19].mxu0 }
 0x603   : > { %v6273_v60 = vld [vmem:[%s9912_s5 + $0xd8] sm:$0xff] }
 0x605   : > { %v8713_v61 = vpop.f32.mrb[20].mxu0 }
 0x606   : > { %v6982_v62 = vpop.f32.mrb[21].mxu0 }
 0x607   : > { %v7837_v62 = vpack.c.bf16 %v6273_v60, %v6272_v58 }
 0x609   : > { %v8715_v63 = vpop.f32.mrb[22].mxu0 }
 0x60a   : > { %v6985_v0 = vpop.f32.mrb[23].mxu0 }
 0x60b   : > { %v6265_v0 = vld [vmem:[%s9912_s5 + $0x50] sm:$0xff] }
 0x60d   : > { %v1387_v1 = vpop.f32.mrb[24].mxu0 }
 0x60e   : > { %v7013_v2 = vpop.f32.mrb[25].mxu0 }
 0x611   : > { %v1392_v4 = vpop.f32.mrb[26].mxu0 }
 0x612   : > { %v7821_v5 = vpack.c.bf16 %v1392_v4, %v1387_v1  ;;  %v7016_v7 = vpop.f32.mrb[27].mxu0  ;;  %v6266_v1 = vld [vmem:[%s9912_s5 + $0x58] sm:$0xff] }
 0x614   : > { %7823 = vmatpush3.bf16.xpose.msk.msra.mxu0 %vm8588_vm5, %v7821_v5  ;;  %v7831_v5 = vpack.c.bf16 %v6266_v1, %v6265_v0 }
 0x615   : > { %v1397_v8 = vpop.f32.mrb[28].mxu0  ;;  %7041 = vmatprep.subr.mxu0 %v8286_v6 }
 0x616   : > { %v7019_v10 = vpop.f32.mrb[29].mxu0 }
 0x617   : > { %v6277_v10 = vld [vmem:[%s9912_s5 + $0x140] sm:$0xff] }
 0x61c   : > { %7042 = vmatpush3.xpose.msk.msra.mxu0 %vm1000_vm4, %v1397_v8 }
 0x61d   : > { %7067 = vmatprep.subr.mxu0 %v8286_v6 }
 0x61f   : > { %7044 = vmatmul.mubr.msk.f32.vlgmr.msra.gmra.mrb[30].mxu0 %vm1000_vm4, %v8664_v9 }
 0x620   : > { %7046 = vmatprep.mubr.msk.f32.mxu0 %vm8285_vm0, %v8286_v6  ;;  %7068 = vmatpush3.msra.mxu0 %v6256_v44 }
 0x621   : > { %7827 = vmatprep.subr.bf16.mxu0 %v8284_v3 }
 0x623   : > { %7047 = vmatmul.mubr.msk.f32.gmra.mrb[32].mxu0 %vm1000_vm4, %v8666_v12 }
 0x624   : > { %7049 = vmatprep.mubr.msk.f32.mxu0 %vm8285_vm0, %v8286_v6 }
 0x627   : > { %7050 = vmatmul.mubr.msk.f32.gmra.mrb[34].mxu0 %vm1000_vm4, %v8668_v14 }
 0x628   : > { %7069 = vmatprep.mubr.msk.f32.mxu0 %vm8285_vm0, %v8286_v6 }
 0x6f2   : > { %v1570_v13 = vpop.f32.mrb[30].mxu0 }
 0x6f3   : > { %v1584_v15 = vmul.f32 0.35355338, %v1570_v13  ;;  %v7045_v17 = vpop.f32.mrb[31].mxu0  ;;  %v6278_v13 = vld [vmem:[%s9912_s5 + $0x148] sm:$0xff] }
 0x6f5   : > { %v1587_v9 = vsel %vm1102_vm7, %v1584_v15, -inf }
 0x6f6   : > { %1588 = vmax.xlane.f32.xlu0 %v1587_v9  ;;  %v1575_v18 = vpop.f32.mrb[32].mxu0  ;;  %v7840_v9 = vpack.c.bf16 %v6278_v13, %v6277_v10 }
 0x6f7   : > { %v1585_v20 = vmul.f32 0.35355338, %v1575_v18  ;;  %v7048_v22 = vpop.f32.mrb[33].mxu0  ;;  %v6279_v18 = vld [vmem:[%s9912_s5 + $0x150] sm:$0xff] }
 0x6f9   : > { %v1590_v12 = vsel %vm1102_vm7, %v1585_v20, -inf }
 0x6fa   : > { %1591 = vmax.xlane.f32.xlu1 %v1590_v12  ;;  %v1580_v23 = vpop.f32.mrb[34].mxu0 }
 0x6fb   : > { %v1586_v25 = vmul.f32 0.35355338, %v1580_v23  ;;  %v7051_v27 = vpop.f32.mrb[35].mxu0 }
 0x6fd   : > { %v1593_v14 = vsel %vm1109_vm8, %v1586_v25, -inf }
 0x6fe   : > { %1594 = vmax.xlane.f32.xlu0 %v1593_v14 }
 0x783   : > { %v1589_v28 = vpop.xlane.xlu0 %1588 }
 0x784   : > { %v1596_v29 = vsub.f32 %v1584_v15, %v1589_v28 }
 0x786   : > { %v1599_v30 = vmul.f32 1.442695, %v1596_v29 }
 0x787   : > { %v1592_v31 = vpop.xlane.xlu1 %1591 }
 0x788   : > { %8104 = vpow2.f32 %v1599_v30  ;;  %v1597_v33 = vsub.f32 %v1585_v20, %v1592_v31  ;;  %v6280_v20 = vld [vmem:[%s9912_s5 + $0x158] sm:$0xff] }
 0x789   : > { %v7843_v23 = vpack.c.bf16 %v6280_v20, %v6279_v18 }
 0x78a   : > { %v1601_v34 = vmul.f32 1.442695, %v1597_v33 }
 0x78b   : > { %v1595_v35 = vpop.xlane.xlu0 %1594 }
 0x78c   : > { %8106 = vpow2.f32 %v1601_v34  ;;  %v1598_v36 = vsub.f32 %v1586_v25, %v1595_v35 }
 0x78e   : > { %v1603_v37 = vmul.f32 1.442695, %v1598_v36 }
 0x790   : > { %8108 = vpow2.f32 %v1603_v37 }
 0x792   : > { %v8105_v38 = vpop.eup %8104 }
 0x793   : > { %v1605_v39 = vsel %vm1102_vm7, %v8105_v38, 0.0 }
 0x794   : > { %1606 = vadd.xlane.f32.xlu1 %v1605_v39 }
 0x796   : > { %v8107_v40 = vpop.eup %8106 }
 0x797   : > { %v1608_v41 = vsel %vm1102_vm7, %v8107_v40, 0.0 }
 0x798   : > { %1609 = vadd.xlane.f32.xlu0 %v1608_v41 }
 0x79a   : > { %v8109_v42 = vpop.eup %8108 }
 0x79b   : > { %v1611_v43 = vsel %vm1109_vm8, %v8109_v42, 0.0 }
 0x79c   : > { %1612 = vadd.xlane.f32.xlu1 %v1611_v43 }
 0x821   : > { %v1607_v45 = vpop.xlane.xlu1 %1606 }
 0x822   : > { %8110 = vrcp.f32 %v1607_v45 }
 0x825   : > { %v1610_v46 = vpop.xlane.xlu0 %1609 }
 0x826   : > { %8112 = vrcp.f32 %v1610_v46 }
 0x829   : > { %v1613_v47 = vpop.xlane.xlu1 %1612 }
 0x82a   : > { %8114 = vrcp.f32 %v1613_v47 }
 0x82c   : > { %v8111_v48 = vpop.eup %8110 }
 0x82d   : > { %v1617_v49 = vmul.f32 %v8111_v48, %v8105_v38 }
 0x82f   : > { %7059 = vmatmul.mubr.msk.f32.vlgmr.msra.gmra.mrb[24].mxu1 %vm1102_vm7, %v1617_v49 }
 0x830   : > { %v8113_v51 = vpop.eup %8112  ;;  %7061 = vmatprep.mubr.msk.f32.mxu1 %vm8285_vm0, %v8286_v6  ;;  %7079 = vmatpush3.msra.mxu1 %v1230_v50 }
 0x831   : > { %v1618_v52 = vmul.f32 %v8113_v51, %v8107_v40  ;;  %7833 = vmatprep.subr.bf16.mxu1 %v8284_v3 }
 0x833   : > { %7062 = vmatmul.mubr.msk.f32.gmra.mrb[26].mxu1 %vm1102_vm7, %v1618_v52 }
 0x834   : > { %v8115_v53 = vpop.eup %8114  ;;  %7064 = vmatprep.mubr.msk.f32.mxu1 %vm8285_vm0, %v8286_v6 }
 0x835   : > { %v1619_v54 = vmul.f32 %v8115_v53, %v8109_v42 }
 0x837   : > { %7065 = vmatmul.mubr.msk.f32.gmra.mrb[28].mxu1 %vm1102_vm7, %v1619_v54 }
 0x838   : > { %7080 = vmatprep.mubr.msk.f32.mxu1 %vm8285_vm0, %v8286_v6 }
 0x83b   : > { %7081 = vmatmul.mubr.msk.f32.vlgmr.msra.gmra.mrb[30].mxu1 %vm1000_vm4, %v8711_v59  ;;  %v6263_v59 = vld [vmem:[%s9912_s5 + $0x40] sm:$0xff] }
 0x83c   : > { %7083 = vmatprep.mubr.msk.f32.mxu1 %vm8285_vm0, %v8286_v6  ;;  %7835 = vmatpush3.bf16.msra.mxu1 %v7834_v57 }
 0x83d   : > { %7836 = vmatprep.subr.bf16.mxu1 %v8284_v3 }
 0x83f   : > { %7084 = vmatmul.mubr.msk.f32.gmra.mrb[32].mxu1 %vm1000_vm4, %v8713_v61  ;;  %v6264_v61 = vld [vmem:[%s9912_s5 + $0x48] sm:$0xff] }
 0x840   : > { %7086 = vmatprep.mubr.msk.f32.mxu1 %vm8285_vm0, %v8286_v6  ;;  %7838 = vmatpush3.bf16.msra.mxu1 %v7837_v62 }
 0x841   : > { %7845 = vmatprep.subr.bf16.mxu1 %v8284_v3 }
 0x843   : > { %7087 = vmatmul.mubr.msk.f32.gmra.mrb[34].mxu1 %vm1000_vm4, %v8715_v63  ;;  %v7828_v63 = vpack.c.bf16 %v6264_v61, %v6263_v59 }
 0x844   : > { %7114 = vmatprep.mubr.msk.f32.mxu1 %vm8285_vm0, %v8286_v6 }
 0x847   : > { %7115 = vmatmul.mubr.msk.f32.vlgmr.msra.gmra.mrb[36].mxu1 %vm677_vm2, %v8536_v11 }
 0x848   : > { %7117 = vmatprep.mubr.msk.f32.mxu1 %vm8285_vm0, %v8286_v6 }
 0x84b   : > { %7118 = vmatmul.mubr.msk.f32.gmra.mrb[38].mxu1 %vm677_vm2, %v8552_v19 }
 0x84c   : > { %7120 = vmatprep.mubr.msk.f32.mxu1 %vm8285_vm0, %v8286_v6 }
 0x84f   : > { %7121 = vmatmul.mubr.msk.f32.gmra.mrb[40].mxu1 %vm677_vm2, %v8563_v24 }
 0x850   : > { %7146 = vmatprep.mubr.msk.f32.mxu1 %vm8285_vm0, %v8286_v6 }
 0x902   : > { %v1698_v2 = vpop.f32.mrb[24].mxu1 }
 0x903   : > { %v7060_v4 = vpop.f32.mrb[25].mxu1  ;;  %7070 = vmatmul.mubr.msk.f32.vlgmr.msra.gmra.mrb[36].mxu0 %vm1000_vm4, %v1698_v2 }
 0x904   : > { %7072 = vmatprep.mubr.msk.f32.mxu0 %vm8285_vm0, %v8286_v6  ;;  %7829 = vmatpush3.bf16.msra.mxu0 %v7828_v63 }
 0x905   : > { %7830 = vmatprep.subr.bf16.mxu0 %v8284_v3 }
 0x906   : > { %v1703_v7 = vpop.f32.mrb[26].mxu1 }
 0x907   : > { %v7063_v8 = vpop.f32.mrb[27].mxu1  ;;  %7073 = vmatmul.mubr.msk.f32.gmra.mrb[38].mxu0 %vm1000_vm4, %v1703_v7 }
 0x908   : > { %7075 = vmatprep.mubr.msk.f32.mxu0 %vm8285_vm0, %v8286_v6  ;;  %7832 = vmatpush3.bf16.msra.mxu0 %v7831_v5 }
 0x909   : > { %7839 = vmatprep.subr.bf16.mxu0 %v8284_v3 }
 0x90a   : > { %v1708_v15 = vpop.f32.mrb[28].mxu1 }
 0x90b   : > { %v7066_v17 = vpop.f32.mrb[29].mxu1  ;;  %7076 = vmatmul.mubr.msk.f32.gmra.mrb[40].mxu0 %vm1000_vm4, %v1708_v15 }
 0x90c   : > { %7097 = vmatprep.mubr.msk.f32.mxu0 %vm8285_vm0, %v8286_v6 }
 0x90e   : > { %v1878_v22 = vpop.f32.mrb[30].mxu1 }
 0x90f   : > { %v7082_v12 = vpop.f32.mrb[31].mxu1  ;;  %7098 = vmatmul.mubr.msk.f32.vlgmr.msra.gmra.mrb[42].mxu0 %vm677_vm2, %v8536_v11 }
 0x910   : > { %7100 = vmatprep.mubr.msk.f32.mxu0 %vm8285_vm0, %v8286_v6  ;;  %7841 = vmatpush3.bf16.msra.mxu0 %v7840_v9 }
 0x911   : > { %7842 = vmatprep.subr.bf16.mxu0 %v8284_v3 }
 0x912   : > { %v1883_v25 = vpop.f32.mrb[32].mxu1 }
 0x913   : > { %v7085_v27 = vpop.f32.mrb[33].mxu1  ;;  %7101 = vmatmul.mubr.msk.f32.gmra.mrb[44].mxu0 %vm677_vm2, %v8552_v19 }
 0x914   : > { %7103 = vmatprep.mubr.msk.f32.mxu0 %vm8285_vm0, %v8286_v6  ;;  %7844 = vmatpush3.bf16.msra.mxu0 %v7843_v23 }
 0x915   : > { %7849 = vmatprep.subr.bf16.mxu0 %v8284_v3 }
 0x916   : > { %v1888_v14 = vpop.f32.mrb[34].mxu1 }
 0x917   : > { %v7088_v28 = vpop.f32.mrb[35].mxu1  ;;  %7104 = vmatmul.mubr.msk.f32.gmra.mrb[46].mxu0 %vm677_vm2, %v8563_v24 }
 0x918   : > { %7131 = vmatprep.mubr.msk.f32.mxu0 %vm8285_vm0, %v8286_v6 }
 0x91a   : > { %v2048_v29 = vpop.f32.mrb[36].mxu1 }
 0x91b   : > { %v7116_v30 = vpop.f32.mrb[37].mxu1  ;;  %7132 = vmatmul.mubr.msk.f32.vlgmr.msra.gmra.mrb[48].mxu0 %vm677_vm2, %v8536_v11 }
 0x91c   : > { %7134 = vmatprep.mubr.msk.f32.mxu0 %vm8285_vm0, %v8286_v6  ;;  %v6294_v30 = vld [vmem:[%s9913_s6 + $0x10] sm:$0xff] }
 0x91e   : > { %v2053_v31 = vpop.f32.mrb[38].mxu1 }
 0x91f   : > { %v7846_v33 = vpack.c.bf16 %v2053_v31, %v2048_v29  ;;  %v7119_v34 = vpop.f32.mrb[39].mxu1  ;;  %7135 = vmatmul.mubr.msk.f32.gmra.mrb[50].mxu0 %vm677_vm2, %v8552_v19 }
 0x920   : > { %7137 = vmatprep.mubr.msk.f32.mxu0 %vm8285_vm0, %v8286_v6 }
 0x921   : > { %7848 = vmatpush3.bf16.xpose.msk.msra.mxu1 %vm8588_vm5, %v7846_v33 }
 0x922   : > { %v2058_v35 = vpop.f32.mrb[40].mxu1  ;;  %7144 = vmatprep.subr.mxu1 %v8286_v6 }
 0x923   : > { %v7122_v36 = vpop.f32.mrb[41].mxu1  ;;  %7138 = vmatmul.mubr.msk.f32.gmra.mrb[52].mxu0 %vm677_vm2, %v8563_v24 }
 0x924   : > { %7161 = vmatprep.mubr.msk.f32.mxu0 %vm8285_vm0, %v8286_v6  ;;  %v6299_v36 = vld [vmem:[%s9912_s5 + $0x68] sm:$0xff] }
 0x929   : > { %7145 = vmatpush3.xpose.msk.msra.mxu1 %vm1000_vm4, %v2058_v35  ;;  %v6298_v35 = vld [vmem:[%s9912_s5 + $0x60] sm:$0xff] }
 0x92a   : > { %7170 = vmatprep.subr.mxu1 %v8286_v6 }
 0x9d6   : > { %v1789_v37 = vpop.f32.mrb[36].mxu0 }
 0x9d7   : > { %v8861_v38 = vadd.f32 %v1878_v22, %v1789_v37  ;;  %v7071_v39 = vpop.f32.mrb[37].mxu0 }
 0x9d8   : > { %v7853_v39 = vpack.c.bf16 %v6299_v36, %v6298_v35 }
 0x9da   : > { %v1794_v40 = vpop.f32.mrb[38].mxu0 }
 0x9db   : > { %v8863_v41 = vadd.f32 %v1883_v25, %v1794_v40  ;;  %v7074_v42 = vpop.f32.mrb[39].mxu0 }
 0x9dc   : > { %v6300_v42 = vld [vmem:[%s9912_s5 + $0x70] sm:$0xff] }
 0x9de   : > { %v1799_v43 = vpop.f32.mrb[40].mxu0 }
 0x9df   : > { %v8865_v44 = vadd.f32 %v1888_v14, %v1799_v43  ;;  %v7077_v45 = vpop.f32.mrb[41].mxu0  ;;  %v6301_v43 = vld [vmem:[%s9912_s5 + $0x78] sm:$0xff] }
 0x9e2   : > { %v1963_v46 = vpop.f32.mrb[42].mxu0 }
 0x9e3   : > { %v7099_v47 = vpop.f32.mrb[43].mxu0  ;;  %7147 = vmatmul.mubr.msk.f32.vlgmr.msra.gmra.mrb[42].mxu1 %vm1000_vm4, %v1963_v46  ;;  %v7856_v46 = vpack.c.bf16 %v6301_v43, %v6300_v42 }
 0x9e4   : > { %7149 = vmatprep.mubr.msk.f32.mxu1 %vm8285_vm0, %v8286_v6  ;;  %7171 = vmatpush3.msra.mxu1 %v6294_v30 }
 0x9e5   : > { %7858 = vmatprep.subr.bf16.mxu1 %v8284_v3 }
 0x9e6   : > { %v1968_v48 = vpop.f32.mrb[44].mxu0 }
 0x9e7   : > { %v7102_v49 = vpop.f32.mrb[45].mxu0  ;;  %7150 = vmatmul.mubr.msk.f32.gmra.mrb[44].mxu1 %vm1000_vm4, %v1968_v48 }
 0x9e8   : > { %7152 = vmatprep.mubr.msk.f32.mxu1 %vm8285_vm0, %v8286_v6 }
 0x9ea   : > { %v1973_v50 = vpop.f32.mrb[46].mxu0 }
 0x9eb   : > { %v7105_v51 = vpop.f32.mrb[47].mxu0  ;;  %7153 = vmatmul.mubr.msk.f32.gmra.mrb[46].mxu1 %vm1000_vm4, %v1973_v50  ;;  %v6312_v50 = vld [vmem:[%s9912_s5 + $0x160] sm:$0xff] }
 0x9ec   : > { %7172 = vmatprep.mubr.msk.f32.mxu1 %vm8285_vm0, %v8286_v6  ;;  %v6313_v51 = vld [vmem:[%s9912_s5 + $0x168] sm:$0xff] }
 0x9ee   : > { %v2133_v52 = vpop.f32.mrb[48].mxu0 }
 0x9ef   : > { %v7133_v53 = vpop.f32.mrb[49].mxu0 }
 0x9f0   : > { %v6314_v53 = vld [vmem:[%s9912_s5 + $0x170] sm:$0xff] }
 0x9f2   : > { %v2138_v54 = vpop.f32.mrb[50].mxu0 }
 0x9f3   : > { %v7850_v55 = vpack.c.bf16 %v2138_v54, %v2133_v52  ;;  %v7136_v56 = vpop.f32.mrb[51].mxu0  ;;  %v7865_v52 = vpack.c.bf16 %v6313_v51, %v6312_v50  ;;  %v6315_v54 = vld [vmem:[%s9912_s5 + $0x178] sm:$0xff] }
 0x9f4   : > { %v6305_v56 = vld [vmem:[%s9912_s5 + $0xe0] sm:$0xff] }
 0x9f5   : > { %7851 = vmatpush3.bf16.msra.mxu0 %v7850_v55  ;;  %v7868_v55 = vpack.c.bf16 %v6315_v54, %v6314_v53 }
 0x9f6   : > { %v2143_v57 = vpop.f32.mrb[52].mxu0  ;;  %7159 = vmatprep.subr.mxu0 %v8286_v6 }
 0x9f7   : > { %v7139_v58 = vpop.f32.mrb[53].mxu0 }
 0x9f9   : > { %7160 = vmatpush3.msk.msra.mxu0 %vm1146_vm6, %v2143_v57  ;;  %v6306_v57 = vld [vmem:[%s9912_s5 + $0xe8] sm:$0xff] }
 0x9fa   : > { %7852 = vmatprep.subr.bf16.mxu0 %v8284_v3  ;;  %v7859_v58 = vpack.c.bf16 %v6306_v57, %v6305_v56 }
 0xab6   : > { %v2231_v60 = vpop.f32.mrb[42].mxu1 }
 0xab7   : > { %v2245_v62 = vmul.f32 0.35355338, %v2231_v60  ;;  %v7148_v59 = vpop.f32.mrb[43].mxu1  ;;  %v6307_v60 = vld [vmem:[%s9912_s5 + $0xf0] sm:$0xff] }
 0xab9   : > { %v2248_v61 = vsel %vm1102_vm7, %v2245_v62, -inf }
 0xaba   : > { %2249 = vmax.xlane.f32.xlu0 %v2248_v61  ;;  %v2236_v63 = vpop.f32.mrb[44].mxu1 }
 0xabb   : > { %v2246_v0 = vmul.f32 0.35355338, %v2236_v63  ;;  %v7151_v1 = vpop.f32.mrb[45].mxu1 }
 0xabd   : > { %v2251_v2 = vsel %vm1102_vm7, %v2246_v0, -inf }
 0xabe   : > { %2252 = vmax.xlane.f32.xlu1 %v2251_v2  ;;  %v2241_v4 = vpop.f32.mrb[46].mxu1 }
 0xabf   : > { %v2247_v5 = vmul.f32 0.35355338, %v2241_v4  ;;  %v7154_v7 = vpop.f32.mrb[47].mxu1 }
 0xac1   : > { %v2254_v8 = vsel %vm1109_vm8, %v2247_v5, -inf }
 0xac2   : > { %2255 = vmax.xlane.f32.xlu0 %v2254_v8 }
 0xb47   : > { %v2250_v10 = vpop.xlane.xlu0 %2249 }
 0xb48   : > { %v2257_v13 = vsub.f32 %v2245_v62, %v2250_v10  ;;  %v6308_v62 = vld [vmem:[%s9912_s5 + $0xf8] sm:$0xff] }
 0xb49   : > { %v7862_v63 = vpack.c.bf16 %v6308_v62, %v6307_v60 }
 0xb4a   : > { %v2260_v15 = vmul.f32 1.442695, %v2257_v13 }
 0xb4b   : > { %v2253_v17 = vpop.xlane.xlu1 %2252 }
 0xb4c   : > { %8116 = vpow2.f32 %v2260_v15  ;;  %v2258_v9 = vsub.f32 %v2246_v0, %v2253_v17 }
 0xb4e   : > { %v2262_v18 = vmul.f32 1.442695, %v2258_v9 }
 0xb4f   : > { %v2256_v20 = vpop.xlane.xlu0 %2255 }
 0xb50   : > { %8118 = vpow2.f32 %v2262_v18  ;;  %v2259_v22 = vsub.f32 %v2247_v5, %v2256_v20 }
 0xb52   : > { %v2264_v12 = vmul.f32 1.442695, %v2259_v22 }
 0xb54   : > { %8120 = vpow2.f32 %v2264_v12 }
 0xb56   : > { %v8117_v23 = vpop.eup %8116 }
 0xb57   : > { %v2266_v25 = vsel %vm1102_vm7, %v8117_v23, 0.0 }
 0xb58   : > { %2267 = vadd.xlane.f32.xlu1 %v2266_v25 }
 0xb5a   : > { %v8119_v27 = vpop.eup %8118 }
 0xb5b   : > { %v2269_v14 = vsel %vm1102_vm7, %v8119_v27, 0.0 }
 0xb5c   : > { %2270 = vadd.xlane.f32.xlu0 %v2269_v14 }
 0xb5e   : > { %v8121_v28 = vpop.eup %8120 }
 0xb5f   : > { %v2272_v29 = vsel %vm1109_vm8, %v8121_v28, 0.0 }
 0xb60   : > { %2273 = vadd.xlane.f32.xlu1 %v2272_v29 }
 0xbe5   : > { %v2268_v31 = vpop.xlane.xlu1 %2267 }
 0xbe6   : > { %8122 = vrcp.f32 %v2268_v31 }
 0xbe9   : > { %v2271_v33 = vpop.xlane.xlu0 %2270 }
 0xbea   : > { %8124 = vrcp.f32 %v2271_v33 }
 0xbed   : > { %v2274_v34 = vpop.xlane.xlu1 %2273 }
 0xbee   : > { %8126 = vrcp.f32 %v2274_v34 }
 0xbf0   : > { %v8123_v37 = vpop.eup %8122 }
 0xbf1   : > { %v2278_v40 = vmul.f32 %v8123_v37, %v8117_v23 }
 0xbf3   : > { %7162 = vmatmul.mubr.msk.f32.vlgmr.msra.gmra.mrb[54].mxu0 %vm1102_vm7, %v2278_v40 }
 0xbf4   : > { %v8125_v45 = vpop.eup %8124  ;;  %7164 = vmatprep.mubr.msk.f32.mxu0 %vm8285_vm0, %v8286_v6  ;;  %7854 = vmatpush3.bf16.msra.mxu0 %v7853_v39 }
 0xbf5   : > { %v2279_v47 = vmul.f32 %v8125_v45, %v8119_v27  ;;  %7855 = vmatprep.subr.bf16.mxu0 %v8284_v3 }
 0xbf7   : > { %7165 = vmatmul.mubr.msk.f32.gmra.mrb[56].mxu0 %vm1102_vm7, %v2279_v47 }
 0xbf8   : > { %v8127_v48 = vpop.eup %8126  ;;  %7167 = vmatprep.mubr.msk.f32.mxu0 %vm8285_vm0, %v8286_v6  ;;  %7857 = vmatpush3.bf16.msra.mxu0 %v7856_v46 }
 0xbf9   : > { %v2280_v49 = vmul.f32 %v8127_v48, %v8121_v28  ;;  %7864 = vmatprep.subr.bf16.mxu0 %v8284_v3 }
 0xbfb   : > { %7168 = vmatmul.mubr.msk.f32.gmra.mrb[58].mxu0 %vm1102_vm7, %v2280_v49 }
 0xbfc   : > { %7189 = vmatprep.mubr.msk.f32.mxu0 %vm8285_vm0, %v8286_v6 }
 0xbff   : > { %7190 = vmatmul.mubr.msk.f32.vlgmr.msra.gmra.mrb[60].mxu0 %vm677_vm2, %v8536_v11 }
 0xc00   : > { %7192 = vmatprep.mubr.msk.f32.mxu0 %vm8285_vm0, %v8286_v6  ;;  %7866 = vmatpush3.bf16.msra.mxu0 %v7865_v52 }
 0xc01   : > { %7867 = vmatprep.subr.bf16.mxu0 %v8284_v3 }
 0xc03   : > { %7193 = vmatmul.mubr.msk.f32.gmra.mrb[62].mxu0 %vm677_vm2, %v8552_v19 }
 0xc04   : > { %7195 = vmatprep.mubr.msk.f32.mxu0 %vm8285_vm0, %v8286_v6  ;;  %7869 = vmatpush3.bf16.msra.mxu0 %v7868_v55 }
 0xc05   : > { %7874 = vmatprep.subr.bf16.mxu0 %v8284_v3 }
 0xc07   : > { %7196 = vmatmul.mubr.msk.f32.gmra.mrb[64].mxu0 %vm677_vm2, %v8563_v24 }
 0xc08   : > { %7223 = vmatprep.mubr.msk.f32.mxu0 %vm8285_vm0, %v8286_v6 }
 0xc0b   : > { %7224 = vmatmul.mubr.msk.f32.vlgmr.msra.gmra.mrb[66].mxu0 %vm677_vm2, %v8536_v11 }
 0xc0c   : > { %7226 = vmatprep.mubr.msk.f32.mxu0 %vm8285_vm0, %v8286_v6 }
 0xc0f   : > { %7227 = vmatmul.mubr.msk.f32.gmra.mrb[68].mxu0 %vm677_vm2, %v8552_v19 }
 0xc10   : > { %7229 = vmatprep.mubr.msk.f32.mxu0 %vm8285_vm0, %v8286_v6 }
 0xc13   : > { %7230 = vmatmul.mubr.msk.f32.gmra.mrb[70].mxu0 %vm677_vm2, %v8563_v24 }
 0xc14   : > { %7253 = vmatprep.mubr.msk.f32.mxu0 %vm8285_vm0, %v8286_v6 }
 0xcc6   : > { %v2359_v59 = vpop.f32.mrb[54].mxu0 }
 0xcc7   : > { %v7163_v61 = vpop.f32.mrb[55].mxu0  ;;  %7173 = vmatmul.mubr.msk.f32.vlgmr.msra.gmra.mrb[48].mxu1 %vm1000_vm4, %v2359_v59 }
 0xcc8   : > { %7175 = vmatprep.mubr.msk.f32.mxu1 %vm8285_vm0, %v8286_v6  ;;  %7860 = vmatpush3.bf16.msra.mxu1 %v7859_v58 }
 0xcc9   : > { %7861 = vmatprep.subr.bf16.mxu1 %v8284_v3 }
 0xcca   : > { %v2364_v0 = vpop.f32.mrb[56].mxu0 }
 0xccb   : > { %v7166_v1 = vpop.f32.mrb[57].mxu0  ;;  %7176 = vmatmul.mubr.msk.f32.gmra.mrb[50].mxu1 %vm1000_vm4, %v2364_v0 }
 0xccc   : > { %7178 = vmatprep.mubr.msk.f32.mxu1 %vm8285_vm0, %v8286_v6  ;;  %7863 = vmatpush3.bf16.msra.mxu1 %v7862_v63 }
 0xccd   : > { %7870 = vmatprep.subr.bf16.mxu1 %v8284_v3 }
 0xcce   : > { %v2369_v2 = vpop.f32.mrb[58].mxu0 }
 0xccf   : > { %v7169_v4 = vpop.f32.mrb[59].mxu0  ;;  %7179 = vmatmul.mubr.msk.f32.gmra.mrb[52].mxu1 %vm1000_vm4, %v2369_v2  ;;  %v6329_v2 = vld [vmem:[%s9913_s6 + $0x18] sm:$0xff] }
 0xcd0   : > { %7206 = vmatprep.mubr.msk.f32.mxu1 %vm8285_vm0, %v8286_v6 }
 0xcd2   : > { %v2538_v5 = vpop.f32.mrb[60].mxu0 }
 0xcd3   : > { %v7191_v7 = vpop.f32.mrb[61].mxu0  ;;  %7207 = vmatmul.mubr.msk.f32.vlgmr.msra.gmra.mrb[54].mxu1 %vm677_vm2, %v8536_v11 }
 0xcd4   : > { %7209 = vmatprep.mubr.msk.f32.mxu1 %vm8285_vm0, %v8286_v6 }
 0xcd6   : > { %v2543_v8 = vpop.f32.mrb[62].mxu0 }
 0xcd7   : > { %v7194_v10 = vpop.f32.mrb[63].mxu0  ;;  %7210 = vmatmul.mubr.msk.f32.gmra.mrb[56].mxu1 %vm677_vm2, %v8552_v19 }
 0xcd8   : > { %7212 = vmatprep.mubr.msk.f32.mxu1 %vm8285_vm0, %v8286_v6 }
 0xcda   : > { %v2548_v13 = vpop.f32.mrb[64].mxu0 }
 0xcdb   : > { %v7197_v15 = vpop.f32.mrb[65].mxu0  ;;  %7213 = vmatmul.mubr.msk.f32.gmra.mrb[58].mxu1 %vm677_vm2, %v8563_v24 }
 0xcdc   : > { %7238 = vmatprep.mubr.msk.f32.mxu1 %vm8285_vm0, %v8286_v6 }
 0xcde   : > { %v2708_v11 = vpop.f32.mrb[66].mxu0 }
 0xcdf   : > { %v7225_v17 = vpop.f32.mrb[67].mxu0 }
 0xce2   : > { %v2713_v9 = vpop.f32.mrb[68].mxu0 }
 0xce3   : > { %v7875_v18 = vpack.c.bf16 %v2713_v9, %v2708_v11  ;;  %v7228_v20 = vpop.f32.mrb[69].mxu0 }
 0xce5   : > { %7876 = vmatpush3.bf16.msra.mxu0 %v7875_v18 }
 0xce6   : > { %v2718_v22 = vpop.f32.mrb[70].mxu0  ;;  %7251 = vmatprep.subr.mxu0 %v8286_v6 }
 0xce7   : > { %v7231_v19 = vpop.f32.mrb[71].mxu0 }
 0xce9   : > { %7252 = vmatpush3.msk.msra.mxu0 %vm1146_vm6, %v2718_v22 }
 0xcea   : > { %7877 = vmatprep.subr.bf16.mxu0 %v8284_v3 }
 0xd9a   : > { %v2450_v12 = vpop.f32.mrb[48].mxu1 }
 0xd9b   : > { %v8989_v24 = vadd.f32 %v2450_v12, %v8861_v38  ;;  %v7174_v23 = vpop.f32.mrb[49].mxu1 }
 0xd9e   : > { %v2455_v25 = vpop.f32.mrb[50].mxu1 }
 0xd9f   : > { %v8992_v27 = vadd.f32 %v2455_v25, %v8863_v41  ;;  %v7177_v14 = vpop.f32.mrb[51].mxu1 }
 0xda2   : > { %v2460_v28 = vpop.f32.mrb[52].mxu1 }
 0xda3   : > { %v8995_v29 = vadd.f32 %v2460_v28, %v8865_v44  ;;  %v7180_v30 = vpop.f32.mrb[53].mxu1  ;;  %v6333_v28 = vld [vmem:[%s9914_s7] ss:$0 sm:$0xff] }
 0xda6   : > { %v2623_v31 = vpop.f32.mrb[54].mxu1 }
 0xda7   : > { %v7208_v33 = vpop.f32.mrb[55].mxu1 }
 0xdaa   : > { %v2628_v34 = vpop.f32.mrb[56].mxu1 }
 0xdab   : > { %v7871_v35 = vpack.c.bf16 %v2628_v34, %v2623_v31  ;;  %v7211_v36 = vpop.f32.mrb[57].mxu1 }
 0xdad   : > { %7873 = vmatpush3.bf16.xpose.msk.msra.mxu1 %vm8588_vm5, %v7871_v35 }
 0xdae   : > { %v2633_v38 = vpop.f32.mrb[58].mxu1  ;;  %7236 = vmatprep.subr.mxu1 %v8286_v6 }
 0xdaf   : > { %v7214_v37 = vpop.f32.mrb[59].mxu1 }
 0xdb5   : > { %7237 = vmatpush3.xpose.msk.msra.mxu1 %vm1000_vm4, %v2633_v38 }
 0xdb6   : > { %7262 = vmatprep.subr.mxu1 %v8286_v6 }
 0xdb8   : > { %7239 = vmatmul.mubr.msk.f32.vlgmr.msra.gmra.mrb[60].mxu1 %vm1000_vm4, %v2538_v5 }
 0xdb9   : > { %7241 = vmatprep.mubr.msk.f32.mxu1 %vm8285_vm0, %v8286_v6  ;;  %7263 = vmatpush3.msra.mxu1 %v6329_v2 }
 0xdba   : > { %7883 = vmatprep.subr.bf16.mxu1 %v8284_v3 }
 0xdbc   : > { %7242 = vmatmul.mubr.msk.f32.gmra.mrb[62].mxu1 %vm1000_vm4, %v2543_v8 }
 0xdbd   : > { %7244 = vmatprep.mubr.msk.f32.mxu1 %vm8285_vm0, %v8286_v6 }
 0xdc0   : > { %7245 = vmatmul.mubr.msk.f32.gmra.mrb[64].mxu1 %vm1000_vm4, %v2548_v13 }
 0xdc1   : > { %7264 = vmatprep.mubr.msk.f32.mxu1 %vm8285_vm0, %v8286_v6 }
 0xe8b   : > { %v2806_v41 = vpop.f32.mrb[60].mxu1 }
 0xe8c   : > { %v2820_v44 = vmul.f32 0.35355338, %v2806_v41  ;;  %v7240_v39 = vpop.f32.mrb[61].mxu1 }
 0xe8e   : > { %v2823_v40 = vsel %vm1102_vm7, %v2820_v44, -inf }
 0xe8f   : > { %2824 = vmax.xlane.f32.xlu0 %v2823_v40  ;;  %v2811_v42 = vpop.f32.mrb[62].mxu1 }
 0xe90   : > { %v2821_v43 = vmul.f32 0.35355338, %v2811_v42  ;;  %v7243_v45 = vpop.f32.mrb[63].mxu1 }
 0xe92   : > { %v2826_v46 = vsel %vm1102_vm7, %v2821_v43, -inf }
 0xe93   : > { %2827 = vmax.xlane.f32.xlu1 %v2826_v46  ;;  %v2816_v47 = vpop.f32.mrb[64].mxu1 }
 0xe94   : > { %v2822_v48 = vmul.f32 0.35355338, %v2816_v47  ;;  %v7246_v49 = vpop.f32.mrb[65].mxu1 }
 0xe96   : > { %v2829_v50 = vsel %vm1109_vm8, %v2822_v48, -inf }
 0xe97   : > { %2830 = vmax.xlane.f32.xlu0 %v2829_v50 }
 0xf1c   : > { %v2825_v51 = vpop.xlane.xlu0 %2824 }
 0xf1d   : > { %v2832_v52 = vsub.f32 %v2820_v44, %v2825_v51 }
 0xf1f   : > { %v2835_v53 = vmul.f32 1.442695, %v2832_v52 }
 0xf20   : > { %v2828_v54 = vpop.xlane.xlu1 %2827 }
 0xf21   : > { %8128 = vpow2.f32 %v2835_v53  ;;  %v2833_v55 = vsub.f32 %v2821_v43, %v2828_v54 }
 0xf23   : > { %v2837_v56 = vmul.f32 1.442695, %v2833_v55  ;;  %v3114_v55 = vld [vmem:[%s9917_s10] sm:$0xff] }
 0xf24   : > { %v2831_v57 = vpop.xlane.xlu0 %2830 }
 0xf25   : > { %8130 = vpow2.f32 %v2837_v56  ;;  %v2834_v58 = vsub.f32 %v2822_v48, %v2831_v57  ;;  %v3115_v56 = vld [vmem:[%s9917_s10 + $0x8] sm:$0xff] }
 0xf26   : > { %v7878_v57 = vpack.c.bf16 %v3115_v56, %v3114_v55 }
 0xf27   : > { %v2839_v60 = vmul.f32 1.442695, %v2834_v58  ;;  %v3116_v58 = vld [vmem:[%s9917_s10 + $0x10] sm:$0xff] }
 0xf29   : > { %8132 = vpow2.f32 %v2839_v60  ;;  %v3117_v60 = vld [vmem:[%s9917_s10 + $0x18] sm:$0xff] }
 0xf2b   : > { %v8129_v62 = vpop.eup %8128 }
 0xf2c   : > { %v2841_v59 = vsel %vm1102_vm7, %v8129_v62, 0.0 }
 0xf2d   : > { %2842 = vadd.xlane.f32.xlu1 %v2841_v59  ;;  %v3241_v59 = vld [vmem:[%s9919_s12] sm:$0xff] }
 0xf2f   : > { %v8131_v61 = vpop.eup %8130 }
 0xf30   : > { %v2844_v63 = vsel %vm1102_vm7, %v8131_v61, 0.0 }
 0xf31   : > { %2845 = vadd.xlane.f32.xlu0 %v2844_v63 }
 0xf33   : > { %v8133_v0 = vpop.eup %8132 }
 0xf34   : > { %v2847_v1 = vsel %vm1109_vm8, %v8133_v0, 0.0 }
 0xf35   : > { %2848 = vadd.xlane.f32.xlu1 %v2847_v1 }
 0xfba   : > { %v2843_v4 = vpop.xlane.xlu1 %2842 }
 0xfbb   : > { %8134 = vrcp.f32 %v2843_v4 }
 0xfbe   : > { %v2846_v5 = vpop.xlane.xlu0 %2845 }
 0xfbf   : > { %8136 = vrcp.f32 %v2846_v5 }
 0xfc2   : > { %v2849_v7 = vpop.xlane.xlu1 %2848 }
 0xfc3   : > { %8138 = vrcp.f32 %v2849_v7 }
 0xfc5   : > { %v8135_v8 = vpop.eup %8134 }
 0xfc6   : > { %v2853_v10 = vmul.f32 %v8135_v8, %v8129_v62  ;;  %v7881_v62 = vpack.c.bf16 %v3117_v60, %v3116_v58 }
 0xfc8   : > { %7254 = vmatmul.mubr.msk.f32.vlgmr.msra.gmra.mrb[72].mxu0 %vm1102_vm7, %v2853_v10 }
 0xfc9   : > { %v8137_v13 = vpop.eup %8136  ;;  %7256 = vmatprep.mubr.msk.f32.mxu0 %vm8285_vm0, %v8286_v6  ;;  %7879 = vmatpush3.bf16.msra.mxu0 %v7878_v57 }
 0xfca   : > { %v2854_v15 = vmul.f32 %v8137_v13, %v8131_v61  ;;  %7880 = vmatprep.subr.bf16.mxu0 %v8284_v3  ;;  %v3242_v61 = vld [vmem:[%s9919_s12 + $0x8] sm:$0xff] }
 0xfcb   : > { %v7884_v63 = vpack.c.bf16 %v3242_v61, %v3241_v59 }
 0xfcc   : > { %7257 = vmatmul.mubr.msk.f32.gmra.mrb[74].mxu0 %vm1102_vm7, %v2854_v15 }
 0xfcd   : > { %v8139_v11 = vpop.eup %8138  ;;  %7259 = vmatprep.mubr.msk.f32.mxu0 %vm8285_vm0, %v8286_v6  ;;  %7882 = vmatpush3.bf16.msra.mxu0 %v7881_v62 }
 0xfce   : > { %v2855_v17 = vmul.f32 %v8139_v11, %v8133_v0  ;;  %7907 = vmatprep.subr.bf16.mxu0 %v8284_v3  ;;  %v6334_v11 = vld [vmem:[%s9915_s8] ss:$0 sm:$0xff] }
 0xfd0   : > { %7260 = vmatmul.mubr.msk.f32.gmra.mrb[76].mxu0 %vm1102_vm7, %v2855_v17 }
 0xfd1   : > { %7281 = vmatprep.mubr.msk.f32.mxu0 %vm8285_vm0, %v8286_v6 }
0x109b   : > { %v2934_v9 = vpop.f32.mrb[72].mxu0 }
0x109c   : > { %v7255_v18 = vpop.f32.mrb[73].mxu0  ;;  %7265 = vmatmul.mubr.msk.f32.vlgmr.msra.gmra.mrb[66].mxu1 %vm1000_vm4, %v2934_v9  ;;  %v6335_v9 = vld [vmem:[%s9916_s9] ss:$0 sm:$0xff] }
0x109d   : > { %7267 = vmatprep.mubr.msk.f32.mxu1 %vm8285_vm0, %v8286_v6  ;;  %7885 = vmatpush3.bf16.msra.mxu1 %v7884_v63 }
0x109e   : > { %7886 = vmatprep.subr.bf16.mxu1 %v8284_v3 }
0x109f   : > { %v2939_v20 = vpop.f32.mrb[74].mxu0 }
0x10a0   : > { %v7258_v22 = vpop.f32.mrb[75].mxu0  ;;  %7268 = vmatmul.mubr.msk.f32.gmra.mrb[68].mxu1 %vm1000_vm4, %v2939_v20 }
0x10a1   : > { %7270 = vmatprep.mubr.msk.f32.mxu1 %vm8285_vm0, %v8286_v6 }
0x10a3   : > { %v2944_v19 = vpop.f32.mrb[76].mxu0 }
0x10a4   : > { %v7261_v12 = vpop.f32.mrb[77].mxu0  ;;  %7271 = vmatmul.mubr.msk.f32.gmra.mrb[70].mxu1 %vm1000_vm4, %v2944_v19 }
0x10a5   : > { %7322 = vmatprep.mubr.msk.f32.mxu1 %vm8285_vm0, %v8286_v6 }
0x116f   : > { %v3025_v23 = vpop.f32.mrb[66].mxu1 }
0x1170   : > { %v3039_v25 = vadd.f32 %v3025_v23, %v8989_v24  ;;  %v7266_v14 = vpop.f32.mrb[67].mxu1 }
0x1172   : > { %v3042_v30 = vadd.f32 %v3039_v25, %v8472_v16 }
0x1173   : > { %v3030_v31 = vpop.f32.mrb[68].mxu1 }
0x1174   : > { %v9044_v33 = vadd.f32 %v6333_v28, %v3042_v30  ;;  %v3040_v34 = vadd.f32 %v3030_v31, %v8992_v27  ;;  %v7269_v35 = vpop.f32.mrb[69].mxu1  ;;  %v3243_v31 = vld [vmem:[%s9919_s12 + $0x10] sm:$0xff] }
0x1176   : > { %v3043_v36 = vadd.f32 %v3040_v34, %v8479_v21  ;;  %v3057_v38 = vsel %vm677_vm2, %v9044_v33, 0.0  ;;  %v3244_v34 = vld [vmem:[%s9919_s12 + $0x18] sm:$0xff] }
0x1177   : > { %3058 = vadd.xlane.f32.xlu0 %v3057_v38  ;;  %v3035_v24 = vpop.f32.mrb[70].mxu1  ;;  %v7887_v35 = vpack.c.bf16 %v3244_v34, %v3243_v31  ;;  %v3246_v38 = vld [vmem:[%s9919_s12 + $0x28] sm:$0xff]  ;;  %v6340_v34 = vld [vmem:[%s9920_s13] ss:$0 sm:$0xff] }
0x1178   : > { %v9050_v37 = vadd.f32 %v6333_v28, %v3043_v36  ;;  %v3041_v41 = vadd.f32 %v3035_v24, %v8995_v29  ;;  %v7272_v44 = vpop.f32.mrb[71].mxu1  ;;  %v3245_v36 = vld [vmem:[%s9919_s12 + $0x20] sm:$0xff] }
0x1179   : > { %7888 = vmatpush3.bf16.msra.mxu1 %v7887_v35  ;;  %v7890_v24 = vpack.c.bf16 %v3246_v38, %v3245_v36  ;;  %v3248_v44 = vld [vmem:[%s9919_s12 + $0x38] sm:$0xff] }
0x117a   : > { %v3044_v16 = vadd.f32 %v3041_v41, %v8486_v26  ;;  %v3060_v39 = vsel %vm677_vm2, %v9050_v37, 0.0  ;;  %7889 = vmatprep.subr.bf16.mxu1 %v8284_v3  ;;  %v3247_v41 = vld [vmem:[%s9919_s12 + $0x30] sm:$0xff] }
0x117b   : > { %3061 = vadd.xlane.f32.xlu1 %v3060_v39  ;;  %v3249_v39 = vld [vmem:[%s9919_s12 + $0x40] sm:$0xff] }
0x117c   : > { %v9056_v27 = vadd.f32 %v6333_v28, %v3044_v16  ;;  %v7893_v16 = vpack.c.bf16 %v3248_v44, %v3247_v41 }
0x117d   : > { %7891 = vmatpush3.bf16.msra.mxu1 %v7890_v24 }
0x117e   : > { %v3063_v21 = vsel %vm684_vm3, %v9056_v27, 0.0  ;;  %7892 = vmatprep.subr.bf16.mxu1 %v8284_v3 }
0x117f   : > { %3064 = vadd.xlane.f32.xlu0 %v3063_v21  ;;  %v3250_v21 = vld [vmem:[%s9919_s12 + $0x48] sm:$0xff] }
0x1181   : > { %7894 = vmatpush3.bf16.msra.mxu1 %v7893_v16 }
0x1182   : > { %7895 = vmatprep.subr.bf16.mxu1 %v8284_v3 }
0x1204   : > { %v3059_v40 = vpop.xlane.xlu0 %3058 }
0x1205   : > { %v3066_v42 = vmul.f32 0.03125, %v3059_v40  ;;  %v7896_v40 = vpack.c.bf16 %v3250_v21, %v3249_v39 }
0x1207   : > { %v3069_v43 = vsub.f32 %v9044_v33, %v3066_v42  ;;  %7897 = vmatpush3.bf16.msra.mxu1 %v7896_v40  ;;  %v3251_v42 = vld [vmem:[%s9919_s12 + $0x50] sm:$0xff] }
0x1208   : > { %v3062_v45 = vpop.xlane.xlu1 %3061  ;;  %7898 = vmatprep.subr.bf16.mxu1 %v8284_v3 }
0x1209   : > { %v3067_v46 = vmul.f32 0.03125, %v3062_v45  ;;  %v3072_v29 = vmul.f32 %v3069_v43, %v3069_v43 }
0x120b   : > { %v3070_v47 = vsub.f32 %v9050_v37, %v3067_v46  ;;  %v3075_v26 = vsel %vm677_vm2, %v3072_v29, 0.0  ;;  %v3253_v46 = vld [vmem:[%s9919_s12 + $0x60] sm:$0xff]  ;;  %v3254_v29 = vld [vmem:[%s9919_s12 + $0x68] sm:$0xff] }
0x120c   : > { %3076 = vadd.xlane.f32.xlu1 %v3075_v26  ;;  %v3065_v48 = vpop.xlane.xlu0 %3064  ;;  %v3255_v26 = vld [vmem:[%s9919_s12 + $0x70] sm:$0xff] }
0x120d   : > { %v3068_v49 = vmul.f32 0.03125, %v3065_v48  ;;  %v3073_v50 = vmul.f32 %v3070_v47, %v3070_v47  ;;  %v3256_v48 = vld [vmem:[%s9919_s12 + $0x78] sm:$0xff] }
0x120f   : > { %v3071_v51 = vsub.f32 %v9056_v27, %v3068_v49  ;;  %v3078_v52 = vsel %vm677_vm2, %v3073_v50, 0.0  ;;  %v7905_v49 = vpack.c.bf16 %v3256_v48, %v3255_v26  ;;  %v6336_v50 = vld [vmem:[%s9918_s11] ss:$0 sm:$0xff] }
0x1210   : > { %3079 = vadd.xlane.f32.xlu0 %v3078_v52 }
0x1211   : > { %v3074_v53 = vmul.f32 %v3071_v51, %v3071_v51 }
0x1213   : > { %v3081_v54 = vsel %vm684_vm3, %v3074_v53, 0.0 }
0x1214   : > { %3082 = vadd.xlane.f32.xlu1 %v3081_v54 }
0x1299   : > { %v3077_v0 = vpop.xlane.xlu1 %3076 }
0x129a   : > { %v3084_v1 = vmul.f32 0.03125, %v3077_v0 }
0x129c   : > { %v3087_v2 = vadd.f32 1e-05, %v3084_v1 }
0x129d   : > { %v3080_v4 = vpop.xlane.xlu0 %3079 }
0x129e   : > { %8140 = vrsqrt.f32 %v3087_v2  ;;  %v3085_v5 = vmul.f32 0.03125, %v3080_v4 }
0x12a0   : > { %v3088_v7 = vadd.f32 1e-05, %v3085_v5 }
0x12a1   : > { %v3083_v8 = vpop.xlane.xlu1 %3082 }
0x12a2   : > { %8142 = vrsqrt.f32 %v3088_v7  ;;  %v3086_v10 = vmul.f32 0.03125, %v3083_v8 }
0x12a4   : > { %v3089_v13 = vadd.f32 1e-05, %v3086_v10 }
0x12a6   : > { %8144 = vrsqrt.f32 %v3089_v13 }
0x12a8   : > { %v8141_v15 = vpop.eup %8140 }
0x12a9   : > { %v3093_v17 = vmul.f32 %v8141_v15, %v3069_v43  ;;  %v3252_v43 = vld [vmem:[%s9919_s12 + $0x58] sm:$0xff] }
0x12aa   : > { %v7899_v45 = vpack.c.bf16 %v3252_v43, %v3251_v42 }
0x12ab   : > { %v3102_v18 = vmul.f32 %v6334_v11, %v3093_v17 }
0x12ac   : > { %v8143_v20 = vpop.eup %8142  ;;  %7900 = vmatpush3.bf16.msra.mxu1 %v7899_v45 }
0x12ad   : > { %v3111_v22 = vadd.f32 %v6335_v9, %v3102_v18  ;;  %v3094_v19 = vmul.f32 %v8143_v20, %v3070_v47  ;;  %v7902_v47 = vpack.c.bf16 %v3254_v29, %v3253_v46  ;;  %7901 = vmatprep.subr.bf16.mxu1 %v8284_v3 }
0x12af   : > { %7282 = vmatmul.mubr.msk.f32.vlgmr.msra.gmra.mrb[78].mxu0 %vm677_vm2, %v3111_v22  ;;  %v3103_v12 = vmul.f32 %v6334_v11, %v3094_v19 }
0x12b0   : > { %v8145_v23 = vpop.eup %8144  ;;  %7284 = vmatprep.mubr.msk.f32.mxu0 %vm8285_vm0, %v8286_v6  ;;  %7903 = vmatpush3.bf16.msra.mxu1 %v7902_v47 }
0x12b1   : > { %v3112_v25 = vadd.f32 %v6335_v9, %v3103_v12  ;;  %v3095_v14 = vmul.f32 %v8145_v23, %v3071_v51  ;;  %7904 = vmatprep.subr.bf16.mxu1 %v8284_v3 }
0x12b3   : > { %7285 = vmatmul.mubr.msk.f32.gmra.mrb[80].mxu0 %vm677_vm2, %v3112_v25  ;;  %v3104_v28 = vmul.f32 %v6334_v11, %v3095_v14 }
0x12b4   : > { %7287 = vmatprep.mubr.msk.f32.mxu0 %vm8285_vm0, %v8286_v6  ;;  %7906 = vmatpush3.bf16.msra.mxu1 %v7905_v49 }
0x12b5   : > { %v3113_v30 = vadd.f32 %v6335_v9, %v3104_v28  ;;  %7925 = vmatprep.subr.bf16.mxu1 %v8284_v3 }
0x12b7   : > { %7288 = vmatmul.mubr.msk.f32.gmra.mrb[82].mxu0 %vm677_vm2, %v3113_v30 }
0x12b8   : > { %7339 = vmatprep.mubr.msk.f32.mxu0 %vm8285_vm0, %v8286_v6 }
0x1382   : > { %v3200_v51 = vpop.f32.mrb[78].mxu0 }
0x1383   : > { %v3201_v52 = vadd.f32 %v6336_v50, %v3200_v51  ;;  %v7283_v53 = vpop.f32.mrb[79].mxu0 }
0x1385   : > { %v3217_v54 = vmul.f32 0.044715, %v3201_v52  ;;  %v3214_v9 = vmul.f32 0.5, %v3201_v52 }
0x1386   : > { %v3205_v55 = vpop.f32.mrb[80].mxu0 }
0x1387   : > { %v3220_v56 = vmul.f32 %v3217_v54, %v3201_v52  ;;  %v3206_v57 = vadd.f32 %v6336_v50, %v3205_v55  ;;  %v7286_v58 = vpop.f32.mrb[81].mxu0 }
0x1388   : > { %v6346_v58 = vld [vmem:[%s9912_s5 + $0x188] sm:$0xff] }
0x1389   : > { %v3223_v60 = vmul.f32 %v3220_v56, %v3201_v52  ;;  %v3218_v62 = vmul.f32 0.044715, %v3206_v57  ;;  %v3215_v19 = vmul.f32 0.5, %v3206_v57 }
0x138a   : > { %v3210_v59 = vpop.f32.mrb[82].mxu0 }
0x138b   : > { %v3226_v61 = vadd.f32 %v3223_v60, %v3201_v52  ;;  %v3221_v63 = vmul.f32 %v3218_v62, %v3206_v57  ;;  %v3211_v0 = vadd.f32 %v6336_v50, %v3210_v59  ;;  %v7289_v1 = vpop.f32.mrb[83].mxu0  ;;  %v6347_v62 = vld [vmem:[%s9912_s5 + $0x190] sm:$0xff]  ;;  %v6348_v59 = vld [vmem:[%s9912_s5 + $0x198] sm:$0xff] }
0x138d   : > { %v3229_v2 = vmul.f32 0.7978846, %v3226_v61  ;;  %v3219_v4 = vmul.f32 0.044715, %v3211_v0  ;;  %v3224_v5 = vmul.f32 %v3221_v63, %v3206_v57  ;;  %v3216_v14 = vmul.f32 0.5, %v3211_v0 }
0x138e   : > { %v7911_v61 = vpack.c.bf16 %v6348_v59, %v6347_v62  ;;  %v6379_v59 = vld [vmem:[%s9912_s5 + $0x1b0] sm:$0xff] }
0x138f   : > { %8146 = vtanh.f32 %v3229_v2  ;;  %v3222_v7 = vmul.f32 %v3219_v4, %v3211_v0  ;;  %v3227_v8 = vadd.f32 %v3224_v5, %v3206_v57  ;;  %v6345_v57 = vld [vmem:[%s9912_s5 + $0x180] sm:$0xff] }
0x1390   : > { %v7908_v60 = vpack.c.bf16 %v6346_v58, %v6345_v57 }
0x1391   : > { %v3230_v10 = vmul.f32 0.7978846, %v3227_v8  ;;  %v3225_v13 = vmul.f32 %v3222_v7, %v3211_v0 }
0x1392   : > { %7909 = vmatpush3.bf16.msra.mxu0 %v7908_v60 }
0x1393   : > { %8148 = vtanh.f32 %v3230_v10  ;;  %v3228_v15 = vadd.f32 %v3225_v13, %v3211_v0  ;;  %7910 = vmatprep.subr.bf16.mxu0 %v8284_v3 }
0x1395   : > { %v3231_v11 = vmul.f32 0.7978846, %v3228_v15  ;;  %v6343_v15 = vld [vmem:[%s9948_s3 + $0x1] ss:$0 sm:$0xff]  ;;  %s6133_s3 = sshll.u32 %s567_s1, 4  ;;  %s9867_s3 = int_to_ptr.vmem [resolvable:$true] %s6133_s3 }
0x1396   : > { %7912 = vmatpush3.bf16.msra.mxu0 %v7911_v61  ;;  %v6380_v61 = vld [vmem:[%s9912_s5 + $0x1b8] sm:$0xff]  ;;  %s8220_s25 = scalar_lea.vmem %s9867_s3, 16  ;;  %p8227_p0 = scmp.lt.s32.totalorder %s9867_s3, %s8225_s29 }
0x1397   : > { %8150 = vtanh.f32 %v3231_v11  ;;  %7913 = vmatprep.subr.bf16.mxu0 %v8284_v3  ;;  %p8221_p11 = scmp.ne.s32.totalorder %s9867_s3, %s8220_s25 }
0x1399   : > { %v8147_v17 = vpop.eup %8146  ;;  %p8222_p12 = pnand %p8221_p11, %p8421_p5 }
0x139a   : > { %v3235_v18 = vadd.f32 1.0, %v8147_v17  ;;  %v6352_v17 = vld [vmem:[%s9912_s5 + $0x200] sm:$0xff] }
0x139b   : > { %p8223_p13 = pneg %p8222_p12 }
0x139c   : > { %v3238_v20 = vmul.f32 %v3235_v18, %v3214_v9  ;;  %v6353_v9 = vld [vmem:[%s9912_s5 + $0x208] sm:$0xff]  ;;  %v6344_v18 = vld [vmem:[%s9949_s4 + $0x1] ss:$0 sm:$0xff]  ;;  %s8226_s4 = scalar_lea.vmem %s8225_s29, 32 }
0x139d   : > { %v8149_v22 = vpop.eup %8148  ;;  %p8228_p1 = scmp.lt.s32.totalorder %s8226_s4, %s8220_s25 }
0x139e   : > { %7323 = vmatmul.mubr.f32.vlgmr.msra.gmra.mrb[72].mxu1 %v3238_v20  ;;  %v3236_v12 = vadd.f32 1.0, %v8149_v22 }
0x139f   : > { %7325 = vmatprep.mubr.msk.f32.mxu1 %vm8285_vm0, %v8286_v6  ;;  %p8229_p2 = por %p8228_p1, %p8227_p0 }
0x13a0   : > { %v3239_v23 = vmul.f32 %v3236_v12, %v3215_v19  ;;  %v7914_v19 = vpack.c.bf16 %v6353_v9, %v6352_v17 }
0x13a1   : > { %v8151_v25 = vpop.eup %8150  ;;  %p8230_p3 = pnand %p8229_p2, %p8223_p13 }
0x13a2   : > { %7326 = vmatmul.mubr.f32.gmra.mrb[74].mxu1 %v3239_v23  ;;  %v3237_v28 = vadd.f32 1.0, %v8151_v25  ;;  %v6354_v25 = vld [vmem:[%s9912_s5 + $0x210] sm:$0xff] }
0x13a3   : > { %7328 = vmatprep.mubr.msk.f32.mxu1 %vm8285_vm0, %v8286_v6 }
0x13a4   : > { %v3240_v30 = vmul.f32 %v3237_v28, %v3216_v14  ;;  %v6355_v14 = vld [vmem:[%s9912_s5 + $0x218] sm:$0xff] }
0x13a6   : > { %7329 = vmatmul.mubr.f32.gmra.mrb[76].mxu1 %v3240_v30 }
0x13a7   : > { %7388 = vmatprep.mubr.msk.f32.mxu1 %vm8285_vm0, %v8286_v6 }
0x1471   : > { %v3323_v31 = vpop.f32.mrb[72].mxu1 }
0x1472   : > { %v3337_v35 = vadd.f32 %v3323_v31, %v9044_v33  ;;  %v7324_v36 = vpop.f32.mrb[73].mxu1  ;;  %v7917_v31 = vpack.c.bf16 %v6355_v14, %v6354_v25 }
0x1474   : > { %v9164_v38 = vadd.f32 %v6340_v34, %v3337_v35 }
0x1475   : > { %v3328_v24 = vpop.f32.mrb[74].mxu1 }
0x1476   : > { %v3338_v41 = vadd.f32 %v3328_v24, %v9050_v37  ;;  %v7327_v44 = vpop.f32.mrb[75].mxu1  ;;  %v3354_v16 = vsel %vm677_vm2, %v9164_v38, 0.0 }
0x1477   : > { %3355 = vadd.xlane.f32.xlu0 %v3354_v16  ;;  %v6360_v44 = vld [vmem:[%s9912_s5 + $0x288] sm:$0xff] }
0x1478   : > { %v9169_v39 = vadd.f32 %v6340_v34, %v3338_v41  ;;  %v6359_v41 = vld [vmem:[%s9912_s5 + $0x280] sm:$0xff] }
0x1479   : > { %v3333_v21 = vpop.f32.mrb[76].mxu1  ;;  %v7920_v16 = vpack.c.bf16 %v6360_v44, %v6359_v41 }
0x147a   : > { %v3339_v40 = vadd.f32 %v3333_v21, %v9056_v27  ;;  %v7330_v42 = vpop.f32.mrb[77].mxu1  ;;  %v3357_v33 = vsel %vm677_vm2, %v9169_v39, 0.0  ;;  %v6361_v21 = vld [vmem:[%s9912_s5 + $0x290] sm:$0xff] }
0x147b   : > { %3358 = vadd.xlane.f32.xlu1 %v3357_v33 }
0x147c   : > { %v9174_v43 = vadd.f32 %v6340_v34, %v3339_v40  ;;  %v6362_v40 = vld [vmem:[%s9912_s5 + $0x298] sm:$0xff] }
0x147d   : > { %v7923_v42 = vpack.c.bf16 %v6362_v40, %v6361_v21 }
0x147e   : > { %v3360_v37 = vsel %vm684_vm3, %v9174_v43, 0.0 }
0x147f   : > { %3361 = vadd.xlane.f32.xlu0 %v3360_v37 }
0x1504   : > { %v3356_v45 = vpop.xlane.xlu0 %3355 }
0x1505   : > { %v3363_v46 = vmul.f32 0.03125, %v3356_v45 }
0x1507   : > { %v3366_v29 = vsub.f32 %v9164_v38, %v3363_v46 }
0x1508   : > { %v3359_v47 = vpop.xlane.xlu1 %3358 }
0x1509   : > { %v3364_v26 = vmul.f32 0.03125, %v3359_v47  ;;  %v3369_v48 = vmul.f32 %v3366_v29, %v3366_v29 }
0x150b   : > { %v3367_v27 = vsub.f32 %v9169_v39, %v3364_v26  ;;  %v3372_v49 = vsel %vm677_vm2, %v3369_v48, 0.0 }
0x150c   : > { %3373 = vadd.xlane.f32.xlu1 %v3372_v49  ;;  %v3362_v50 = vpop.xlane.xlu0 %3361 }
0x150d   : > { %v3365_v51 = vmul.f32 0.03125, %v3362_v50  ;;  %v3370_v52 = vmul.f32 %v3367_v27, %v3367_v27 }
0x150f   : > { %v3368_v53 = vsub.f32 %v9174_v43, %v3365_v51  ;;  %v3375_v54 = vsel %vm677_vm2, %v3370_v52, 0.0 }
0x1510   : > { %3376 = vadd.xlane.f32.xlu0 %v3375_v54 }
0x1511   : > { %v3371_v55 = vmul.f32 %v3368_v53, %v3368_v53 }
0x1513   : > { %v3378_v56 = vsel %vm684_vm3, %v3371_v55, 0.0  ;;  %v6377_v55 = vld [vmem:[%s9912_s5 + $0x1a0] sm:$0xff] }
0x1514   : > { %3379 = vadd.xlane.f32.xlu1 %v3378_v56  ;;  %v6378_v56 = vld [vmem:[%s9912_s5 + $0x1a8] sm:$0xff] }
0x1515   : > { %v7933_v58 = vpack.c.bf16 %v6378_v56, %v6377_v55 }
0x1599   : > { %v3374_v63 = vpop.xlane.xlu1 %3373 }
0x159a   : > { %v3381_v0 = vmul.f32 0.03125, %v3374_v63 }
0x159c   : > { %v3384_v1 = vadd.f32 1e-05, %v3381_v0  ;;  %v7936_v0 = vpack.c.bf16 %v6380_v61, %v6379_v59  ;;  %v6385_v59 = vld [vmem:[%s9912_s5 + $0x228] sm:$0xff] }
0x159d   : > { %v3377_v2 = vpop.xlane.xlu0 %3376 }
0x159e   : > { %8152 = vrsqrt.f32 %v3384_v1  ;;  %v3382_v4 = vmul.f32 0.03125, %v3377_v2  ;;  %v6391_v2 = vld [vmem:[%s9912_s5 + $0x2a0] sm:$0xff] }
0x15a0   : > { %v3385_v5 = vadd.f32 1e-05, %v3382_v4  ;;  %v6392_v4 = vld [vmem:[%s9912_s5 + $0x2a8] sm:$0xff] }
0x15a1   : > { %v3380_v7 = vpop.xlane.xlu1 %3379 }
0x15a2   : > { %8154 = vrsqrt.f32 %v3385_v5  ;;  %v3383_v8 = vmul.f32 0.03125, %v3380_v7  ;;  %v7945_v5 = vpack.c.bf16 %v6392_v4, %v6391_v2  ;;  %v6393_v7 = vld [vmem:[%s9912_s5 + $0x2b0] sm:$0xff]  ;;  %v6387_v2 = vld [vmem:[%s9912_s5 + $0x238] sm:$0xff] }
0x15a4   : > { %v3386_v10 = vadd.f32 1e-05, %v3383_v8  ;;  %v6394_v8 = vld [vmem:[%s9912_s5 + $0x2b8] sm:$0xff] }
0x15a6   : > { %8156 = vrsqrt.f32 %v3386_v10  ;;  %v7948_v10 = vpack.c.bf16 %v6394_v8, %v6393_v7 }
0x15a8   : > { %v8153_v13 = vpop.eup %8152 }
0x15a9   : > { %v3390_v11 = vmul.f32 %v8153_v13, %v3366_v29 }
0x15ab   : > { %v3399_v20 = vmul.f32 %v6343_v15, %v3390_v11 }
0x15ac   : > { %v8155_v22 = vpop.eup %8154 }
0x15ad   : > { %v9210_v12 = vadd.f32 %v6344_v18, %v3399_v20  ;;  %v3391_v23 = vmul.f32 %v8155_v22, %v3367_v27 }
0x15af   : > { %v3400_v28 = vmul.f32 %v6343_v15, %v3391_v23  ;;  %7340 = vmatmul.mubr.msk.f32.vlgmr.msra.gmra.mrb[84].mxu0 %vm677_vm2, %v9210_v12 }
0x15b0   : > { %v8157_v30 = vpop.eup %8156  ;;  %7342 = vmatprep.mubr.msk.f32.mxu0 %vm8285_vm0, %v8286_v6  ;;  %7915 = vmatpush3.bf16.msra.mxu0 %v7914_v19 }
0x15b1   : > { %v9222_v34 = vadd.f32 %v6344_v18, %v3400_v28  ;;  %v3392_v35 = vmul.f32 %v8157_v30, %v3368_v53  ;;  %7916 = vmatprep.subr.bf16.mxu0 %v8284_v3 }
0x15b3   : > { %v3401_v36 = vmul.f32 %v6343_v15, %v3392_v35  ;;  %7343 = vmatmul.mubr.msk.f32.gmra.mrb[86].mxu0 %vm677_vm2, %v9222_v34 }
0x15b4   : > { %7345 = vmatprep.mubr.msk.f32.mxu0 %vm8285_vm0, %v8286_v6  ;;  %7918 = vmatpush3.bf16.msra.mxu0 %v7917_v31 }
0x15b5   : > { %v9229_v24 = vadd.f32 %v6344_v18, %v3401_v36  ;;  %7919 = vmatprep.subr.bf16.mxu0 %v8284_v3 }
0x15b7   : > { %7346 = vmatmul.mubr.msk.f32.gmra.mrb[88].mxu0 %vm677_vm2, %v9229_v24 }
0x15b8   : > { %7356 = vmatprep.mubr.msk.f32.mxu0 %vm8285_vm0, %v8286_v6 }
0x15bb   : > { %7357 = vmatmul.mubr.msk.f32.vlgmr.msra.gmra.mrb[90].mxu0 %vm677_vm2, %v9210_v12 }
0x15bc   : > { %7359 = vmatprep.mubr.msk.f32.mxu0 %vm8285_vm0, %v8286_v6  ;;  %7921 = vmatpush3.bf16.msra.mxu0 %v7920_v16 }
0x15bd   : > { %7922 = vmatprep.subr.bf16.mxu0 %v8284_v3 }
0x15bf   : > { %7360 = vmatmul.mubr.msk.f32.gmra.mrb[92].mxu0 %vm677_vm2, %v9222_v34 }
0x15c0   : > { %7362 = vmatprep.mubr.msk.f32.mxu0 %vm8285_vm0, %v8286_v6  ;;  %7924 = vmatpush3.bf16.msra.mxu0 %v7923_v42 }
0x15c1   : > { %7929 = vmatprep.subr.bf16.mxu0 %v8284_v3 }
0x15c3   : > { %7363 = vmatmul.mubr.msk.f32.gmra.mrb[94].mxu0 %vm677_vm2, %v9229_v24 }
0x15c4   : > { %7373 = vmatprep.mubr.msk.f32.mxu0 %vm8285_vm0, %v8286_v6 }
0x15c7   : > { %7374 = vmatmul.mubr.msk.f32.vlgmr.msra.gmra.mrb[96].mxu0 %vm677_vm2, %v9210_v12 }
0x15c8   : > { %7376 = vmatprep.mubr.msk.f32.mxu0 %vm8285_vm0, %v8286_v6 }
0x15cb   : > { %7377 = vmatmul.mubr.msk.f32.gmra.mrb[98].mxu0 %vm677_vm2, %v9222_v34 }
0x15cc   : > { %7379 = vmatprep.mubr.msk.f32.mxu0 %vm8285_vm0, %v8286_v6 }
0x15cf   : > { %7380 = vmatmul.mubr.msk.f32.gmra.mrb[100].mxu0 %vm677_vm2, %v9229_v24 }
0x15d0   : > { %7403 = vmatprep.mubr.msk.f32.mxu0 %vm8285_vm0, %v8286_v6 }
0x1682   : > { %v3491_v33 = vpop.f32.mrb[84].mxu0 }
0x1683   : > { %v7341_v37 = vpop.f32.mrb[85].mxu0 }
0x1686   : > { %v3496_v45 = vpop.f32.mrb[86].mxu0 }
0x1687   : > { %v7344_v46 = vpop.f32.mrb[87].mxu0 }
0x168a   : > { %v3501_v29 = vpop.f32.mrb[88].mxu0 }
0x168b   : > { %v7347_v47 = vpop.f32.mrb[89].mxu0 }
0x168e   : > { %v3576_v26 = vpop.f32.mrb[90].mxu0 }
0x168f   : > { %v7358_v48 = vpop.f32.mrb[91].mxu0 }
0x1692   : > { %v3581_v27 = vpop.f32.mrb[92].mxu0 }
0x1693   : > { %v7926_v49 = vpack.c.bf16 %v3581_v27, %v3576_v26  ;;  %v7361_v50 = vpop.f32.mrb[93].mxu0 }
0x1695   : > { %7928 = vmatpush3.bf16.xpose.msk.msra.mxu1 %vm8588_vm5, %v7926_v49 }
0x1696   : > { %v3586_v51 = vpop.f32.mrb[94].mxu0  ;;  %7386 = vmatprep.subr.mxu1 %v8286_v6 }
0x1697   : > { %v7364_v52 = vpop.f32.mrb[95].mxu0 }
0x169a   : > { %v3661_v53 = vpop.f32.mrb[96].mxu0 }
0x169b   : > { %v7375_v54 = vpop.f32.mrb[97].mxu0 }
0x169d   : > { %7387 = vmatpush3.xpose.msk.msra.mxu1 %vm1000_vm4, %v3586_v51 }
0x169e   : > { %v3666_v57 = vpop.f32.mrb[98].mxu0  ;;  %7932 = vmatprep.subr.bf16.mxu1 %v8284_v3 }
0x169f   : > { %v7930_v60 = vpack.c.bf16 %v3666_v57, %v3661_v53  ;;  %v7378_v62 = vpop.f32.mrb[99].mxu0 }
0x16a0   : > { %7389 = vmatmul.mubr.msk.f32.vlgmr.msra.gmra.mrb[78].mxu1 %vm1000_vm4, %v3491_v33  ;;  %v6384_v62 = vld [vmem:[%s9912_s5 + $0x220] sm:$0xff] }
0x16a1   : > { %7931 = vmatpush3.bf16.msra.mxu0 %v7930_v60  ;;  %7391 = vmatprep.mubr.msk.f32.mxu1 %vm8285_vm0, %v8286_v6 }
0x16a2   : > { %v3671_v63 = vpop.f32.mrb[100].mxu0  ;;  %7401 = vmatprep.subr.mxu0 %v8286_v6  ;;  %7934 = vmatpush3.bf16.msra.mxu1 %v7933_v58 }
0x16a3   : > { %v7381_v1 = vpop.f32.mrb[101].mxu0  ;;  %7935 = vmatprep.subr.bf16.mxu1 %v8284_v3 }
0x16a4   : > { %7392 = vmatmul.mubr.msk.f32.gmra.mrb[80].mxu1 %vm1000_vm4, %v3496_v45  ;;  %v6386_v1 = vld [vmem:[%s9912_s5 + $0x230] sm:$0xff] }
0x16a5   : > { %7402 = vmatpush3.msk.msra.mxu0 %vm1146_vm6, %v3671_v63  ;;  %7394 = vmatprep.mubr.msk.f32.mxu1 %vm8285_vm0, %v8286_v6  ;;  %v7939_v63 = vpack.c.bf16 %v6385_v59, %v6384_v62 }
0x16a6   : > { %7937 = vmatpush3.bf16.msra.mxu1 %v7936_v0  ;;  %7938 = vmatprep.subr.bf16.mxu0 %v8284_v3 }
0x16a7   : > { %7944 = vmatprep.subr.bf16.mxu1 %v8284_v3 }
0x16a8   : > { %7395 = vmatmul.mubr.msk.f32.gmra.mrb[82].mxu1 %vm1000_vm4, %v3501_v29 }
0x16a9   : > { %7420 = vmatprep.mubr.msk.f32.mxu1 %vm8285_vm0, %v8286_v6 }
0x16ac   : > { %7421 = vmatmul.mubr.msk.f32.vlgmr.msra.gmra.mrb[84].mxu1 %vm677_vm2, %v9210_v12 }
0x16ad   : > { %7423 = vmatprep.mubr.msk.f32.mxu1 %vm8285_vm0, %v8286_v6  ;;  %7946 = vmatpush3.bf16.msra.mxu1 %v7945_v5  ;;  %v7942_v5 = vpack.c.bf16 %v6387_v2, %v6386_v1 }
0x16ae   : > { %7947 = vmatprep.subr.bf16.mxu1 %v8284_v3 }
0x16b0   : > { %7424 = vmatmul.mubr.msk.f32.gmra.mrb[86].mxu1 %vm677_vm2, %v9222_v34 }
0x16b1   : > { %7426 = vmatprep.mubr.msk.f32.mxu1 %vm8285_vm0, %v8286_v6  ;;  %7949 = vmatpush3.bf16.msra.mxu1 %v7948_v10 }
0x16b2   : > { %7954 = vmatprep.subr.bf16.mxu1 %v8284_v3 }
0x16b4   : > { %7427 = vmatmul.mubr.msk.f32.gmra.mrb[88].mxu1 %vm677_vm2, %v9229_v24 }
0x16b5   : > { %7454 = vmatprep.mubr.msk.f32.mxu1 %vm8285_vm0, %v8286_v6 }
0x16b8   : > { %7455 = vmatmul.mubr.msk.f32.vlgmr.msra.gmra.mrb[90].mxu1 %vm677_vm2, %v9210_v12 }
0x16b9   : > { %7457 = vmatprep.mubr.msk.f32.mxu1 %vm8285_vm0, %v8286_v6 }
0x16bc   : > { %7458 = vmatmul.mubr.msk.f32.gmra.mrb[92].mxu1 %vm677_vm2, %v9222_v34 }
0x16bd   : > { %7460 = vmatprep.mubr.msk.f32.mxu1 %vm8285_vm0, %v8286_v6 }
0x16c0   : > { %7461 = vmatmul.mubr.msk.f32.gmra.mrb[94].mxu1 %vm677_vm2, %v9229_v24 }
0x16c1   : > { %7484 = vmatprep.mubr.msk.f32.mxu1 %vm8285_vm0, %v8286_v6 }
0x1773   : > { %v3759_v13 = vpop.f32.mrb[78].mxu1 }
0x1774   : > { %v3773_v15 = vmul.f32 0.35355338, %v3759_v13  ;;  %v7390_v11 = vpop.f32.mrb[79].mxu1 }
0x1776   : > { %v3776_v17 = vsel %vm1102_vm7, %v3773_v15, -inf }
0x1777   : > { %3777 = vmax.xlane.f32.xlu0 %v3776_v17  ;;  %v3764_v9 = vpop.f32.mrb[80].mxu1 }
0x1778   : > { %v3774_v18 = vmul.f32 0.35355338, %v3764_v9  ;;  %v7393_v20 = vpop.f32.mrb[81].mxu1 }
0x177a   : > { %v3779_v22 = vsel %vm1102_vm7, %v3774_v18, -inf }
0x177b   : > { %3780 = vmax.xlane.f32.xlu1 %v3779_v22  ;;  %v3769_v19 = vpop.f32.mrb[82].mxu1 }
0x177c   : > { %v3775_v23 = vmul.f32 0.35355338, %v3769_v19  ;;  %v7396_v25 = vpop.f32.mrb[83].mxu1 }
0x177e   : > { %v3782_v14 = vsel %vm1109_vm8, %v3775_v23, -inf }
0x177f   : > { %3783 = vmax.xlane.f32.xlu0 %v3782_v14  ;;  %v9346_v28 = vpop.f32.mrb[84].mxu1 }
0x1780   : > { %v7422_v30 = vpop.f32.mrb[85].mxu1 }
0x1783   : > { %v9348_v31 = vpop.f32.mrb[86].mxu1 }
0x1784   : > { %v7425_v35 = vpop.f32.mrb[87].mxu1 }
0x1787   : > { %v9350_v36 = vpop.f32.mrb[88].mxu1 }
0x1788   : > { %v7428_v41 = vpop.f32.mrb[89].mxu1 }
0x178b   : > { %v4144_v44 = vpop.f32.mrb[90].mxu1 }
0x178c   : > { %v7456_v16 = vpop.f32.mrb[91].mxu1 }
0x178f   : > { %v4149_v21 = vpop.f32.mrb[92].mxu1 }
0x1790   : > { %v7955_v40 = vpack.c.bf16 %v4149_v21, %v4144_v44  ;;  %v7459_v42 = vpop.f32.mrb[93].mxu1 }
0x1792   : > { %7956 = vmatpush3.bf16.msra.mxu1 %v7955_v40 }
0x1793   : > { %v4154_v33 = vpop.f32.mrb[94].mxu1  ;;  %7482 = vmatprep.subr.mxu1 %v8286_v6 }
0x1794   : > { %v7462_v37 = vpop.f32.mrb[95].mxu1 }
0x1796   : > { %7483 = vmatpush3.msk.msra.mxu1 %vm1146_vm6, %v4154_v33 }
0x1797   : > { %7504 = vmatprep.subr.mxu1 %v8286_v6 }
0x1804   : > { %v3778_v45 = vpop.xlane.xlu0 %3777 }
0x1805   : > { %v3785_v46 = vsub.f32 %v3773_v15, %v3778_v45 }
0x1807   : > { %v3788_v29 = vmul.f32 1.442695, %v3785_v46 }
0x1808   : > { %v3781_v47 = vpop.xlane.xlu1 %3780 }
0x1809   : > { %8158 = vpow2.f32 %v3788_v29  ;;  %v3786_v26 = vsub.f32 %v3774_v18, %v3781_v47 }
0x180b   : > { %v3790_v48 = vmul.f32 1.442695, %v3786_v26 }
0x180c   : > { %v3784_v27 = vpop.xlane.xlu0 %3783 }
0x180d   : > { %8160 = vpow2.f32 %v3790_v48  ;;  %v3787_v49 = vsub.f32 %v3775_v23, %v3784_v27 }
0x180f   : > { %v3792_v50 = vmul.f32 1.442695, %v3787_v49 }
0x1811   : > { %8162 = vpow2.f32 %v3792_v50 }
0x1813   : > { %v8159_v51 = vpop.eup %8158 }
0x1814   : > { %v3794_v52 = vsel %vm1102_vm7, %v8159_v51, 0.0 }
0x1815   : > { %3795 = vadd.xlane.f32.xlu1 %v3794_v52 }
0x1817   : > { %v8161_v53 = vpop.eup %8160 }
0x1818   : > { %v3797_v54 = vsel %vm1102_vm7, %v8161_v53, 0.0 }
0x1819   : > { %3798 = vadd.xlane.f32.xlu0 %v3797_v54 }
0x181b   : > { %v8163_v55 = vpop.eup %8162 }
0x181c   : > { %v3800_v56 = vsel %vm1109_vm8, %v8163_v55, 0.0 }
0x181d   : > { %3801 = vadd.xlane.f32.xlu1 %v3800_v56 }
0x18a2   : > { %v3796_v57 = vpop.xlane.xlu1 %3795 }
0x18a3   : > { %8164 = vrcp.f32 %v3796_v57  ;;  %v6408_v57 = vld [vmem:[%s9913_s6 + $0x28] sm:$0xff] }
0x18a6   : > { %v3799_v58 = vpop.xlane.xlu0 %3798 }
0x18a7   : > { %8166 = vrcp.f32 %v3799_v58 }
0x18aa   : > { %v3802_v60 = vpop.xlane.xlu1 %3801 }
0x18ab   : > { %8168 = vrcp.f32 %v3802_v60 }
0x18ad   : > { %v8165_v61 = vpop.eup %8164 }
0x18ae   : > { %v3806_v0 = vmul.f32 %v8165_v61, %v8159_v51 }
0x18b0   : > { %7404 = vmatmul.mubr.msk.f32.vlgmr.msra.gmra.mrb[102].mxu0 %vm1102_vm7, %v3806_v0 }
0x18b1   : > { %v8167_v4 = vpop.eup %8166  ;;  %7406 = vmatprep.mubr.msk.f32.mxu0 %vm8285_vm0, %v8286_v6  ;;  %7940 = vmatpush3.bf16.msra.mxu0 %v7939_v63  ;;  %v6376_v63 = vld [vmem:[%s9913_s6 + $0x20] sm:$0xff] }
0x18b2   : > { %v3807_v7 = vmul.f32 %v8167_v4, %v8161_v53  ;;  %7941 = vmatprep.subr.bf16.mxu0 %v8284_v3 }
0x18b4   : > { %7407 = vmatmul.mubr.msk.f32.gmra.mrb[104].mxu0 %vm1102_vm7, %v3807_v7  ;;  %v6423_v7 = vld [vmem:[%s9912_s5 + $0x248] sm:$0xff] }
0x18b5   : > { %v8169_v8 = vpop.eup %8168  ;;  %7409 = vmatprep.mubr.msk.f32.mxu0 %vm8285_vm0, %v8286_v6  ;;  %7943 = vmatpush3.bf16.msra.mxu0 %v7942_v5  ;;  %v6422_v5 = vld [vmem:[%s9912_s5 + $0x240] sm:$0xff] }
0x18b6   : > { %v3808_v10 = vmul.f32 %v8169_v8, %v8163_v55  ;;  %7950 = vmatprep.subr.bf16.mxu0 %v8284_v3  ;;  %v7964_v8 = vpack.c.bf16 %v6423_v7, %v6422_v5 }
0x18b8   : > { %7410 = vmatmul.mubr.msk.f32.gmra.mrb[106].mxu0 %vm1102_vm7, %v3808_v10  ;;  %v6424_v10 = vld [vmem:[%s9912_s5 + $0x250] sm:$0xff] }
0x18b9   : > { %7437 = vmatprep.mubr.msk.f32.mxu0 %vm8285_vm0, %v8286_v6 }
0x18bc   : > { %7438 = vmatmul.mubr.msk.f32.vlgmr.msra.gmra.mrb[108].mxu0 %vm677_vm2, %v9210_v12 }
0x18bd   : > { %7440 = vmatprep.mubr.msk.f32.mxu0 %vm8285_vm0, %v8286_v6 }
0x18c0   : > { %7441 = vmatmul.mubr.msk.f32.gmra.mrb[110].mxu0 %vm677_vm2, %v9222_v34 }
0x18c1   : > { %7443 = vmatprep.mubr.msk.f32.mxu0 %vm8285_vm0, %v8286_v6 }
0x18c4   : > { %7444 = vmatmul.mubr.msk.f32.gmra.mrb[112].mxu0 %vm677_vm2, %v9229_v24 }
0x18c5   : > { %7469 = vmatprep.mubr.msk.f32.mxu0 %vm8285_vm0, %v8286_v6 }
0x1983   : > { %v9393_v13 = vpop.f32.mrb[102].mxu0 }
0x1984   : > { %v7405_v15 = vpop.f32.mrb[103].mxu0 }
0x1985   : > { %v6425_v15 = vld [vmem:[%s9912_s5 + $0x258] sm:$0xff] }
0x1987   : > { %v9395_v11 = vpop.f32.mrb[104].mxu0 }
0x1988   : > { %v7408_v17 = vpop.f32.mrb[105].mxu0 }
0x1989   : > { %v7967_v17 = vpack.c.bf16 %v6425_v15, %v6424_v10 }
0x198b   : > { %v9397_v9 = vpop.f32.mrb[106].mxu0 }
0x198c   : > { %v7411_v18 = vpop.f32.mrb[107].mxu0 }
0x198d   : > { %v6417_v18 = vld [vmem:[%s9912_s5 + $0x1d0] sm:$0xff] }
0x198f   : > { %v4059_v20 = vpop.f32.mrb[108].mxu0 }
0x1990   : > { %v7439_v22 = vpop.f32.mrb[109].mxu0 }
0x1993   : > { %v4064_v19 = vpop.f32.mrb[110].mxu0 }
0x1994   : > { %v7951_v23 = vpack.c.bf16 %v4064_v19, %v4059_v20  ;;  %v7442_v25 = vpop.f32.mrb[111].mxu0  ;;  %v6418_v20 = vld [vmem:[%s9912_s5 + $0x1d8] sm:$0xff] }
0x1996   : > { %7953 = vmatpush3.bf16.xpose.msk.msra.mxu0 %vm8588_vm5, %v7951_v23  ;;  %v7961_v23 = vpack.c.bf16 %v6418_v20, %v6417_v18 }
0x1997   : > { %v4069_v14 = vpop.f32.mrb[112].mxu0  ;;  %7467 = vmatprep.subr.mxu0 %v8286_v6 }
0x1998   : > { %v7445_v30 = vpop.f32.mrb[113].mxu0 }
0x1999   : > { %v6429_v30 = vld [vmem:[%s9912_s5 + $0x2c0] sm:$0xff] }
0x199e   : > { %7468 = vmatpush3.xpose.msk.msra.mxu0 %vm1000_vm4, %v4069_v14 }
0x199f   : > { %7493 = vmatprep.subr.mxu0 %v8286_v6 }
0x19a1   : > { %7470 = vmatmul.mubr.msk.f32.vlgmr.msra.gmra.mrb[114].mxu0 %vm1000_vm4, %v9346_v28 }
0x19a2   : > { %7472 = vmatprep.mubr.msk.f32.mxu0 %vm8285_vm0, %v8286_v6  ;;  %7494 = vmatpush3.msra.mxu0 %v6408_v57 }
0x19a3   : > { %7957 = vmatprep.subr.bf16.mxu0 %v8284_v3 }
0x19a5   : > { %7473 = vmatmul.mubr.msk.f32.gmra.mrb[116].mxu0 %vm1000_vm4, %v9348_v31 }
0x19a6   : > { %7475 = vmatprep.mubr.msk.f32.mxu0 %vm8285_vm0, %v8286_v6 }
0x19a9   : > { %7476 = vmatmul.mubr.msk.f32.gmra.mrb[118].mxu0 %vm1000_vm4, %v9350_v36 }
0x19aa   : > { %7495 = vmatprep.mubr.msk.f32.mxu0 %vm8285_vm0, %v8286_v6 }
0x1a74   : > { %v4242_v35 = vpop.f32.mrb[114].mxu0 }
0x1a75   : > { %v4256_v41 = vmul.f32 0.35355338, %v4242_v35  ;;  %v7471_v44 = vpop.f32.mrb[115].mxu0  ;;  %v6430_v35 = vld [vmem:[%s9912_s5 + $0x2c8] sm:$0xff] }
0x1a77   : > { %v4259_v28 = vsel %vm1102_vm7, %v4256_v41, -inf }
0x1a78   : > { %4260 = vmax.xlane.f32.xlu0 %v4259_v28  ;;  %v4247_v16 = vpop.f32.mrb[116].mxu0  ;;  %v7970_v28 = vpack.c.bf16 %v6430_v35, %v6429_v30 }
0x1a79   : > { %v4257_v21 = vmul.f32 0.35355338, %v4247_v16  ;;  %v7474_v40 = vpop.f32.mrb[117].mxu0  ;;  %v6431_v16 = vld [vmem:[%s9912_s5 + $0x2d0] sm:$0xff] }
0x1a7b   : > { %v4262_v31 = vsel %vm1102_vm7, %v4257_v21, -inf }
0x1a7c   : > { %4263 = vmax.xlane.f32.xlu1 %v4262_v31  ;;  %v4252_v42 = vpop.f32.mrb[118].mxu0 }
0x1a7d   : > { %v4258_v33 = vmul.f32 0.35355338, %v4252_v42  ;;  %v7477_v37 = vpop.f32.mrb[119].mxu0 }
0x1a7f   : > { %v4265_v36 = vsel %vm1109_vm8, %v4258_v33, -inf }
0x1a80   : > { %4266 = vmax.xlane.f32.xlu0 %v4265_v36 }
0x1b05   : > { %v4261_v45 = vpop.xlane.xlu0 %4260 }
0x1b06   : > { %v4268_v46 = vsub.f32 %v4256_v41, %v4261_v45 }
0x1b08   : > { %v4271_v29 = vmul.f32 1.442695, %v4268_v46 }
0x1b09   : > { %v4264_v47 = vpop.xlane.xlu1 %4263 }
0x1b0a   : > { %8170 = vpow2.f32 %v4271_v29  ;;  %v4269_v26 = vsub.f32 %v4257_v21, %v4264_v47  ;;  %v6432_v21 = vld [vmem:[%s9912_s5 + $0x2d8] sm:$0xff] }
0x1b0b   : > { %v7973_v42 = vpack.c.bf16 %v6432_v21, %v6431_v16 }
0x1b0c   : > { %v4273_v48 = vmul.f32 1.442695, %v4269_v26 }
0x1b0d   : > { %v4267_v27 = vpop.xlane.xlu0 %4266 }
0x1b0e   : > { %8172 = vpow2.f32 %v4273_v48  ;;  %v4270_v49 = vsub.f32 %v4258_v33, %v4267_v27 }
0x1b10   : > { %v4275_v50 = vmul.f32 1.442695, %v4270_v49 }
0x1b12   : > { %8174 = vpow2.f32 %v4275_v50 }
0x1b14   : > { %v8171_v51 = vpop.eup %8170 }
0x1b15   : > { %v4277_v52 = vsel %vm1102_vm7, %v8171_v51, 0.0 }
0x1b16   : > { %4278 = vadd.xlane.f32.xlu1 %v4277_v52 }
0x1b18   : > { %v8173_v53 = vpop.eup %8172 }
0x1b19   : > { %v4280_v54 = vsel %vm1102_vm7, %v8173_v53, 0.0 }
0x1b1a   : > { %4281 = vadd.xlane.f32.xlu0 %v4280_v54 }
0x1b1c   : > { %v8175_v55 = vpop.eup %8174 }
0x1b1d   : > { %v4283_v56 = vsel %vm1109_vm8, %v8175_v55, 0.0 }
0x1b1e   : > { %4284 = vadd.xlane.f32.xlu1 %v4283_v56 }
0x1ba3   : > { %v4279_v58 = vpop.xlane.xlu1 %4278 }
0x1ba4   : > { %8176 = vrcp.f32 %v4279_v58 }
0x1ba7   : > { %v4282_v60 = vpop.xlane.xlu0 %4281 }
0x1ba8   : > { %8178 = vrcp.f32 %v4282_v60 }
0x1bab   : > { %v4285_v62 = vpop.xlane.xlu1 %4284 }
0x1bac   : > { %8180 = vrcp.f32 %v4285_v62 }
0x1bae   : > { %v8177_v59 = vpop.eup %8176 }
0x1baf   : > { %v4289_v61 = vmul.f32 %v8177_v59, %v8171_v51 }
0x1bb1   : > { %7485 = vmatmul.mubr.msk.f32.vlgmr.msra.gmra.mrb[96].mxu1 %vm1102_vm7, %v4289_v61 }
0x1bb2   : > { %v8179_v0 = vpop.eup %8178  ;;  %7487 = vmatprep.mubr.msk.f32.mxu1 %vm8285_vm0, %v8286_v6  ;;  %7505 = vmatpush3.msra.mxu1 %v6376_v63 }
0x1bb3   : > { %v4290_v1 = vmul.f32 %v8179_v0, %v8173_v53  ;;  %7963 = vmatprep.subr.bf16.mxu1 %v8284_v3 }
0x1bb5   : > { %7488 = vmatmul.mubr.msk.f32.gmra.mrb[98].mxu1 %vm1102_vm7, %v4290_v1 }
0x1bb6   : > { %v8181_v2 = vpop.eup %8180  ;;  %7490 = vmatprep.mubr.msk.f32.mxu1 %vm8285_vm0, %v8286_v6 }
0x1bb7   : > { %v4291_v4 = vmul.f32 %v8181_v2, %v8175_v55 }
0x1bb9   : > { %7491 = vmatmul.mubr.msk.f32.gmra.mrb[100].mxu1 %vm1102_vm7, %v4291_v4 }
0x1bba   : > { %7506 = vmatprep.mubr.msk.f32.mxu1 %vm8285_vm0, %v8286_v6 }
0x1bbd   : > { %7507 = vmatmul.mubr.msk.f32.vlgmr.msra.gmra.mrb[102].mxu1 %vm1000_vm4, %v9393_v13  ;;  %v6415_v13 = vld [vmem:[%s9912_s5 + $0x1c0] sm:$0xff] }
0x1bbe   : > { %7509 = vmatprep.mubr.msk.f32.mxu1 %vm8285_vm0, %v8286_v6  ;;  %7965 = vmatpush3.bf16.msra.mxu1 %v7964_v8 }
0x1bbf   : > { %7966 = vmatprep.subr.bf16.mxu1 %v8284_v3 }
0x1bc1   : > { %7510 = vmatmul.mubr.msk.f32.gmra.mrb[104].mxu1 %vm1000_vm4, %v9395_v11  ;;  %v6416_v11 = vld [vmem:[%s9912_s5 + $0x1c8] sm:$0xff] }
0x1bc2   : > { %7512 = vmatprep.mubr.msk.f32.mxu1 %vm8285_vm0, %v8286_v6  ;;  %7968 = vmatpush3.bf16.msra.mxu1 %v7967_v17 }
0x1bc3   : > { %7975 = vmatprep.subr.bf16.mxu1 %v8284_v3 }
0x1bc5   : > { %7513 = vmatmul.mubr.msk.f32.gmra.mrb[106].mxu1 %vm1000_vm4, %v9397_v9  ;;  %v7958_v9 = vpack.c.bf16 %v6416_v11, %v6415_v13 }
0x1bc6   : > { %7540 = vmatprep.mubr.msk.f32.mxu1 %vm8285_vm0, %v8286_v6 }
0x1bc9   : > { %7541 = vmatmul.mubr.msk.f32.vlgmr.msra.gmra.mrb[108].mxu1 %vm677_vm2, %v9210_v12 }
0x1bca   : > { %7543 = vmatprep.mubr.msk.f32.mxu1 %vm8285_vm0, %v8286_v6 }
0x1bcd   : > { %7544 = vmatmul.mubr.msk.f32.gmra.mrb[110].mxu1 %vm677_vm2, %v9222_v34 }
0x1bce   : > { %7546 = vmatprep.mubr.msk.f32.mxu1 %vm8285_vm0, %v8286_v6 }
0x1bd1   : > { %7547 = vmatmul.mubr.msk.f32.gmra.mrb[112].mxu1 %vm677_vm2, %v9229_v24 }
0x1bd2   : > { %7572 = vmatprep.mubr.msk.f32.mxu1 %vm8285_vm0, %v8286_v6 }
0x1c84   : > { %v4370_v22 = vpop.f32.mrb[96].mxu1 }
0x1c85   : > { %v7486_v19 = vpop.f32.mrb[97].mxu1  ;;  %7496 = vmatmul.mubr.msk.f32.vlgmr.msra.gmra.mrb[120].mxu0 %vm1000_vm4, %v4370_v22 }
0x1c86   : > { %7498 = vmatprep.mubr.msk.f32.mxu0 %vm8285_vm0, %v8286_v6  ;;  %7959 = vmatpush3.bf16.msra.mxu0 %v7958_v9 }
0x1c87   : > { %7960 = vmatprep.subr.bf16.mxu0 %v8284_v3 }
0x1c88   : > { %v4375_v25 = vpop.f32.mrb[98].mxu1 }
0x1c89   : > { %v7489_v14 = vpop.f32.mrb[99].mxu1  ;;  %7499 = vmatmul.mubr.msk.f32.gmra.mrb[122].mxu0 %vm1000_vm4, %v4375_v25 }
0x1c8a   : > { %7501 = vmatprep.mubr.msk.f32.mxu0 %vm8285_vm0, %v8286_v6  ;;  %7962 = vmatpush3.bf16.msra.mxu0 %v7961_v23 }
0x1c8b   : > { %7969 = vmatprep.subr.bf16.mxu0 %v8284_v3 }
0x1c8c   : > { %v4380_v41 = vpop.f32.mrb[100].mxu1 }
0x1c8d   : > { %v7492_v44 = vpop.f32.mrb[101].mxu1  ;;  %7502 = vmatmul.mubr.msk.f32.gmra.mrb[124].mxu0 %vm1000_vm4, %v4380_v41 }
0x1c8e   : > { %7523 = vmatprep.mubr.msk.f32.mxu0 %vm8285_vm0, %v8286_v6 }
0x1c90   : > { %v4550_v40 = vpop.f32.mrb[102].mxu1 }
0x1c91   : > { %v7508_v31 = vpop.f32.mrb[103].mxu1  ;;  %7524 = vmatmul.mubr.msk.f32.vlgmr.msra.gmra.mrb[126].mxu0 %vm677_vm2, %v9210_v12 }
0x1c92   : > { %7526 = vmatprep.mubr.msk.f32.mxu0 %vm8285_vm0, %v8286_v6  ;;  %7971 = vmatpush3.bf16.msra.mxu0 %v7970_v28 }
0x1c93   : > { %7972 = vmatprep.subr.bf16.mxu0 %v8284_v3 }
0x1c94   : > { %v4555_v33 = vpop.f32.mrb[104].mxu1 }
0x1c95   : > { %v7511_v37 = vpop.f32.mrb[105].mxu1  ;;  %7527 = vmatmul.mubr.msk.f32.gmra.mrb[128].mxu0 %vm677_vm2, %v9222_v34 }
0x1c96   : > { %7529 = vmatprep.mubr.msk.f32.mxu0 %vm8285_vm0, %v8286_v6  ;;  %7974 = vmatpush3.bf16.msra.mxu0 %v7973_v42 }
0x1c97   : > { %7979 = vmatprep.subr.bf16.mxu0 %v8284_v3 }
0x1c98   : > { %v4560_v36 = vpop.f32.mrb[106].mxu1 }
0x1c99   : > { %v7514_v45 = vpop.f32.mrb[107].mxu1  ;;  %7530 = vmatmul.mubr.msk.f32.gmra.mrb[130].mxu0 %vm677_vm2, %v9229_v24 }
0x1c9a   : > { %7557 = vmatprep.mubr.msk.f32.mxu0 %vm8285_vm0, %v8286_v6 }
0x1c9c   : > { %v4720_v46 = vpop.f32.mrb[108].mxu1 }
0x1c9d   : > { %v7542_v29 = vpop.f32.mrb[109].mxu1  ;;  %7558 = vmatmul.mubr.msk.f32.vlgmr.msra.gmra.mrb[132].mxu0 %vm677_vm2, %v9210_v12 }
0x1c9e   : > { %7560 = vmatprep.mubr.msk.f32.mxu0 %vm8285_vm0, %v8286_v6  ;;  %v6446_v29 = vld [vmem:[%s9913_s6 + $0x30] sm:$0xff] }
0x1ca0   : > { %v4725_v47 = vpop.f32.mrb[110].mxu1 }
0x1ca1   : > { %v7976_v26 = vpack.c.bf16 %v4725_v47, %v4720_v46  ;;  %v7545_v48 = vpop.f32.mrb[111].mxu1  ;;  %7561 = vmatmul.mubr.msk.f32.gmra.mrb[134].mxu0 %vm677_vm2, %v9222_v34 }
0x1ca2   : > { %7563 = vmatprep.mubr.msk.f32.mxu0 %vm8285_vm0, %v8286_v6 }
0x1ca3   : > { %7978 = vmatpush3.bf16.xpose.msk.msra.mxu1 %vm8588_vm5, %v7976_v26 }
0x1ca4   : > { %v4730_v27 = vpop.f32.mrb[112].mxu1  ;;  %7570 = vmatprep.subr.mxu1 %v8286_v6 }
0x1ca5   : > { %v7548_v49 = vpop.f32.mrb[113].mxu1  ;;  %7564 = vmatmul.mubr.msk.f32.gmra.mrb[136].mxu0 %vm677_vm2, %v9229_v24 }
0x1ca6   : > { %7587 = vmatprep.mubr.msk.f32.mxu0 %vm8285_vm0, %v8286_v6  ;;  %v6451_v49 = vld [vmem:[%s9912_s5 + $0x1e8] sm:$0xff] }
0x1cab   : > { %7571 = vmatpush3.xpose.msk.msra.mxu1 %vm1000_vm4, %v4730_v27  ;;  %v6450_v27 = vld [vmem:[%s9912_s5 + $0x1e0] sm:$0xff] }
0x1cac   : > { %7596 = vmatprep.subr.mxu1 %v8286_v6 }
0x1d58   : > { %v4461_v50 = vpop.f32.mrb[120].mxu0 }
0x1d59   : > { %v9543_v51 = vadd.f32 %v4550_v40, %v4461_v50  ;;  %v7497_v52 = vpop.f32.mrb[121].mxu0 }
0x1d5a   : > { %v7983_v52 = vpack.c.bf16 %v6451_v49, %v6450_v27 }
0x1d5c   : > { %v4466_v53 = vpop.f32.mrb[122].mxu0 }
0x1d5d   : > { %v9545_v54 = vadd.f32 %v4555_v33, %v4466_v53  ;;  %v7500_v55 = vpop.f32.mrb[123].mxu0 }
0x1d5e   : > { %v6452_v55 = vld [vmem:[%s9912_s5 + $0x1f0] sm:$0xff] }
0x1d60   : > { %v4471_v56 = vpop.f32.mrb[124].mxu0 }
0x1d61   : > { %v9547_v57 = vadd.f32 %v4560_v36, %v4471_v56  ;;  %v7503_v58 = vpop.f32.mrb[125].mxu0  ;;  %v6453_v56 = vld [vmem:[%s9912_s5 + $0x1f8] sm:$0xff] }
0x1d64   : > { %v4635_v60 = vpop.f32.mrb[126].mxu0 }
0x1d65   : > { %v7525_v62 = vpop.f32.mrb[127].mxu0  ;;  %7573 = vmatmul.mubr.msk.f32.vlgmr.msra.gmra.mrb[114].mxu1 %vm1000_vm4, %v4635_v60  ;;  %v7986_v60 = vpack.c.bf16 %v6453_v56, %v6452_v55 }
0x1d66   : > { %7575 = vmatprep.mubr.msk.f32.mxu1 %vm8285_vm0, %v8286_v6  ;;  %7597 = vmatpush3.msra.mxu1 %v6446_v29 }
0x1d67   : > { %7988 = vmatprep.subr.bf16.mxu1 %v8284_v3 }
0x1d68   : > { %v4640_v59 = vpop.f32.mrb[128].mxu0 }
0x1d69   : > { %v7528_v61 = vpop.f32.mrb[129].mxu0  ;;  %7576 = vmatmul.mubr.msk.f32.gmra.mrb[116].mxu1 %vm1000_vm4, %v4640_v59 }
0x1d6a   : > { %7578 = vmatprep.mubr.msk.f32.mxu1 %vm8285_vm0, %v8286_v6 }
0x1d6c   : > { %v4645_v63 = vpop.f32.mrb[130].mxu0 }
0x1d6d   : > { %v7531_v0 = vpop.f32.mrb[131].mxu0  ;;  %7579 = vmatmul.mubr.msk.f32.gmra.mrb[118].mxu1 %vm1000_vm4, %v4645_v63  ;;  %v6464_v63 = vld [vmem:[%s9912_s5 + $0x2e0] sm:$0xff] }
0x1d6e   : > { %7598 = vmatprep.mubr.msk.f32.mxu1 %vm8285_vm0, %v8286_v6  ;;  %v6465_v0 = vld [vmem:[%s9912_s5 + $0x2e8] sm:$0xff] }
0x1d70   : > { %v4805_v1 = vpop.f32.mrb[132].mxu0 }
0x1d71   : > { %v7559_v2 = vpop.f32.mrb[133].mxu0 }
0x1d72   : > { %v6466_v2 = vld [vmem:[%s9912_s5 + $0x2f0] sm:$0xff] }
0x1d74   : > { %v4810_v4 = vpop.f32.mrb[134].mxu0 }
0x1d75   : > { %v7980_v5 = vpack.c.bf16 %v4810_v4, %v4805_v1  ;;  %v7562_v7 = vpop.f32.mrb[135].mxu0  ;;  %v7995_v1 = vpack.c.bf16 %v6465_v0, %v6464_v63  ;;  %v6467_v4 = vld [vmem:[%s9912_s5 + $0x2f8] sm:$0xff] }
0x1d76   : > { %v6457_v7 = vld [vmem:[%s9912_s5 + $0x260] sm:$0xff] }
0x1d77   : > { %7981 = vmatpush3.bf16.msra.mxu0 %v7980_v5  ;;  %v7998_v5 = vpack.c.bf16 %v6467_v4, %v6466_v2 }
0x1d78   : > { %v4815_v8 = vpop.f32.mrb[136].mxu0  ;;  %7585 = vmatprep.subr.mxu0 %v8286_v6 }
0x1d79   : > { %v7565_v10 = vpop.f32.mrb[137].mxu0 }
0x1d7b   : > { %7586 = vmatpush3.msk.msra.mxu0 %vm1146_vm6, %v4815_v8  ;;  %v6458_v8 = vld [vmem:[%s9912_s5 + $0x268] sm:$0xff] }
0x1d7c   : > { %7982 = vmatprep.subr.bf16.mxu0 %v8284_v3  ;;  %v7989_v10 = vpack.c.bf16 %v6458_v8, %v6457_v7 }
0x1e38   : > { %v4903_v15 = vpop.f32.mrb[114].mxu1 }
0x1e39   : > { %v4917_v17 = vmul.f32 0.35355338, %v4903_v15  ;;  %v7574_v13 = vpop.f32.mrb[115].mxu1  ;;  %v6459_v15 = vld [vmem:[%s9912_s5 + $0x270] sm:$0xff] }
0x1e3b   : > { %v4920_v11 = vsel %vm1102_vm7, %v4917_v17, -inf }
0x1e3c   : > { %4921 = vmax.xlane.f32.xlu0 %v4920_v11  ;;  %v4908_v9 = vpop.f32.mrb[116].mxu1 }
0x1e3d   : > { %v4918_v18 = vmul.f32 0.35355338, %v4908_v9  ;;  %v7577_v20 = vpop.f32.mrb[117].mxu1 }
0x1e3f   : > { %v4923_v22 = vsel %vm1102_vm7, %v4918_v18, -inf }
0x1e40   : > { %4924 = vmax.xlane.f32.xlu1 %v4923_v22  ;;  %v4913_v19 = vpop.f32.mrb[118].mxu1 }
0x1e41   : > { %v4919_v23 = vmul.f32 0.35355338, %v4913_v19  ;;  %v7580_v25 = vpop.f32.mrb[119].mxu1 }
0x1e43   : > { %v4926_v14 = vsel %vm1109_vm8, %v4919_v23, -inf }
0x1e44   : > { %4927 = vmax.xlane.f32.xlu0 %v4926_v14 }
0x1ec9   : > { %v4922_v30 = vpop.xlane.xlu0 %4921 }
0x1eca   : > { %v4929_v35 = vsub.f32 %v4917_v17, %v4922_v30  ;;  %v6460_v17 = vld [vmem:[%s9912_s5 + $0x278] sm:$0xff] }
0x1ecb   : > { %v7992_v9 = vpack.c.bf16 %v6460_v17, %v6459_v15 }
0x1ecc   : > { %v4932_v41 = vmul.f32 1.442695, %v4929_v35 }
0x1ecd   : > { %v4925_v44 = vpop.xlane.xlu1 %4924 }
0x1ece   : > { %8182 = vpow2.f32 %v4932_v41  ;;  %v4930_v28 = vsub.f32 %v4918_v18, %v4925_v44 }
0x1ed0   : > { %v4934_v16 = vmul.f32 1.442695, %v4930_v28 }
0x1ed1   : > { %v4928_v21 = vpop.xlane.xlu0 %4927 }
0x1ed2   : > { %8184 = vpow2.f32 %v4934_v16  ;;  %v4931_v40 = vsub.f32 %v4919_v23, %v4928_v21 }
0x1ed4   : > { %v4936_v31 = vmul.f32 1.442695, %v4931_v40 }
0x1ed6   : > { %8186 = vpow2.f32 %v4936_v31 }
0x1ed8   : > { %v8183_v42 = vpop.eup %8182 }
0x1ed9   : > { %v4938_v33 = vsel %vm1102_vm7, %v8183_v42, 0.0 }
0x1eda   : > { %4939 = vadd.xlane.f32.xlu1 %v4938_v33 }
0x1edc   : > { %v8185_v37 = vpop.eup %8184 }
0x1edd   : > { %v4941_v36 = vsel %vm1102_vm7, %v8185_v37, 0.0 }
0x1ede   : > { %4942 = vadd.xlane.f32.xlu0 %v4941_v36 }
0x1ee0   : > { %v8187_v45 = vpop.eup %8186 }
0x1ee1   : > { %v4944_v46 = vsel %vm1109_vm8, %v8187_v45, 0.0 }
0x1ee2   : > { %4945 = vadd.xlane.f32.xlu1 %v4944_v46 }
0x1f67   : > { %v4940_v47 = vpop.xlane.xlu1 %4939 }
0x1f68   : > { %8188 = vrcp.f32 %v4940_v47 }
0x1f6b   : > { %v4943_v26 = vpop.xlane.xlu0 %4942 }
0x1f6c   : > { %8190 = vrcp.f32 %v4943_v26 }
0x1f6f   : > { %v4946_v48 = vpop.xlane.xlu1 %4945 }
0x1f70   : > { %8192 = vrcp.f32 %v4946_v48 }
0x1f72   : > { %v8189_v50 = vpop.eup %8188 }
0x1f73   : > { %v4950_v53 = vmul.f32 %v8189_v50, %v8183_v42 }
0x1f75   : > { %7588 = vmatmul.mubr.msk.f32.vlgmr.msra.gmra.mrb[138].mxu0 %vm1102_vm7, %v4950_v53 }
0x1f76   : > { %v8191_v58 = vpop.eup %8190  ;;  %7590 = vmatprep.mubr.msk.f32.mxu0 %vm8285_vm0, %v8286_v6  ;;  %7984 = vmatpush3.bf16.msra.mxu0 %v7983_v52 }
0x1f77   : > { %v4951_v62 = vmul.f32 %v8191_v58, %v8185_v37  ;;  %7985 = vmatprep.subr.bf16.mxu0 %v8284_v3 }
0x1f79   : > { %7591 = vmatmul.mubr.msk.f32.gmra.mrb[140].mxu0 %vm1102_vm7, %v4951_v62 }
0x1f7a   : > { %v8193_v59 = vpop.eup %8192  ;;  %7593 = vmatprep.mubr.msk.f32.mxu0 %vm8285_vm0, %v8286_v6  ;;  %7987 = vmatpush3.bf16.msra.mxu0 %v7986_v60 }
0x1f7b   : > { %v4952_v61 = vmul.f32 %v8193_v59, %v8187_v45  ;;  %7994 = vmatprep.subr.bf16.mxu0 %v8284_v3 }
0x1f7d   : > { %7594 = vmatmul.mubr.msk.f32.gmra.mrb[142].mxu0 %vm1102_vm7, %v4952_v61 }
0x1f7e   : > { %7615 = vmatprep.mubr.msk.f32.mxu0 %vm8285_vm0, %v8286_v6 }
0x1f81   : > { %7616 = vmatmul.mubr.msk.f32.vlgmr.msra.gmra.mrb[144].mxu0 %vm677_vm2, %v9210_v12 }
0x1f82   : > { %7618 = vmatprep.mubr.msk.f32.mxu0 %vm8285_vm0, %v8286_v6  ;;  %7996 = vmatpush3.bf16.msra.mxu0 %v7995_v1 }
0x1f83   : > { %7997 = vmatprep.subr.bf16.mxu0 %v8284_v3 }
0x1f85   : > { %7619 = vmatmul.mubr.msk.f32.gmra.mrb[146].mxu0 %vm677_vm2, %v9222_v34 }
0x1f86   : > { %7621 = vmatprep.mubr.msk.f32.mxu0 %vm8285_vm0, %v8286_v6  ;;  %7999 = vmatpush3.bf16.msra.mxu0 %v7998_v5 }
0x1f87   : > { %8004 = vmatprep.subr.bf16.mxu0 %v8284_v3 }
0x1f89   : > { %7622 = vmatmul.mubr.msk.f32.gmra.mrb[148].mxu0 %vm677_vm2, %v9229_v24 }
0x1f8a   : > { %7649 = vmatprep.mubr.msk.f32.mxu0 %vm8285_vm0, %v8286_v6 }
0x1f8d   : > { %7650 = vmatmul.mubr.msk.f32.vlgmr.msra.gmra.mrb[150].mxu0 %vm677_vm2, %v9210_v12 }
0x1f8e   : > { %7652 = vmatprep.mubr.msk.f32.mxu0 %vm8285_vm0, %v8286_v6 }
0x1f91   : > { %7653 = vmatmul.mubr.msk.f32.gmra.mrb[152].mxu0 %vm677_vm2, %v9222_v34 }
0x1f92   : > { %7655 = vmatprep.mubr.msk.f32.mxu0 %vm8285_vm0, %v8286_v6 }
0x1f95   : > { %7656 = vmatmul.mubr.msk.f32.gmra.mrb[154].mxu0 %vm677_vm2, %v9229_v24 }
0x1f96   : > { %7679 = vmatprep.mubr.msk.f32.mxu0 %vm8285_vm0, %v8286_v6 }
0x2048   : > { %v5031_v13 = vpop.f32.mrb[138].mxu0 }
0x2049   : > { %v7589_v11 = vpop.f32.mrb[139].mxu0  ;;  %7599 = vmatmul.mubr.msk.f32.vlgmr.msra.gmra.mrb[120].mxu1 %vm1000_vm4, %v5031_v13 }
0x204a   : > { %7601 = vmatprep.mubr.msk.f32.mxu1 %vm8285_vm0, %v8286_v6  ;;  %7990 = vmatpush3.bf16.msra.mxu1 %v7989_v10 }
0x204b   : > { %7991 = vmatprep.subr.bf16.mxu1 %v8284_v3 }
0x204c   : > { %v5036_v18 = vpop.f32.mrb[140].mxu0 }
0x204d   : > { %v7592_v20 = vpop.f32.mrb[141].mxu0  ;;  %7602 = vmatmul.mubr.msk.f32.gmra.mrb[122].mxu1 %vm1000_vm4, %v5036_v18 }
0x204e   : > { %7604 = vmatprep.mubr.msk.f32.mxu1 %vm8285_vm0, %v8286_v6  ;;  %7993 = vmatpush3.bf16.msra.mxu1 %v7992_v9 }
0x204f   : > { %8000 = vmatprep.subr.bf16.mxu1 %v8284_v3 }
0x2050   : > { %v5041_v22 = vpop.f32.mrb[142].mxu0 }
0x2051   : > { %v7595_v19 = vpop.f32.mrb[143].mxu0  ;;  %7605 = vmatmul.mubr.msk.f32.gmra.mrb[124].mxu1 %vm1000_vm4, %v5041_v22 }
0x2052   : > { %7632 = vmatprep.mubr.msk.f32.mxu1 %vm8285_vm0, %v8286_v6 }
0x2054   : > { %v5210_v23 = vpop.f32.mrb[144].mxu0 }
0x2055   : > { %v7617_v25 = vpop.f32.mrb[145].mxu0  ;;  %7633 = vmatmul.mubr.msk.f32.vlgmr.msra.gmra.mrb[126].mxu1 %vm677_vm2, %v9210_v12 }
0x2056   : > { %7635 = vmatprep.mubr.msk.f32.mxu1 %vm8285_vm0, %v8286_v6 }
0x2058   : > { %v5215_v14 = vpop.f32.mrb[146].mxu0 }
0x2059   : > { %v7620_v30 = vpop.f32.mrb[147].mxu0  ;;  %7636 = vmatmul.mubr.msk.f32.gmra.mrb[128].mxu1 %vm677_vm2, %v9222_v34 }
0x205a   : > { %7638 = vmatprep.mubr.msk.f32.mxu1 %vm8285_vm0, %v8286_v6  ;;  %v6481_v30 = vld [vmem:[%s9913_s6 + $0x38] sm:$0xff] }
0x205c   : > { %v5220_v35 = vpop.f32.mrb[148].mxu0 }
0x205d   : > { %v7623_v41 = vpop.f32.mrb[149].mxu0  ;;  %7639 = vmatmul.mubr.msk.f32.gmra.mrb[130].mxu1 %vm677_vm2, %v9229_v24 }
0x205e   : > { %7664 = vmatprep.mubr.msk.f32.mxu1 %vm8285_vm0, %v8286_v6 }
0x2060   : > { %v5380_v12 = vpop.f32.mrb[150].mxu0 }
0x2061   : > { %v7651_v44 = vpop.f32.mrb[151].mxu0 }
0x2064   : > { %v5385_v28 = vpop.f32.mrb[152].mxu0 }
0x2065   : > { %v8005_v16 = vpack.c.bf16 %v5385_v28, %v5380_v12  ;;  %v7654_v21 = vpop.f32.mrb[153].mxu0 }
0x2067   : > { %8006 = vmatpush3.bf16.msra.mxu0 %v8005_v16 }
0x2068   : > { %v5390_v40 = vpop.f32.mrb[154].mxu0  ;;  %7677 = vmatprep.subr.mxu0 %v8286_v6 }
0x2069   : > { %v7657_v34 = vpop.f32.mrb[155].mxu0 }
0x206b   : > { %7678 = vmatpush3.msk.msra.mxu0 %vm1146_vm6, %v5390_v40 }
0x206c   : > { %8007 = vmatprep.subr.bf16.mxu0 %v8284_v3 }
0x211c   : > { %v5122_v31 = vpop.f32.mrb[120].mxu1 }
0x211d   : > { %v9671_v24 = vadd.f32 %v5122_v31, %v9543_v51  ;;  %v7600_v42 = vpop.f32.mrb[121].mxu1 }
0x2120   : > { %v5127_v33 = vpop.f32.mrb[122].mxu1 }
0x2121   : > { %v9674_v37 = vadd.f32 %v5127_v33, %v9545_v54  ;;  %v7603_v36 = vpop.f32.mrb[123].mxu1 }
0x2122   : > { %v6486_v36 = vld [vmem:[%s9914_s7 + $0x1] ss:$0 sm:$0xff] }
0x2124   : > { %v5132_v45 = vpop.f32.mrb[124].mxu1 }
0x2125   : > { %v9677_v46 = vadd.f32 %v5132_v45, %v9547_v57  ;;  %v7606_v29 = vpop.f32.mrb[125].mxu1 }
0x2128   : > { %v5295_v47 = vpop.f32.mrb[126].mxu1 }
0x2129   : > { %v7634_v26 = vpop.f32.mrb[127].mxu1 }
0x212c   : > { %v5300_v48 = vpop.f32.mrb[128].mxu1 }
0x212d   : > { %v8001_v27 = vpack.c.bf16 %v5300_v48, %v5295_v47  ;;  %v7637_v49 = vpop.f32.mrb[129].mxu1 }
0x212f   : > { %8003 = vmatpush3.bf16.xpose.msk.msra.mxu1 %vm8588_vm5, %v8001_v27 }
0x2130   : > { %v5305_v51 = vpop.f32.mrb[130].mxu1  ;;  %7662 = vmatprep.subr.mxu1 %v8286_v6 }
0x2131   : > { %v7640_v50 = vpop.f32.mrb[131].mxu1 }
0x2137   : > { %7663 = vmatpush3.xpose.msk.msra.mxu1 %vm1000_vm4, %v5305_v51 }
0x2138   : > { %7688 = vmatprep.subr.mxu1 %v8286_v6 }
0x213a   : > { %7665 = vmatmul.mubr.msk.f32.vlgmr.msra.gmra.mrb[132].mxu1 %vm1000_vm4, %v5210_v23 }
0x213b   : > { %7667 = vmatprep.mubr.msk.f32.mxu1 %vm8285_vm0, %v8286_v6  ;;  %7689 = vmatpush3.msra.mxu1 %v6481_v30 }
0x213c   : > { %8013 = vmatprep.subr.bf16.mxu1 %v8284_v3 }
0x213e   : > { %7668 = vmatmul.mubr.msk.f32.gmra.mrb[134].mxu1 %vm1000_vm4, %v5215_v14 }
0x213f   : > { %7670 = vmatprep.mubr.msk.f32.mxu1 %vm8285_vm0, %v8286_v6 }
0x2142   : > { %7671 = vmatmul.mubr.msk.f32.gmra.mrb[136].mxu1 %vm1000_vm4, %v5220_v35 }
0x2143   : > { %7690 = vmatprep.mubr.msk.f32.mxu1 %vm8285_vm0, %v8286_v6 }
0x220d   : > { %v5478_v32 = vpop.f32.mrb[132].mxu1 }
0x220e   : > { %v5492_v54 = vmul.f32 0.35355338, %v5478_v32  ;;  %v7666_v57 = vpop.f32.mrb[133].mxu1 }
0x2210   : > { %v5495_v52 = vsel %vm1102_vm7, %v5492_v54, -inf }
0x2211   : > { %5496 = vmax.xlane.f32.xlu0 %v5495_v52  ;;  %v5483_v53 = vpop.f32.mrb[134].mxu1 }
0x2212   : > { %v5493_v55 = vmul.f32 0.35355338, %v5483_v53  ;;  %v7669_v56 = vpop.f32.mrb[135].mxu1 }
0x2214   : > { %v5498_v58 = vsel %vm1102_vm7, %v5493_v55, -inf }
0x2215   : > { %5499 = vmax.xlane.f32.xlu0 %v5498_v58  ;;  %v5488_v60 = vpop.f32.mrb[136].mxu1 }
0x2216   : > { %v7672_v62 = vpop.f32.mrb[137].mxu1  ;;  %v5494_v5 = vmul.f32 0.35355338, %v5488_v60 }
0x2218   : > { %v5501_v15 = vsel %vm1109_vm8, %v5494_v5, -inf }
0x229e   : > { %v5497_v59 = vpop.xlane.xlu0 %5496 }
0x229f   : > { %v5504_v61 = vsub.f32 %v5492_v54, %v5497_v59 }
0x22a1   : > { %v5507_v63 = vmul.f32 1.442695, %v5504_v61 }
0x22a2   : > { %v5500_v0 = vpop.xlane.xlu0 %5499 }
0x22a3   : > { %8194 = vpow2.f32 %v5507_v63  ;;  %v5505_v1 = vsub.f32 %v5493_v55, %v5500_v0  ;;  %v6491_v63 = vld [vmem:[%s9917_s10 + $0x20] sm:$0xff]  ;;  %v6492_v0 = vld [vmem:[%s9917_s10 + $0x28] sm:$0xff] }
0x22a5   : > { %v5509_v2 = vmul.f32 1.442695, %v5505_v1  ;;  %v8008_v1 = vpack.c.bf16 %v6492_v0, %v6491_v63 }
0x22a7   : > { %8196 = vpow2.f32 %v5509_v2 }
0x22ad   : > { %v8195_v4 = vpop.eup %8194 }
0x22ae   : > { %v5513_v7 = vsel %vm1102_vm7, %v8195_v4, 0.0 }
0x22af   : > { %5514 = vadd.xlane.f32.xlu1 %v5513_v7 }
0x22b1   : > { %v8197_v8 = vpop.eup %8196 }
0x22b2   : > { %v5516_v10 = vsel %vm1102_vm7, %v8197_v8, 0.0 }
0x22b3   : > { %5517 = vadd.xlane.f32.xlu0 %v5516_v10  ;;  %5502 = vmax.xlane.f32.xlu1 %v5501_v15 }
0x233c   : > { %v5515_v17 = vpop.xlane.xlu1 %5514 }
0x233d   : > { %8198 = vrcp.f32 %v5515_v17 }
0x2340   : > { %v5518_v13 = vpop.xlane.xlu0 %5517  ;;  %v5503_v11 = vpop.xlane.xlu1 %5502 }
0x2341   : > { %8200 = vrcp.f32 %v5518_v13  ;;  %v5506_v9 = vsub.f32 %v5494_v5, %v5503_v11 }
0x2343   : > { %v5511_v18 = vmul.f32 1.442695, %v5506_v9  ;;  %v6489_v9 = vld [vmem:[%s9915_s8 + $0x1] ss:$0 sm:$0xff] }
0x2345   : > { %8202 = vpow2.f32 %v5511_v18 }
0x2347   : > { %v8199_v20 = vpop.eup %8198 }
0x2348   : > { %v5525_v22 = vmul.f32 %v8199_v20, %v8195_v4 }
0x234a   : > { %7680 = vmatmul.mubr.msk.f32.vlgmr.msra.gmra.mrb[156].mxu0 %vm1102_vm7, %v5525_v22  ;;  %v6490_v22 = vld [vmem:[%s9916_s9 + $0x1] ss:$0 sm:$0xff] }
0x234b   : > { %v8201_v19 = vpop.eup %8200  ;;  %7682 = vmatprep.mubr.msk.f32.mxu0 %vm8285_vm0, %v8286_v6  ;;  %8009 = vmatpush3.bf16.msra.mxu0 %v8008_v1 }
0x234c   : > { %v5526_v23 = vmul.f32 %v8201_v19, %v8197_v8  ;;  %8010 = vmatprep.subr.bf16.mxu0 %v8284_v3 }
0x234e   : > { %7683 = vmatmul.mubr.msk.f32.gmra.mrb[158].mxu0 %vm1102_vm7, %v5526_v23 }
0x234f   : > { %v8203_v25 = vpop.eup %8202  ;;  %7685 = vmatprep.mubr.msk.f32.mxu0 %vm8285_vm0, %v8286_v6 }
0x2350   : > { %v5519_v14 = vsel %vm1109_vm8, %v8203_v25, 0.0 }
0x2351   : > { %5520 = vadd.xlane.f32.xlu1 %v5519_v14 }
0x23de   : > { %v5521_v35 = vpop.xlane.xlu1 %5520 }
0x23df   : > { %8204 = vrcp.f32 %v5521_v35 }
0x23e9   : > { %v8205_v41 = vpop.eup %8204 }
0x23ea   : > { %v5527_v12 = vmul.f32 %v8205_v41, %v8203_v25 }
0x23ec   : > { %7686 = vmatmul.mubr.msk.f32.gmra.mrb[160].mxu0 %vm1102_vm7, %v5527_v12 }
0x23ed   : > { %7707 = vmatprep.mubr.msk.f32.mxu0 %vm8285_vm0, %v8286_v6 }
0x241d   : > { %v5606_v44 = vpop.f32.mrb[156].mxu0 }
0x241e   : > { %v7681_v28 = vpop.f32.mrb[157].mxu0  ;;  %7691 = vmatmul.mubr.msk.f32.vlgmr.msra.gmra.mrb[138].mxu1 %vm1000_vm4, %v5606_v44  ;;  %v6500_v44 = vld [vmem:[%s9919_s12 + $0x80] sm:$0xff] }
0x241f   : > { %7693 = vmatprep.mubr.msk.f32.mxu1 %vm8285_vm0, %v8286_v6  ;;  %v6501_v28 = vld [vmem:[%s9919_s12 + $0x88] sm:$0xff] }
0x2421   : > { %v5611_v16 = vpop.f32.mrb[158].mxu0 }
0x2422   : > { %v7684_v21 = vpop.f32.mrb[159].mxu0  ;;  %7694 = vmatmul.mubr.msk.f32.gmra.mrb[140].mxu1 %vm1000_vm4, %v5611_v16  ;;  %v8014_v16 = vpack.c.bf16 %v6501_v28, %v6500_v44 }
0x2423   : > { %7696 = vmatprep.mubr.msk.f32.mxu1 %vm8285_vm0, %v8286_v6  ;;  %v6502_v21 = vld [vmem:[%s9919_s12 + $0x90] sm:$0xff] }
0x2424   : > { %8015 = vmatpush3.bf16.msra.mxu1 %v8014_v16 }
0x2425   : > { %8016 = vmatprep.subr.bf16.mxu1 %v8284_v3 }
0x24bf   : > { %v5616_v40 = vpop.f32.mrb[160].mxu0 }
0x24c0   : > { %v7687_v34 = vpop.f32.mrb[161].mxu0  ;;  %7697 = vmatmul.mubr.msk.f32.gmra.mrb[142].mxu1 %vm1000_vm4, %v5616_v40  ;;  %v6503_v40 = vld [vmem:[%s9919_s12 + $0x98] sm:$0xff] }
0x24c1   : > { %7748 = vmatprep.mubr.msk.f32.mxu1 %vm8285_vm0, %v8286_v6  ;;  %v8017_v34 = vpack.c.bf16 %v6503_v40, %v6502_v21 }
0x24c3   : > { %8018 = vmatpush3.bf16.msra.mxu1 %v8017_v34 }
0x24c4   : > { %8019 = vmatprep.subr.bf16.mxu1 %v8284_v3 }
0x24f1   : > { %v5697_v31 = vpop.f32.mrb[138].mxu1 }
0x24f2   : > { %v5711_v42 = vadd.f32 %v5697_v31, %v9671_v24  ;;  %v7692_v33 = vpop.f32.mrb[139].mxu1  ;;  %v6504_v31 = vld [vmem:[%s9919_s12 + $0xa0] sm:$0xff] }
0x24f4   : > { %v5714_v45 = vadd.f32 %v5711_v42, %v9164_v38  ;;  %v6505_v42 = vld [vmem:[%s9919_s12 + $0xa8] sm:$0xff] }
0x24f5   : > { %v5702_v29 = vpop.f32.mrb[140].mxu1  ;;  %v8020_v33 = vpack.c.bf16 %v6505_v42, %v6504_v31 }
0x24f6   : > { %v9726_v47 = vadd.f32 %v6486_v36, %v5714_v45  ;;  %v5712_v26 = vadd.f32 %v5702_v29, %v9674_v37  ;;  %v7695_v48 = vpop.f32.mrb[141].mxu1  ;;  %v6507_v45 = vld [vmem:[%s9919_s12 + $0xb8] sm:$0xff] }
0x24f7   : > { %8021 = vmatpush3.bf16.msra.mxu1 %v8020_v33  ;;  %v6509_v48 = vld [vmem:[%s9919_s12 + $0xc8] sm:$0xff]  ;;  %v6517_v33 = vld [vmem:[%s9920_s13 + $0x1] ss:$0 sm:$0xff] }
0x24f8   : > { %v5715_v27 = vadd.f32 %v5712_v26, %v9169_v39  ;;  %v5732_v49 = vsel %vm677_vm2, %v9726_v47, 0.0  ;;  %8022 = vmatprep.subr.bf16.mxu1 %v8284_v3  ;;  %v6508_v26 = vld [vmem:[%s9919_s12 + $0xc0] sm:$0xff] }
0x24f9   : > { %5733 = vadd.xlane.f32.xlu0 %v5732_v49  ;;  %v6510_v49 = vld [vmem:[%s9919_s12 + $0xd0] sm:$0xff] }
0x24fa   : > { %v5726_v24 = vadd.f32 %v6486_v36, %v5715_v27  ;;  %v8026_v27 = vpack.c.bf16 %v6509_v48, %v6508_v26 }
0x24fc   : > { %v5735_v51 = vsel %vm677_vm2, %v5726_v24, 0.0 }
0x24fd   : > { %5736 = vadd.xlane.f32.xlu0 %v5735_v51 }
0x2586   : > { %v5734_v50 = vpop.xlane.xlu0 %5733 }
0x2587   : > { %v5741_v32 = vmul.f32 0.03125, %v5734_v50  ;;  %v6512_v50 = vld [vmem:[%s9919_s12 + $0xe0] sm:$0xff] }
0x2589   : > { %v5744_v38 = vsub.f32 %v9726_v47, %v5741_v32  ;;  %v6513_v32 = vld [vmem:[%s9919_s12 + $0xe8] sm:$0xff] }
0x258a   : > { %v5737_v54 = vpop.xlane.xlu0 %5736 }
0x258b   : > { %v5742_v57 = vmul.f32 0.03125, %v5737_v54  ;;  %v5747_v52 = vmul.f32 %v5744_v38, %v5744_v38  ;;  %v6514_v54 = vld [vmem:[%s9919_s12 + $0xf0] sm:$0xff] }
0x258d   : > { %v5745_v53 = vsub.f32 %v5726_v24, %v5742_v57  ;;  %v5750_v37 = vsel %vm677_vm2, %v5747_v52, 0.0  ;;  %v6511_v24 = vld [vmem:[%s9919_s12 + $0xd8] sm:$0xff] }
0x258e   : > { %5751 = vadd.xlane.f32.xlu1 %v5750_v37  ;;  %v8029_v51 = vpack.c.bf16 %v6511_v24, %v6510_v49  ;;  %v6515_v57 = vld [vmem:[%s9919_s12 + $0xf8] sm:$0xff] }
0x258f   : > { %v5748_v39 = vmul.f32 %v5745_v53, %v5745_v53  ;;  %v8035_v52 = vpack.c.bf16 %v6515_v57, %v6514_v54  ;;  %v6041_v54 = vld [vmem:[%s9923_s16 + $0x8] sm:$0xff] }
0x2591   : > { %v5753_v55 = vsel %vm677_vm2, %v5748_v39, 0.0 }
0x2592   : > { %5754 = vadd.xlane.f32.xlu0 %v5753_v55 }
0x2593   : > { %v5707_v56 = vpop.f32.mrb[142].mxu1 }
0x2594   : > { %v5713_v58 = vadd.f32 %v5707_v56, %v9677_v46  ;;  %v7698_v60 = vpop.f32.mrb[143].mxu1  ;;  %v6494_v46 = vld [vmem:[%s9917_s10 + $0x38] sm:$0xff] }
0x2596   : > { %v5716_v62 = vadd.f32 %v5713_v58, %v9174_v43  ;;  %v6493_v43 = vld [vmem:[%s9917_s10 + $0x30] sm:$0xff] }
0x2597   : > { %v8011_v2 = vpack.c.bf16 %v6494_v46, %v6493_v43 }
0x2598   : > { %v5727_v59 = vadd.f32 %v6486_v36, %v5716_v62  ;;  %v6506_v36 = vld [vmem:[%s9919_s12 + $0xb0] sm:$0xff]  ;;  %v6496_v62 = vld [vmem:[%s9918_s11 + $0x1] ss:$0 sm:$0xff] }
0x2599   : > { %8012 = vmatpush3.bf16.msra.mxu0 %v8011_v2  ;;  %v8023_v29 = vpack.c.bf16 %v6507_v45, %v6506_v36 }
0x259a   : > { %v5738_v61 = vsel %vm684_vm3, %v5727_v59, 0.0  ;;  %8037 = vmatprep.subr.bf16.mxu0 %v8284_v3 }
0x259b   : > { %5739 = vadd.xlane.f32.xlu1 %v5738_v61  ;;  %8024 = vmatpush3.bf16.msra.mxu1 %v8023_v29 }
0x259c   : > { %8025 = vmatprep.subr.bf16.mxu1 %v8284_v3 }
0x259f   : > { %8027 = vmatpush3.bf16.msra.mxu1 %v8026_v27 }
0x25a0   : > { %8028 = vmatprep.subr.bf16.mxu1 %v8284_v3 }
0x25a3   : > { %8030 = vmatpush3.bf16.msra.mxu1 %v8029_v51 }
0x25a4   : > { %8031 = vmatprep.subr.bf16.mxu1 %v8284_v3 }
0x261b   : > { %v5752_v4 = vpop.xlane.xlu1 %5751 }
0x261c   : > { %v5759_v5 = vmul.f32 0.03125, %v5752_v4 }
0x261e   : > { %v5762_v7 = vadd.f32 1e-05, %v5759_v5 }
0x261f   : > { %v5755_v8 = vpop.xlane.xlu0 %5754 }
0x2620   : > { %8206 = vrsqrt.f32 %v5762_v7  ;;  %v5760_v10 = vmul.f32 0.03125, %v5755_v8 }
0x2622   : > { %v5763_v15 = vadd.f32 1e-05, %v5760_v10 }
0x2624   : > { %8208 = vrsqrt.f32 %v5763_v15 }
0x2628   : > { %v5740_v17 = vpop.xlane.xlu1 %5739 }
0x2629   : > { %v5743_v13 = vmul.f32 0.03125, %v5740_v17 }
0x262a   : > { %v8207_v11 = vpop.eup %8206 }
0x262b   : > { %v5768_v18 = vmul.f32 %v8207_v11, %v5744_v38  ;;  %v5746_v20 = vsub.f32 %v5727_v59, %v5743_v13  ;;  %v8032_v38 = vpack.c.bf16 %v6513_v32, %v6512_v50 }
0x262d   : > { %v5777_v19 = vmul.f32 %v6489_v9, %v5768_v18  ;;  %v5749_v23 = vmul.f32 %v5746_v20, %v5746_v20  ;;  %8033 = vmatpush3.bf16.msra.mxu1 %v8032_v38 }
0x262e   : > { %v8209_v25 = vpop.eup %8208  ;;  %8034 = vmatprep.subr.bf16.mxu1 %v8284_v3 }
0x262f   : > { %v5786_v14 = vadd.f32 %v6490_v22, %v5777_v19  ;;  %v5756_v30 = vsel %vm684_vm3, %v5749_v23, 0.0  ;;  %v5769_v35 = vmul.f32 %v8209_v25, %v5745_v53 }
0x2630   : > { %5757 = vadd.xlane.f32.xlu1 %v5756_v30 }
0x2631   : > { %7708 = vmatmul.mubr.msk.f32.vlgmr.msra.gmra.mrb[162].mxu0 %vm677_vm2, %v5786_v14  ;;  %v5778_v41 = vmul.f32 %v6489_v9, %v5769_v35  ;;  %8036 = vmatpush3.bf16.msra.mxu1 %v8035_v52  ;;  %v6042_v52 = vld [vmem:[%s9923_s16 + $0x10] sm:$0xff] }
0x2632   : > { %7710 = vmatprep.mubr.msk.f32.mxu0 %vm8285_vm0, %v8286_v6 }
0x2633   : > { %v5787_v12 = vadd.f32 %v6490_v22, %v5778_v41 }
0x2635   : > { %7711 = vmatmul.mubr.msk.f32.gmra.mrb[164].mxu0 %vm677_vm2, %v5787_v12 }
0x2636   : > { %7713 = vmatprep.mubr.msk.f32.mxu0 %vm8285_vm0, %v8286_v6 }
0x26bd   : > { %v5758_v53 = vpop.xlane.xlu1 %5757 }
0x26be   : > { %v5761_v37 = vmul.f32 0.03125, %v5758_v53  ;;  %v6043_v53 = vld [vmem:[%s9923_s16 + $0x18] sm:$0xff] }
0x26c0   : > { %v5764_v39 = vadd.f32 1e-05, %v5761_v37  ;;  %v8041_v37 = vpack.c.bf16 %v6043_v53, %v6042_v52 }
0x26c2   : > { %8210 = vrsqrt.f32 %v5764_v39 }
0x26cc   : > { %v8211_v55 = vpop.eup %8210 }
0x26cd   : > { %v5770_v56 = vmul.f32 %v8211_v55, %v5746_v20 }
0x26cf   : > { %v5779_v58 = vmul.f32 %v6489_v9, %v5770_v56 }
0x26d1   : > { %v5788_v60 = vadd.f32 %v6490_v22, %v5779_v58 }
0x26d3   : > { %7714 = vmatmul.mubr.msk.f32.gmra.mrb[166].mxu0 %vm677_vm2, %v5788_v60 }
0x26d4   : > { %7765 = vmatprep.mubr.msk.f32.mxu0 %vm8285_vm0, %v8286_v6 }
0x2704   : > { %v5877_v59 = vpop.f32.mrb[162].mxu0 }
0x2705   : > { %v5878_v61 = vadd.f32 %v6496_v62, %v5877_v59  ;;  %v7709_v63 = vpop.f32.mrb[163].mxu0 }
0x2706   : > { %v6044_v63 = vld [vmem:[%s9924_s17] sm:$0x1] }
0x2707   : > { %v5894_v0 = vmul.f32 0.044715, %v5878_v61  ;;  %v5891_v9 = vmul.f32 0.5, %v5878_v61 }
0x2708   : > { %v5882_v1 = vpop.f32.mrb[164].mxu0 }
0x2709   : > { %v5897_v43 = vmul.f32 %v5894_v0, %v5878_v61  ;;  %v5883_v46 = vadd.f32 %v6496_v62, %v5882_v1  ;;  %v7712_v2 = vpop.f32.mrb[165].mxu0 }
0x270b   : > { %v5900_v4 = vmul.f32 %v5897_v43, %v5878_v61  ;;  %v5895_v5 = vmul.f32 0.044715, %v5883_v46  ;;  %v5892_v19 = vmul.f32 0.5, %v5883_v46 }
0x270d   : > { %v5903_v7 = vadd.f32 %v5900_v4, %v5878_v61  ;;  %v5898_v8 = vmul.f32 %v5895_v5, %v5883_v46 }
0x270f   : > { %v5906_v10 = vmul.f32 0.7978846, %v5903_v7  ;;  %v5901_v15 = vmul.f32 %v5898_v8, %v5883_v46 }
0x2711   : > { %8212 = vtanh.f32 %v5906_v10  ;;  %v5904_v17 = vadd.f32 %v5901_v15, %v5883_v46 }
0x2713   : > { %v5907_v13 = vmul.f32 0.7978846, %v5904_v17 }
0x2715   : > { %8214 = vtanh.f32 %v5907_v13 }
0x271b   : > { %v8213_v11 = vpop.eup %8212 }
0x271c   : > { %v5912_v18 = vadd.f32 1.0, %v8213_v11 }
0x271e   : > { %v5915_v20 = vmul.f32 %v5912_v18, %v5891_v9 }
0x271f   : > { %v8215_v22 = vpop.eup %8214 }
0x2720   : > { %7749 = vmatmul.mubr.f32.vlgmr.msra.gmra.mrb[144].mxu1 %v5915_v20  ;;  %v5913_v23 = vadd.f32 1.0, %v8215_v22 }
0x2721   : > { %7751 = vmatprep.mubr.msk.f32.mxu1 %vm8285_vm0, %v8286_v6 }
0x2722   : > { %v5916_v25 = vmul.f32 %v5913_v23, %v5892_v19 }
0x2724   : > { %7752 = vmatmul.mubr.f32.gmra.mrb[146].mxu1 %v5916_v25 }
0x2725   : > { %7754 = vmatprep.mubr.msk.f32.mxu1 %vm8285_vm0, %v8286_v6 }
0x27a6   : > { %v5887_v14 = vpop.f32.mrb[166].mxu0 }
0x27a7   : > { %v5888_v30 = vadd.f32 %v6496_v62, %v5887_v14  ;;  %v7715_v35 = vpop.f32.mrb[167].mxu0  ;;  %v6024_v62 = vld [vmem:[%s9922_s15] sm:$0x1] }
0x27a9   : > { %v5896_v41 = vmul.f32 0.044715, %v5888_v30  ;;  %v5893_v40 = vmul.f32 0.5, %v5888_v30 }
0x27ab   : > { %v5899_v12 = vmul.f32 %v5896_v41, %v5888_v30 }
0x27ad   : > { %v5902_v44 = vmul.f32 %v5899_v12, %v5888_v30 }
0x27af   : > { %v5905_v28 = vadd.f32 %v5902_v44, %v5888_v30 }
0x27b1   : > { %v5908_v16 = vmul.f32 0.7978846, %v5905_v28 }
0x27b3   : > { %8216 = vtanh.f32 %v5908_v16 }
0x27bd   : > { %v8217_v21 = vpop.eup %8216 }
0x27be   : > { %v5914_v34 = vadd.f32 1.0, %v8217_v21 }
0x27c0   : > { %v5917_v31 = vmul.f32 %v5914_v34, %v5893_v40 }
0x27c2   : > { %7755 = vmatmul.mubr.f32.gmra.mrb[148].mxu1 %v5917_v31 }
0x27f3   : > { %v6001_v42 = vpop.f32.mrb[144].mxu1 }
0x27f4   : > { %v6013_v6 = vadd.f32 %v6001_v42, %v9726_v47  ;;  %v7750_v36 = vpop.f32.mrb[145].mxu1  ;;  %v6040_v47 = vld [vmem:[%s9923_s16] sm:$0xff] }
0x27f5   : > { %v8038_v57 = vpack.c.bf16 %v6041_v54, %v6040_v47 }
0x27f6   : > { %v6022_v45 = vadd.f32 %v6517_v33, %v6013_v6 }
0x27f7   : > { %v6006_v29 = vpop.f32.mrb[146].mxu1  ;;  %8039 = vmatpush3.bf16.msra.mxu0 %v8038_v57 }
0x27f8   : > { %v7753_v26 = vpop.f32.mrb[147].mxu1  ;;  %v6025_v48 = vsel %vm684_vm3, %v6022_v45, 0.0  ;;  %8040 = vmatprep.subr.bf16.mxu0 %v8284_v3  ;;  %v6023_v3 = vld [vmem:[%s9921_s14] sm:$0x1] }
0x27f9   : > { %6026 = vadd.xlane.f32.xlu0 %v6025_v48 }
0x27fb   : > { %8042 = vmatpush3.bf16.msra.mxu0 %v8041_v37 }
0x2886   : > { %v6027_v27 = vpop.xlane.xlu0 %6026 }
0x2887   : > { %v6028_v49 = vmul.f32 0.03125, %v6027_v27 }
0x2889   : > { %v6029_v24 = vsub.f32 %v6022_v45, %v6028_v49 }
0x288b   : > { %v6030_v51 = vmul.f32 %v6029_v24, %v6029_v24 }
0x288d   : > { %v6031_v50 = vsel %vm684_vm3, %v6030_v51, 0.0 }
0x288e   : > { %6032 = vadd.xlane.f32.xlu1 %v6031_v50 }
0x2895   : > { %v6010_v32 = vpop.f32.mrb[148].mxu1 }
0x2896   : > { %v7756_v38 = vpop.f32.mrb[149].mxu1 }
0x291b   : > { %v6033_v39 = vpop.xlane.xlu1 %6032 }
0x291c   : > { %v6034_v55 = vmul.f32 0.03125, %v6033_v39 }
0x291e   : > { %v6035_v56 = vadd.f32 1e-05, %v6034_v55 }
0x2920   : > { %8218 = vrsqrt.f32 %v6035_v56 }
0x292a   : > { %v8219_v58 = vpop.eup %8218 }
0x292b   : > { %v6037_v60 = vmul.f32 %v8219_v58, %v6029_v24 }
0x292d   : > { %v6038_v59 = vmul.f32 %v6037_v60, %v6023_v3 }
0x292f   : > { %v6039_v61 = vadd.f32 %v6038_v59, %v6024_v62 }
0x2931   : > { %7766 = vmatmul.mubr.msk.f32.vlgmr.msra.gmra.mrb[168].mxu0 %vm677_vm2, %v6039_v61 }
0x2a04   : > { %v6114_v0 = vpop.f32.mrb[168].mxu0 }
0x2a05   : > { %v6115_v1 = vadd.f32 %v6114_v0, %v6044_v63  ;;  %v7767_v43 = vpop.f32.mrb[169].mxu0 }
0x2a07   : > { %6119 = vst.msk [vmem:[%s567_s1] sm:$0x1] %vm6118_vm9, %v6115_v1 }
0x2a08   : > { %8233 = shalt.err (!%p8230_p3)
}
0x2a09   : > { %s8234_s22 = scalar_lea.hbm %s9865_s21, 16  ;;  %s8238_s19 = scalar_lea.hbm %s9925_s18, 32 }
0x2a0a   : > { %p8235_p4 = scmp.ne.s32.totalorder %s9865_s21, %s8234_s22  ;;  %p8239_p9 = scmp.lt.u32.totalorder %s9865_s21, %s9925_s18 }
0x2a0b   : > { %p8240_p10 = scmp.lt.u32.totalorder %s8238_s19, %s8234_s22  ;;  %p8242_p12 = scmp.lt.u32.totalorder %s8234_s22, %s9865_s21 }
0x2a0c   : > { %p8236_p7 = pnand %p8235_p4, %p8421_p5 }
0x2a0d   : > { %p8241_p11 = por %p8240_p10, %p8239_p9 }
0x2a0e   : > { %p8237_p8 = pneg %p8236_p7 }
0x2a0f   : > { %p8243_p13 = por %p8242_p12, %p8241_p11 }
0x2a11   : > { %p8244_p0 = pnand %p8243_p13, %p8237_p8 }
0x2a13   : > { %8247 = shalt.err (!%p8244_p0)
}
0x2a14   : > { %8044 = dma.vmem_to_hbm [thread:$0]  (%p8421_p5), %s9867_s3, 16, %s9865_s21, %s6121_s23  }
0x2a15 PF: > { %s9952_s4 = sld [smem:[#allocation5_spill]]  ;;  %p8050_p1 = scmp.ge.s32.totalorder %s8282_s30, 2 }
0x2a17   : > { %p8047_p2 = pnand %p8050_p1, %p8425_p6 }
0x2a1b   : > { %s6145_s29 = sand.u32 1, %s9952_s4  }
0x2a1c   : > { %s6146_s27 = scalar_lea.sflag [#allocation3], %s6145_s29 }
0x2a1d   : > { %8265 = dma.done.wait (!%p8047_p2), %s6146_s27, 16  }
0x2a1e   : > { %8267 = vsyncadd (!%p8047_p2), %s6146_s27, 4294967280  ;;  %s9954_s30 = sld [smem:[#allocation7_spill]]  ;;  %s9955_s22 = sld [smem:[#allocation6_spill]] }
0x2a1f   : > { %s9956_s29 = sld [smem:[#allocation8_spill]]  ;;  %s9957_s27 = smov %s8274_s28 }
0x2a24   : > { %p28_p3 = scmp.ge.s32.totalorder %s9954_s30, 4   ;;  %s9958_s28 = smov %s9955_s22 }
0x2a26   :  { %30 = sbr.rel (!%p28_p3) target bundleno = 9 (0x9), region = 166 }
0x2a2d   :  { %6150 = vsyncpa [#allocation3], 1 }
0x2a2e   :  { %6152 = vsyncpa [#allocation3 + $0x1], 1 }

</bundles_post_ra>
